<compile_context>
chip_gen: v6e
topology: v6e:2x2x1
jax: 0.10.0
libtpu: 0.0.40
codegen_flags: <defaults>
</compile_context>

<pallas_src>
import jax
import jax.numpy as jnp
from jax import lax
from jax.experimental import pallas as pl
from jax.experimental.pallas import tpu as pltpu


def _round_up(x, m):
    return (x + m - 1) // m * m


def _make_value_kernel(T, DP, HP, W, use_scratch):
    """Fused GRU-encoder + value-head forward kernel.

    Packed operand layout (all slices below are 128-lane / sublane aligned):
      wb_ref (bf16, (DP + 2*HP + 8, W)):
        rows [0, DP)              : W_ih  (gate g in lanes [g*HP, g*HP+H))
        rows [DP, DP+HP)          : W_hh  (same per-gate lane groups)
        rows [DP+HP, DP+2*HP)     : vnet Linear-1 weight (cols [0, H1))
        row  DP+2*HP              : vnet value-head weight (lanes [0, H1))
      c_ref (f32, (8, W)):
        row 0: fused gate biases [b_ir+b_hr | b_iz+b_hz | b_in]
        row 1: b_hn (stays inside r * (h @ W_hn + b_hn), PyTorch GRU semantics)
        row 2: vnet Linear-1 bias, row 3 lane 0: value-head bias
    """
    GP = 3 * HP

    def kernel(x_ref, wb_ref, c_ref, out_ref, *scratch):
        Bb = x_ref.shape[0]

        # ---- static views of the packed operand blocks (zero-cost slices) ----
        wih = wb_ref[0:DP, :]                            # (DP, W) bf16
        whh = wb_ref[DP:DP + HP, :]                      # (HP, W) bf16
        w1 = wb_ref[DP + HP:DP + 2 * HP, :]              # (HP, W) bf16
        w2 = wb_ref[DP + 2 * HP:DP + 2 * HP + 1, :]      # (1, W)  bf16
        c = c_ref[...]                                   # (8, W)  f32
        bx = c[0:1, :]                                   # fused [r|z|n] biases
        bhn = c[1:2, 0:HP]                               # b_hn
        b1 = c[2:3, :]                                   # vnet Linear-1 bias
        b2 = c[3:4, 0:1]                                 # value-head bias

        # ---- hoisted input projection: ONE MXU matmul covers all timesteps ----
        x2d = x_ref[...].reshape(Bb * T, DP)             # bf16
        xg = jnp.dot(x2d, wih, preferred_element_type=jnp.float32) + bx
        xg = xg.reshape(Bb, T, W)                        # f32

        if use_scratch:                                  # large bb*T only
            xg_ref = scratch[0]
            xg_ref[...] = xg
            read_xg = lambda t: xg_ref[:, t, :]
        else:                                            # stays value-resident
            read_xg = lambda t: xg[:, t, :]

        bhn_b = jnp.broadcast_to(bhn, (Bb, HP))          # hoisted broadcast

        # ---- GRU recurrence: fully unrolled (T static & small); per step ONE
        #      matmul, ONE fused sigmoid, one tanh.  Only h -> h is serial.
        #      h lanes [H, HP) stay exactly 0 (zero-padded weights/biases), so
        #      working at full 128-lane slab width is free on the VPU. --------
        h = jnp.zeros((Bb, HP), jnp.float32)
        for t in range(T):
            xg_t = read_xg(t)                                              # (Bb, W)
            hg = jnp.dot(h.astype(jnp.bfloat16), whh,
                         preferred_element_type=jnp.float32)               # (Bb, W)
            rz = jax.nn.sigmoid(xg_t[:, :2 * HP] + hg[:, :2 * HP])         # fused r|z
            r = rz[:, :HP]
            z = rz[:, HP:2 * HP]
            n = jnp.tanh(xg_t[:, 2 * HP:GP] + r * (hg[:, 2 * HP:GP] + bhn_b))
            h = (1.0 - z) * n + z * h

        # ---- vnet: Linear -> ReLU -> Dropout (identity at eval) -> Linear(1) --
        # TODO(synk): Dropout is stochastic only in train mode; eval forward is identity.
        h1 = jnp.maximum(
            jnp.dot(h.astype(jnp.bfloat16), w1,
                    preferred_element_type=jnp.float32) + b1, 0.0)
        # Lane-dense (1, Bb) output row: tiny dot_general contracting features
        # (out[0, b] = sum_k w2[k] * h1[b, k]); avoids a 1-lane column store.
        out_ref[...] = lax.dot_general(
            w2, h1.astype(jnp.bfloat16),
            dimension_numbers=(((1,), (1,)), ((), ())),
            preferred_element_type=jnp.float32) + b2

    return kernel


def _pick_block_b(B):
    """Batch tile: multiple of 8; capped at 64 to bound the unrolled
    recurrence's live ranges (no vreg spills); >= 2 grid steps for large B so
    both v7x TensorCores get work under dimension_semantics=("parallel",)."""
    if B <= 64:
        return _round_up(B, 8)
    return min(64, _round_up(pl.cdiv(B, 2), 8))


def value_network_forward(state_btd, params):
    """state_btd: (B, T, D) float32, batch-first like the PyTorch caller.

    params hold PyTorch-native shapes:
      gru_weight_ih (3H, D), gru_weight_hh (3H, H), gru_bias_ih/hh (3H,)
      vnet0_weight (H1, H), vnet0_bias (H1,), vnet3_weight (1, H1), vnet3_bias (1,)
    """
    B, T, D = state_btd.shape
    w_ih = params["gru_weight_ih"].astype(jnp.float32)
    w_hh = params["gru_weight_hh"].astype(jnp.float32)
    b_ih = params["gru_bias_ih"].astype(jnp.float32)
    b_hh = params["gru_bias_hh"].astype(jnp.float32)
    w1 = params["vnet0_weight"].astype(jnp.float32)
    b1 = params["vnet0_bias"].astype(jnp.float32)
    w2 = params["vnet3_weight"].astype(jnp.float32)
    b2 = params["vnet3_bias"].astype(jnp.float32)

    H = w_hh.shape[1]
    H1 = w1.shape[0]
    HP = _round_up(H, 128)            # per-gate lane-group width
    H1P = _round_up(H1, 128)
    GP = 3 * HP
    W = max(GP, H1P)                  # common lane width of all packed blocks
    DP = _round_up(D, 16)             # bf16 sublane-packing granularity

    # ---- ONE bf16 weight block (single DMA), per-gate lane-aligned ----------
    wih_p = jnp.zeros((DP, W), jnp.float32)
    whh_p = jnp.zeros((HP, W), jnp.float32)
    for g in range(3):                # PyTorch row-blocks [r; z; n] -> lane groups
        wih_p = wih_p.at[:D, g * HP:g * HP + H].set(w_ih.T[:, g * H:(g + 1) * H])
        whh_p = whh_p.at[:H, g * HP:g * HP + H].set(w_hh.T[:, g * H:(g + 1) * H])
    w1_p = jnp.zeros((HP, W), jnp.float32).at[:H, :H1].set(w1.T)
    w2_p = jnp.zeros((8, W), jnp.float32).at[0, :H1].set(w2[0])
    wblock = jnp.concatenate([wih_p, whh_p, w1_p, w2_p], axis=0).astype(jnp.bfloat16)
    RB = DP + 2 * HP + 8

    # ---- ONE small f32 constants block (single DMA) -------------------------
    consts = jnp.zeros((8, W), jnp.float32)
    for g in range(3):
        bg = b_ih[g * H:(g + 1) * H]
        if g < 2:
            bg = bg + b_hh[g * H:(g + 1) * H]   # pre-summed r/z biases
        consts = consts.at[0, g * HP:g * HP + H].set(bg)
    consts = consts.at[1, :H].set(b_hh[2 * H:3 * H])    # b_hn kept separate
    consts = consts.at[2, :H1].set(b1)
    consts = consts.at[3, 0].set(b2[0])

    # ---- input cast to bf16 (MXU operand; halves HBM->VMEM bytes) -----------
    x = state_btd.astype(jnp.bfloat16)
    if DP != D:
        x = jnp.pad(x, ((0, 0), (0, 0), (0, DP - D)))

    bb = _pick_block_b(B)
    nb = pl.cdiv(B, bb)

    # Keep the hoisted projection value-resident when small; use an explicit
    # VMEM scratch only when it would blow the vreg/value budget.
    use_scratch = bb * T * W * 4 > 128 * 1024
    scratch_shapes = [pltpu.VMEM((bb, T, W), jnp.float32)] if use_scratch else []

    kernel = _make_value_kernel(T, DP, HP, W, use_scratch)

    # Explicit VMEM budget: double-buffered IO blocks + resident projection.
    io_bytes = 2 * (bb * T * DP * 2 + RB * W * 2 + 8 * W * 4 + bb * 4)
    live_bytes = bb * T * W * 4 * (2 if use_scratch else 1)
    vmem_limit = min(48 << 20, max(8 << 20, 2 * (io_bytes + live_bytes)))

    cost = pl.CostEstimate(
        flops=nb * (2 * bb * T * DP * W + T * (2 * bb * HP * W + 10 * bb * HP)
                    + 2 * bb * HP * W + 2 * bb * W),
        transcendentals=nb * bb * T * 3 * HP,
        bytes_accessed=B * T * DP * 2 + nb * (RB * W * 2 + 8 * W * 4) + nb * bb * 4,
    )

    out = pl.pallas_call(
        kernel,
        out_shape=jax.ShapeDtypeStruct((nb, bb), jnp.float32),
        grid=(nb,),
        in_specs=[
            pl.BlockSpec((bb, T, DP), lambda i: (i, 0, 0)),   # batch tile of x
            pl.BlockSpec((RB, W), lambda i: (0, 0)),          # fused bf16 weights
            pl.BlockSpec((8, W), lambda i: (0, 0)),           # fused f32 constants
        ],
        out_specs=pl.BlockSpec((1, bb), lambda i: (i, 0)),    # lane-dense row
        scratch_shapes=scratch_shapes,
        compiler_params=pltpu.CompilerParams(
            dimension_semantics=("parallel",),
            vmem_limit_bytes=vmem_limit),
        cost_estimate=cost,
    )(x, wblock, consts)

    # Padded batch rows of the last block (if any) compute garbage that is
    # simply discarded here; no cross-row mixing occurs inside the kernel.
    return out.reshape(-1)[:B].reshape(B, 1)


def value_network_reference(state_btd, params):
    """Pure-JAX f32 reference with PyTorch GRU + vnet semantics (eval mode)."""
    x = state_btd.astype(jnp.float32)
    B, T, _ = x.shape
    w_ih = params["gru_weight_ih"]
    w_hh = params["gru_weight_hh"]
    b_ih = params["gru_bias_ih"]
    b_hh = params["gru_bias_hh"]
    H = w_hh.shape[1]
    h = jnp.zeros((B, H), jnp.float32)
    for t in range(T):
        gi = x[:, t, :] @ w_ih.T + b_ih
        gh = h @ w_hh.T + b_hh
        r = jax.nn.sigmoid(gi[:, :H] + gh[:, :H])
        z = jax.nn.sigmoid(gi[:, H:2 * H] + gh[:, H:2 * H])
        n = jnp.tanh(gi[:, 2 * H:] + r * gh[:, 2 * H:])
        h = (1.0 - z) * n + z * h
    h1 = jnp.maximum(h @ params["vnet0_weight"].T + params["vnet0_bias"], 0.0)
    return h1 @ params["vnet3_weight"].T + params["vnet3_bias"]


def init_params(key, d_in, hidden, h1):
    ks = jax.random.split(key, 8)

    def u(k, shape, fan_in):
        bound = 1.0 / jnp.sqrt(jnp.float32(fan_in))
        return jax.random.uniform(k, shape, jnp.float32, -bound, bound)

    return {
        # seq_model: single-layer GRU, PyTorch parameter shapes, gate order r|z|n
        "gru_weight_ih": u(ks[0], (3 * hidden, d_in), d_in),
        "gru_weight_hh": u(ks[1], (3 * hidden, hidden), hidden),
        "gru_bias_ih": u(ks[2], (3 * hidden,), hidden),
        "gru_bias_hh": u(ks[3], (3 * hidden,), hidden),
        # vnet: parse_layers("32,64") -> Linear(32,64), ReLU, Dropout, Linear(64,1)
        "vnet0_weight": u(ks[4], (h1, hidden), hidden),
        "vnet0_bias": u(ks[5], (h1,), hidden),
        "vnet3_weight": u(ks[6], (1, h1), h1),
        "vnet3_bias": u(ks[7], (1,), h1),
    }


if __name__ == "__main__":
    B, T, D = 8, 8, 32       # batch, sequence length, input feature dim
    HIDDEN, H1 = 32, 64      # GRU hidden (== v_layers[0]), first vnet layer width

    key = jax.random.PRNGKey(0)
    k_state, k_params = jax.random.split(key)
    state = jax.random.normal(k_state, (B, T, D), jnp.float32)
    params = init_params(k_params, D, HIDDEN, H1)

    value = jax.jit(value_network_forward)(state, params)
    value = jax.block_until_ready(value)
    assert value.shape == (B, 1)

    ref = value_network_reference(state, params)
    # bf16 MXU operands (f32 accumulate + f32 element-wise) -> ~1e-3..1e-2 err.
    assert jnp.allclose(value, ref, atol=2e-2, rtol=2e-2), (
        "max abs err = %g" % float(jnp.max(jnp.abs(value - ref))))
    print("KERNEL_OK")
</pallas_src>

<mosaic_0001>
module attributes {stable_mosaic.version = 11 : i64} {
  func.func @kernel(%arg0: i32, %arg1: memref<8x8x32xbf16, #tpu.memory_space<vmem>>, %arg2: memref<296x384xbf16, #tpu.memory_space<vmem>>, %arg3: memref<8x384xf32, #tpu.memory_space<vmem>>, %arg4: memref<1x8xf32, #tpu.memory_space<vmem>>) attributes {dimension_semantics = [#tpu.dimension_semantics<parallel>], iteration_bounds = array<i64: 1>, scalar_prefetch = 0 : i64, scratch_operands = 0 : i64, tpu.core_type = #tpu.core_type<tc>, window_params = [{transform_indices = @transform_0, window_bounds = array<i64: 8, 8, 32>}, {pipeline_mode = #tpu.pipeline_mode<synchronous>, transform_indices = @transform_1, window_bounds = array<i64: 296, 384>}, {pipeline_mode = #tpu.pipeline_mode<synchronous>, transform_indices = @transform_2, window_bounds = array<i64: 8, 384>}, {transform_indices = @transform_3, window_bounds = array<i64: 1, 8>}]} {
    %c0 = arith.constant 0 : index
    %c0_0 = arith.constant 0 : index
    %0 = vector.load %arg2[%c0, %c0_0] : memref<296x384xbf16, #tpu.memory_space<vmem>>, vector<32x384xbf16>
    %c32 = arith.constant 32 : index
    %c0_1 = arith.constant 0 : index
    %1 = vector.load %arg2[%c32, %c0_1] : memref<296x384xbf16, #tpu.memory_space<vmem>>, vector<128x384xbf16>
    %c160 = arith.constant 160 : index
    %c0_2 = arith.constant 0 : index
    %2 = vector.load %arg2[%c160, %c0_2] : memref<296x384xbf16, #tpu.memory_space<vmem>>, vector<128x384xbf16>
    %c288 = arith.constant 288 : index
    %c0_3 = arith.constant 0 : index
    %3 = vector.load %arg2[%c288, %c0_3] : memref<296x384xbf16, #tpu.memory_space<vmem>>, vector<1x384xbf16>
    %c0_4 = arith.constant 0 : index
    %c0_5 = arith.constant 0 : index
    %4 = vector.load %arg3[%c0_4, %c0_5] : memref<8x384xf32, #tpu.memory_space<vmem>>, vector<8x384xf32>
    %5 = vector.extract_strided_slice %4 {offsets = [0, 0], sizes = [1, 384], strides = [1, 1]} : vector<8x384xf32> to vector<1x384xf32>
    %6 = vector.extract_strided_slice %4 {offsets = [1, 0], sizes = [1, 128], strides = [1, 1]} : vector<8x384xf32> to vector<1x128xf32>
    %7 = vector.extract_strided_slice %4 {offsets = [2, 0], sizes = [1, 384], strides = [1, 1]} : vector<8x384xf32> to vector<1x384xf32>
    %8 = vector.extract_strided_slice %4 {offsets = [3, 0], sizes = [1, 1], strides = [1, 1]} : vector<8x384xf32> to vector<1x1xf32>
    %c0_6 = arith.constant 0 : index
    %c0_7 = arith.constant 0 : index
    %c0_8 = arith.constant 0 : index
    %9 = vector.load %arg1[%c0_6, %c0_7, %c0_8] : memref<8x8x32xbf16, #tpu.memory_space<vmem>>, vector<8x8x32xbf16>
    %10 = vector.shape_cast %9 : vector<8x8x32xbf16> to vector<64x32xbf16>
    %cst = arith.constant dense<0.000000e+00> : vector<64x384xf32>
    %11 = tpu.matmul %10, %0, %cst {dimension_numbers = #tpu.dot_dimension_numbers<[1], [0], [0], [1], [0, 0, 1, 1], [], []>} : vector<64x32xbf16>, vector<32x384xbf16>, vector<64x384xf32> -> vector<64x384xf32>
    %12 = vector.broadcast %5 : vector<1x384xf32> to vector<64x384xf32>
    %13 = arith.addf %11, %12 : vector<64x384xf32>
    %14 = vector.shape_cast %13 : vector<64x384xf32> to vector<8x8x384xf32>
    %15 = vector.shape_cast %6 : vector<1x128xf32> to vector<1x128xf32>
    %16 = vector.broadcast %15 : vector<1x128xf32> to vector<8x128xf32>
    %cst_9 = arith.constant 0.000000e+00 : f32
    %17 = vector.broadcast %cst_9 : f32 to vector<8x128xf32>
    %18 = vector.extract_strided_slice %14 {offsets = [0, 0, 0], sizes = [8, 1, 384], strides = [1, 1, 1]} : vector<8x8x384xf32> to vector<8x1x384xf32>
    %19 = vector.shape_cast %18 : vector<8x1x384xf32> to vector<8x384xf32>
    %20 = arith.truncf %17 : vector<8x128xf32> to vector<8x128xbf16>
    %cst_10 = arith.constant dense<0.000000e+00> : vector<8x384xf32>
    %21 = tpu.matmul %20, %1, %cst_10 {dimension_numbers = #tpu.dot_dimension_numbers<[1], [0], [0], [1], [0, 0, 1, 1], [], []>} : vector<8x128xbf16>, vector<128x384xbf16>, vector<8x384xf32> -> vector<8x384xf32>
    %22 = vector.extract_strided_slice %19 {offsets = [0, 0], sizes = [8, 256], strides = [1, 1]} : vector<8x384xf32> to vector<8x256xf32>
    %23 = vector.extract_strided_slice %21 {offsets = [0, 0], sizes = [8, 256], strides = [1, 1]} : vector<8x384xf32> to vector<8x256xf32>
    %24 = arith.addf %22, %23 : vector<8x256xf32>
    %25 = arith.negf %24 : vector<8x256xf32>
    %26 = math.exp %25 : vector<8x256xf32>
    %cst_11 = arith.constant 1.000000e+00 : f32
    %27 = vector.broadcast %cst_11 : f32 to vector<8x256xf32>
    %28 = arith.addf %27, %26 : vector<8x256xf32>
    %29 = arith.divf %27, %28 : vector<8x256xf32>
    %30 = vector.extract_strided_slice %29 {offsets = [0, 0], sizes = [8, 128], strides = [1, 1]} : vector<8x256xf32> to vector<8x128xf32>
    %31 = vector.extract_strided_slice %29 {offsets = [0, 128], sizes = [8, 128], strides = [1, 1]} : vector<8x256xf32> to vector<8x128xf32>
    %32 = vector.extract_strided_slice %19 {offsets = [0, 256], sizes = [8, 128], strides = [1, 1]} : vector<8x384xf32> to vector<8x128xf32>
    %33 = vector.extract_strided_slice %21 {offsets = [0, 256], sizes = [8, 128], strides = [1, 1]} : vector<8x384xf32> to vector<8x128xf32>
    %34 = arith.addf %33, %16 : vector<8x128xf32>
    %35 = arith.mulf %30, %34 : vector<8x128xf32>
    %36 = arith.addf %32, %35 : vector<8x128xf32>
    %37 = math.tanh %36 : vector<8x128xf32>
    %cst_12 = arith.constant 1.000000e+00 : f32
    %38 = vector.broadcast %cst_12 : f32 to vector<8x128xf32>
    %39 = arith.subf %38, %31 : vector<8x128xf32>
    %40 = arith.mulf %39, %37 : vector<8x128xf32>
    %41 = arith.mulf %31, %17 : vector<8x128xf32>
    %42 = arith.addf %40, %41 : vector<8x128xf32>
    %43 = vector.extract_strided_slice %14 {offsets = [0, 1, 0], sizes = [8, 1, 384], strides = [1, 1, 1]} : vector<8x8x384xf32> to vector<8x1x384xf32>
    %44 = vector.shape_cast %43 : vector<8x1x384xf32> to vector<8x384xf32>
    %45 = arith.truncf %42 : vector<8x128xf32> to vector<8x128xbf16>
    %cst_13 = arith.constant dense<0.000000e+00> : vector<8x384xf32>
    %46 = tpu.matmul %45, %1, %cst_13 {dimension_numbers = #tpu.dot_dimension_numbers<[1], [0], [0], [1], [0, 0, 1, 1], [], []>} : vector<8x128xbf16>, vector<128x384xbf16>, vector<8x384xf32> -> vector<8x384xf32>
    %47 = vector.extract_strided_slice %44 {offsets = [0, 0], sizes = [8, 256], strides = [1, 1]} : vector<8x384xf32> to vector<8x256xf32>
    %48 = vector.extract_strided_slice %46 {offsets = [0, 0], sizes = [8, 256], strides = [1, 1]} : vector<8x384xf32> to vector<8x256xf32>
    %49 = arith.addf %47, %48 : vector<8x256xf32>
    %50 = arith.negf %49 : vector<8x256xf32>
    %51 = math.exp %50 : vector<8x256xf32>
    %cst_14 = arith.constant 1.000000e+00 : f32
    %52 = vector.broadcast %cst_14 : f32 to vector<8x256xf32>
    %53 = arith.addf %52, %51 : vector<8x256xf32>
    %54 = arith.divf %52, %53 : vector<8x256xf32>
    %55 = vector.extract_strided_slice %54 {offsets = [0, 0], sizes = [8, 128], strides = [1, 1]} : vector<8x256xf32> to vector<8x128xf32>
    %56 = vector.extract_strided_slice %54 {offsets = [0, 128], sizes = [8, 128], strides = [1, 1]} : vector<8x256xf32> to vector<8x128xf32>
    %57 = vector.extract_strided_slice %44 {offsets = [0, 256], sizes = [8, 128], strides = [1, 1]} : vector<8x384xf32> to vector<8x128xf32>
    %58 = vector.extract_strided_slice %46 {offsets = [0, 256], sizes = [8, 128], strides = [1, 1]} : vector<8x384xf32> to vector<8x128xf32>
    %59 = arith.addf %58, %16 : vector<8x128xf32>
    %60 = arith.mulf %55, %59 : vector<8x128xf32>
    %61 = arith.addf %57, %60 : vector<8x128xf32>
    %62 = math.tanh %61 : vector<8x128xf32>
    %cst_15 = arith.constant 1.000000e+00 : f32
    %63 = vector.broadcast %cst_15 : f32 to vector<8x128xf32>
    %64 = arith.subf %63, %56 : vector<8x128xf32>
    %65 = arith.mulf %64, %62 : vector<8x128xf32>
    %66 = arith.mulf %56, %42 : vector<8x128xf32>
    %67 = arith.addf %65, %66 : vector<8x128xf32>
    %68 = vector.extract_strided_slice %14 {offsets = [0, 2, 0], sizes = [8, 1, 384], strides = [1, 1, 1]} : vector<8x8x384xf32> to vector<8x1x384xf32>
    %69 = vector.shape_cast %68 : vector<8x1x384xf32> to vector<8x384xf32>
    %70 = arith.truncf %67 : vector<8x128xf32> to vector<8x128xbf16>
    %cst_16 = arith.constant dense<0.000000e+00> : vector<8x384xf32>
    %71 = tpu.matmul %70, %1, %cst_16 {dimension_numbers = #tpu.dot_dimension_numbers<[1], [0], [0], [1], [0, 0, 1, 1], [], []>} : vector<8x128xbf16>, vector<128x384xbf16>, vector<8x384xf32> -> vector<8x384xf32>
    %72 = vector.extract_strided_slice %69 {offsets = [0, 0], sizes = [8, 256], strides = [1, 1]} : vector<8x384xf32> to vector<8x256xf32>
    %73 = vector.extract_strided_slice %71 {offsets = [0, 0], sizes = [8, 256], strides = [1, 1]} : vector<8x384xf32> to vector<8x256xf32>
    %74 = arith.addf %72, %73 : vector<8x256xf32>
    %75 = arith.negf %74 : vector<8x256xf32>
    %76 = math.exp %75 : vector<8x256xf32>
    %cst_17 = arith.constant 1.000000e+00 : f32
    %77 = vector.broadcast %cst_17 : f32 to vector<8x256xf32>
    %78 = arith.addf %77, %76 : vector<8x256xf32>
    %79 = arith.divf %77, %78 : vector<8x256xf32>
    %80 = vector.extract_strided_slice %79 {offsets = [0, 0], sizes = [8, 128], strides = [1, 1]} : vector<8x256xf32> to vector<8x128xf32>
    %81 = vector.extract_strided_slice %79 {offsets = [0, 128], sizes = [8, 128], strides = [1, 1]} : vector<8x256xf32> to vector<8x128xf32>
    %82 = vector.extract_strided_slice %69 {offsets = [0, 256], sizes = [8, 128], strides = [1, 1]} : vector<8x384xf32> to vector<8x128xf32>
    %83 = vector.extract_strided_slice %71 {offsets = [0, 256], sizes = [8, 128], strides = [1, 1]} : vector<8x384xf32> to vector<8x128xf32>
    %84 = arith.addf %83, %16 : vector<8x128xf32>
    %85 = arith.mulf %80, %84 : vector<8x128xf32>
    %86 = arith.addf %82, %85 : vector<8x128xf32>
    %87 = math.tanh %86 : vector<8x128xf32>
    %cst_18 = arith.constant 1.000000e+00 : f32
    %88 = vector.broadcast %cst_18 : f32 to vector<8x128xf32>
    %89 = arith.subf %88, %81 : vector<8x128xf32>
    %90 = arith.mulf %89, %87 : vector<8x128xf32>
    %91 = arith.mulf %81, %67 : vector<8x128xf32>
    %92 = arith.addf %90, %91 : vector<8x128xf32>
    %93 = vector.extract_strided_slice %14 {offsets = [0, 3, 0], sizes = [8, 1, 384], strides = [1, 1, 1]} : vector<8x8x384xf32> to vector<8x1x384xf32>
    %94 = vector.shape_cast %93 : vector<8x1x384xf32> to vector<8x384xf32>
    %95 = arith.truncf %92 : vector<8x128xf32> to vector<8x128xbf16>
    %cst_19 = arith.constant dense<0.000000e+00> : vector<8x384xf32>
    %96 = tpu.matmul %95, %1, %cst_19 {dimension_numbers = #tpu.dot_dimension_numbers<[1], [0], [0], [1], [0, 0, 1, 1], [], []>} : vector<8x128xbf16>, vector<128x384xbf16>, vector<8x384xf32> -> vector<8x384xf32>
    %97 = vector.extract_strided_slice %94 {offsets = [0, 0], sizes = [8, 256], strides = [1, 1]} : vector<8x384xf32> to vector<8x256xf32>
    %98 = vector.extract_strided_slice %96 {offsets = [0, 0], sizes = [8, 256], strides = [1, 1]} : vector<8x384xf32> to vector<8x256xf32>
    %99 = arith.addf %97, %98 : vector<8x256xf32>
    %100 = arith.negf %99 : vector<8x256xf32>
    %101 = math.exp %100 : vector<8x256xf32>
    %cst_20 = arith.constant 1.000000e+00 : f32
    %102 = vector.broadcast %cst_20 : f32 to vector<8x256xf32>
    %103 = arith.addf %102, %101 : vector<8x256xf32>
    %104 = arith.divf %102, %103 : vector<8x256xf32>
    %105 = vector.extract_strided_slice %104 {offsets = [0, 0], sizes = [8, 128], strides = [1, 1]} : vector<8x256xf32> to vector<8x128xf32>
    %106 = vector.extract_strided_slice %104 {offsets = [0, 128], sizes = [8, 128], strides = [1, 1]} : vector<8x256xf32> to vector<8x128xf32>
    %107 = vector.extract_strided_slice %94 {offsets = [0, 256], sizes = [8, 128], strides = [1, 1]} : vector<8x384xf32> to vector<8x128xf32>
    %108 = vector.extract_strided_slice %96 {offsets = [0, 256], sizes = [8, 128], strides = [1, 1]} : vector<8x384xf32> to vector<8x128xf32>
    %109 = arith.addf %108, %16 : vector<8x128xf32>
    %110 = arith.mulf %105, %109 : vector<8x128xf32>
    %111 = arith.addf %107, %110 : vector<8x128xf32>
    %112 = math.tanh %111 : vector<8x128xf32>
    %cst_21 = arith.constant 1.000000e+00 : f32
    %113 = vector.broadcast %cst_21 : f32 to vector<8x128xf32>
    %114 = arith.subf %113, %106 : vector<8x128xf32>
    %115 = arith.mulf %114, %112 : vector<8x128xf32>
    %116 = arith.mulf %106, %92 : vector<8x128xf32>
    %117 = arith.addf %115, %116 : vector<8x128xf32>
    %118 = vector.extract_strided_slice %14 {offsets = [0, 4, 0], sizes = [8, 1, 384], strides = [1, 1, 1]} : vector<8x8x384xf32> to vector<8x1x384xf32>
    %119 = vector.shape_cast %118 : vector<8x1x384xf32> to vector<8x384xf32>
    %120 = arith.truncf %117 : vector<8x128xf32> to vector<8x128xbf16>
    %cst_22 = arith.constant dense<0.000000e+00> : vector<8x384xf32>
    %121 = tpu.matmul %120, %1, %cst_22 {dimension_numbers = #tpu.dot_dimension_numbers<[1], [0], [0], [1], [0, 0, 1, 1], [], []>} : vector<8x128xbf16>, vector<128x384xbf16>, vector<8x384xf32> -> vector<8x384xf32>
    %122 = vector.extract_strided_slice %119 {offsets = [0, 0], sizes = [8, 256], strides = [1, 1]} : vector<8x384xf32> to vector<8x256xf32>
    %123 = vector.extract_strided_slice %121 {offsets = [0, 0], sizes = [8, 256], strides = [1, 1]} : vector<8x384xf32> to vector<8x256xf32>
    %124 = arith.addf %122, %123 : vector<8x256xf32>
    %125 = arith.negf %124 : vector<8x256xf32>
    %126 = math.exp %125 : vector<8x256xf32>
    %cst_23 = arith.constant 1.000000e+00 : f32
    %127 = vector.broadcast %cst_23 : f32 to vector<8x256xf32>
    %128 = arith.addf %127, %126 : vector<8x256xf32>
    %129 = arith.divf %127, %128 : vector<8x256xf32>
    %130 = vector.extract_strided_slice %129 {offsets = [0, 0], sizes = [8, 128], strides = [1, 1]} : vector<8x256xf32> to vector<8x128xf32>
    %131 = vector.extract_strided_slice %129 {offsets = [0, 128], sizes = [8, 128], strides = [1, 1]} : vector<8x256xf32> to vector<8x128xf32>
    %132 = vector.extract_strided_slice %119 {offsets = [0, 256], sizes = [8, 128], strides = [1, 1]} : vector<8x384xf32> to vector<8x128xf32>
    %133 = vector.extract_strided_slice %121 {offsets = [0, 256], sizes = [8, 128], strides = [1, 1]} : vector<8x384xf32> to vector<8x128xf32>
    %134 = arith.addf %133, %16 : vector<8x128xf32>
    %135 = arith.mulf %130, %134 : vector<8x128xf32>
    %136 = arith.addf %132, %135 : vector<8x128xf32>
    %137 = math.tanh %136 : vector<8x128xf32>
    %cst_24 = arith.constant 1.000000e+00 : f32
    %138 = vector.broadcast %cst_24 : f32 to vector<8x128xf32>
    %139 = arith.subf %138, %131 : vector<8x128xf32>
    %140 = arith.mulf %139, %137 : vector<8x128xf32>
    %141 = arith.mulf %131, %117 : vector<8x128xf32>
    %142 = arith.addf %140, %141 : vector<8x128xf32>
    %143 = vector.extract_strided_slice %14 {offsets = [0, 5, 0], sizes = [8, 1, 384], strides = [1, 1, 1]} : vector<8x8x384xf32> to vector<8x1x384xf32>
    %144 = vector.shape_cast %143 : vector<8x1x384xf32> to vector<8x384xf32>
    %145 = arith.truncf %142 : vector<8x128xf32> to vector<8x128xbf16>
    %cst_25 = arith.constant dense<0.000000e+00> : vector<8x384xf32>
    %146 = tpu.matmul %145, %1, %cst_25 {dimension_numbers = #tpu.dot_dimension_numbers<[1], [0], [0], [1], [0, 0, 1, 1], [], []>} : vector<8x128xbf16>, vector<128x384xbf16>, vector<8x384xf32> -> vector<8x384xf32>
    %147 = vector.extract_strided_slice %144 {offsets = [0, 0], sizes = [8, 256], strides = [1, 1]} : vector<8x384xf32> to vector<8x256xf32>
    %148 = vector.extract_strided_slice %146 {offsets = [0, 0], sizes = [8, 256], strides = [1, 1]} : vector<8x384xf32> to vector<8x256xf32>
    %149 = arith.addf %147, %148 : vector<8x256xf32>
    %150 = arith.negf %149 : vector<8x256xf32>
    %151 = math.exp %150 : vector<8x256xf32>
    %cst_26 = arith.constant 1.000000e+00 : f32
    %152 = vector.broadcast %cst_26 : f32 to vector<8x256xf32>
    %153 = arith.addf %152, %151 : vector<8x256xf32>
    %154 = arith.divf %152, %153 : vector<8x256xf32>
    %155 = vector.extract_strided_slice %154 {offsets = [0, 0], sizes = [8, 128], strides = [1, 1]} : vector<8x256xf32> to vector<8x128xf32>
    %156 = vector.extract_strided_slice %154 {offsets = [0, 128], sizes = [8, 128], strides = [1, 1]} : vector<8x256xf32> to vector<8x128xf32>
    %157 = vector.extract_strided_slice %144 {offsets = [0, 256], sizes = [8, 128], strides = [1, 1]} : vector<8x384xf32> to vector<8x128xf32>
    %158 = vector.extract_strided_slice %146 {offsets = [0, 256], sizes = [8, 128], strides = [1, 1]} : vector<8x384xf32> to vector<8x128xf32>
    %159 = arith.addf %158, %16 : vector<8x128xf32>
    %160 = arith.mulf %155, %159 : vector<8x128xf32>
    %161 = arith.addf %157, %160 : vector<8x128xf32>
    %162 = math.tanh %161 : vector<8x128xf32>
    %cst_27 = arith.constant 1.000000e+00 : f32
    %163 = vector.broadcast %cst_27 : f32 to vector<8x128xf32>
    %164 = arith.subf %163, %156 : vector<8x128xf32>
    %165 = arith.mulf %164, %162 : vector<8x128xf32>
    %166 = arith.mulf %156, %142 : vector<8x128xf32>
    %167 = arith.addf %165, %166 : vector<8x128xf32>
    %168 = vector.extract_strided_slice %14 {offsets = [0, 6, 0], sizes = [8, 1, 384], strides = [1, 1, 1]} : vector<8x8x384xf32> to vector<8x1x384xf32>
    %169 = vector.shape_cast %168 : vector<8x1x384xf32> to vector<8x384xf32>
    %170 = arith.truncf %167 : vector<8x128xf32> to vector<8x128xbf16>
    %cst_28 = arith.constant dense<0.000000e+00> : vector<8x384xf32>
    %171 = tpu.matmul %170, %1, %cst_28 {dimension_numbers = #tpu.dot_dimension_numbers<[1], [0], [0], [1], [0, 0, 1, 1], [], []>} : vector<8x128xbf16>, vector<128x384xbf16>, vector<8x384xf32> -> vector<8x384xf32>
    %172 = vector.extract_strided_slice %169 {offsets = [0, 0], sizes = [8, 256], strides = [1, 1]} : vector<8x384xf32> to vector<8x256xf32>
    %173 = vector.extract_strided_slice %171 {offsets = [0, 0], sizes = [8, 256], strides = [1, 1]} : vector<8x384xf32> to vector<8x256xf32>
    %174 = arith.addf %172, %173 : vector<8x256xf32>
    %175 = arith.negf %174 : vector<8x256xf32>
    %176 = math.exp %175 : vector<8x256xf32>
    %cst_29 = arith.constant 1.000000e+00 : f32
    %177 = vector.broadcast %cst_29 : f32 to vector<8x256xf32>
    %178 = arith.addf %177, %176 : vector<8x256xf32>
    %179 = arith.divf %177, %178 : vector<8x256xf32>
    %180 = vector.extract_strided_slice %179 {offsets = [0, 0], sizes = [8, 128], strides = [1, 1]} : vector<8x256xf32> to vector<8x128xf32>
    %181 = vector.extract_strided_slice %179 {offsets = [0, 128], sizes = [8, 128], strides = [1, 1]} : vector<8x256xf32> to vector<8x128xf32>
    %182 = vector.extract_strided_slice %169 {offsets = [0, 256], sizes = [8, 128], strides = [1, 1]} : vector<8x384xf32> to vector<8x128xf32>
    %183 = vector.extract_strided_slice %171 {offsets = [0, 256], sizes = [8, 128], strides = [1, 1]} : vector<8x384xf32> to vector<8x128xf32>
    %184 = arith.addf %183, %16 : vector<8x128xf32>
    %185 = arith.mulf %180, %184 : vector<8x128xf32>
    %186 = arith.addf %182, %185 : vector<8x128xf32>
    %187 = math.tanh %186 : vector<8x128xf32>
    %cst_30 = arith.constant 1.000000e+00 : f32
    %188 = vector.broadcast %cst_30 : f32 to vector<8x128xf32>
    %189 = arith.subf %188, %181 : vector<8x128xf32>
    %190 = arith.mulf %189, %187 : vector<8x128xf32>
    %191 = arith.mulf %181, %167 : vector<8x128xf32>
    %192 = arith.addf %190, %191 : vector<8x128xf32>
    %193 = vector.extract_strided_slice %14 {offsets = [0, 7, 0], sizes = [8, 1, 384], strides = [1, 1, 1]} : vector<8x8x384xf32> to vector<8x1x384xf32>
    %194 = vector.shape_cast %193 : vector<8x1x384xf32> to vector<8x384xf32>
    %195 = arith.truncf %192 : vector<8x128xf32> to vector<8x128xbf16>
    %cst_31 = arith.constant dense<0.000000e+00> : vector<8x384xf32>
    %196 = tpu.matmul %195, %1, %cst_31 {dimension_numbers = #tpu.dot_dimension_numbers<[1], [0], [0], [1], [0, 0, 1, 1], [], []>} : vector<8x128xbf16>, vector<128x384xbf16>, vector<8x384xf32> -> vector<8x384xf32>
    %197 = vector.extract_strided_slice %194 {offsets = [0, 0], sizes = [8, 256], strides = [1, 1]} : vector<8x384xf32> to vector<8x256xf32>
    %198 = vector.extract_strided_slice %196 {offsets = [0, 0], sizes = [8, 256], strides = [1, 1]} : vector<8x384xf32> to vector<8x256xf32>
    %199 = arith.addf %197, %198 : vector<8x256xf32>
    %200 = arith.negf %199 : vector<8x256xf32>
    %201 = math.exp %200 : vector<8x256xf32>
    %cst_32 = arith.constant 1.000000e+00 : f32
    %202 = vector.broadcast %cst_32 : f32 to vector<8x256xf32>
    %203 = arith.addf %202, %201 : vector<8x256xf32>
    %204 = arith.divf %202, %203 : vector<8x256xf32>
    %205 = vector.extract_strided_slice %204 {offsets = [0, 0], sizes = [8, 128], strides = [1, 1]} : vector<8x256xf32> to vector<8x128xf32>
    %206 = vector.extract_strided_slice %204 {offsets = [0, 128], sizes = [8, 128], strides = [1, 1]} : vector<8x256xf32> to vector<8x128xf32>
    %207 = vector.extract_strided_slice %194 {offsets = [0, 256], sizes = [8, 128], strides = [1, 1]} : vector<8x384xf32> to vector<8x128xf32>
    %208 = vector.extract_strided_slice %196 {offsets = [0, 256], sizes = [8, 128], strides = [1, 1]} : vector<8x384xf32> to vector<8x128xf32>
    %209 = arith.addf %208, %16 : vector<8x128xf32>
    %210 = arith.mulf %205, %209 : vector<8x128xf32>
    %211 = arith.addf %207, %210 : vector<8x128xf32>
    %212 = math.tanh %211 : vector<8x128xf32>
    %cst_33 = arith.constant 1.000000e+00 : f32
    %213 = vector.broadcast %cst_33 : f32 to vector<8x128xf32>
    %214 = arith.subf %213, %206 : vector<8x128xf32>
    %215 = arith.mulf %214, %212 : vector<8x128xf32>
    %216 = arith.mulf %206, %192 : vector<8x128xf32>
    %217 = arith.addf %215, %216 : vector<8x128xf32>
    %218 = arith.truncf %217 : vector<8x128xf32> to vector<8x128xbf16>
    %cst_34 = arith.constant dense<0.000000e+00> : vector<8x384xf32>
    %219 = tpu.matmul %218, %2, %cst_34 {dimension_numbers = #tpu.dot_dimension_numbers<[1], [0], [0], [1], [0, 0, 1, 1], [], []>} : vector<8x128xbf16>, vector<128x384xbf16>, vector<8x384xf32> -> vector<8x384xf32>
    %220 = vector.broadcast %7 : vector<1x384xf32> to vector<8x384xf32>
    %221 = arith.addf %219, %220 : vector<8x384xf32>
    %cst_35 = arith.constant 0.000000e+00 : f32
    %222 = vector.broadcast %cst_35 : f32 to vector<8x384xf32>
    %223 = arith.maximumf %221, %222 : vector<8x384xf32>
    %224 = arith.truncf %223 : vector<8x384xf32> to vector<8x384xbf16>
    %cst_36 = arith.constant dense<0.000000e+00> : vector<1x8xf32>
    %225 = tpu.matmul %3, %224, %cst_36 {dimension_numbers = #tpu.dot_dimension_numbers<[1], [1], [0], [0], [0, 0, 1, 0], [], []>} : vector<1x384xbf16>, vector<8x384xbf16>, vector<1x8xf32> -> vector<1x8xf32>
    %226 = vector.broadcast %8 : vector<1x1xf32> to vector<1x8xf32>
    %227 = arith.addf %225, %226 : vector<1x8xf32>
    %c0_37 = arith.constant 0 : index
    %c0_38 = arith.constant 0 : index
    %228 = vector.load %arg4[%c0_37, %c0_38] : memref<1x8xf32, #tpu.memory_space<vmem>>, vector<1x8xf32>
    tpu.vector_store %arg4[%c0_37, %c0_38], %227 {strides = array<i32>} : memref<1x8xf32, #tpu.memory_space<vmem>>, vector<1x8xf32>,
    return
  }
  func.func @transform_0(%arg0: i32) -> (i32, i32, i32) {
    %c0_i32 = arith.constant 0 : i32
    %c0_i32_0 = arith.constant 0 : i32
    %c0_i32_1 = arith.constant 0 : i32
    return %arg0, %c0_i32, %c0_i32_0 : i32, i32, i32
  }
  func.func @transform_1(%arg0: i32) -> (i32, i32) {
    %c0_i32 = arith.constant 0 : i32
    %c0_i32_0 = arith.constant 0 : i32
    %c0_i32_1 = arith.constant 0 : i32
    return %c0_i32, %c0_i32_0 : i32, i32
  }
  func.func @transform_2(%arg0: i32) -> (i32, i32) {
    %c0_i32 = arith.constant 0 : i32
    %c0_i32_0 = arith.constant 0 : i32
    %c0_i32_1 = arith.constant 0 : i32
    return %c0_i32, %c0_i32_0 : i32, i32
  }
  func.func @transform_3(%arg0: i32) -> (i32, i32) {
    %c0_i32 = arith.constant 0 : i32
    %c0_i32_0 = arith.constant 0 : i32
    return %arg0, %c0_i32 : i32, i32
  }
}

</mosaic_0001>

<bundles_post_ra>
// kernel: value_network_forward.1
= control target key start
LH: loop header
LB: loop body
LE: loop exit
PB: predicated region body
PF: predicated region fallthrough
CT: control target
= control target key end

     0   :  { %v6572_v2 = vmov 0   ;;  %vm165_vm0 = vcmask 261120   ;;  %v6574_v20 = vmov 0.0   ;;  %vm4974_vm1 = vmmov 0   ;;  %s6568_s0 = inlined_call_operand.vmem [shape: bf16[8,8,32], index: 0, kind: input, shape index: {}]   ;;  %s6569_s1 = inlined_call_operand.vmem [shape: bf16[296,384], index: 1, kind: input, shape index: {}]   ;;  %s6570_s2 = inlined_call_operand.vmem [shape: f32[8,384], index: 2, kind: input, shape index: {}]   ;;  %s6571_s3 = inlined_call_operand.hbm [shape: f32[1,8], index: 3, kind: output, shape index: {}]  }
   0x1   :  { %v4156_v0 = vld [vmem:[%s6569_s1 + $0x1c] ss:$12 sps:$4 sm:$0xff]   ;;  %v4158_v1 = vld [vmem:[%s6569_s1 + $0x18] ss:$12 sps:$4 sm:$0xff]   ;;  %210 = vmatprep.mubr.bf16.mxu0 %v6572_v2  ;;  %4155 = vset.pattern.permute.xlu0 %v6572_v2  ;;  %v4161_v4 = vld [vmem:[%s6569_s1] ss:$12 sps:$4 sm:$0xff]  }
   0x2   :  { %190 = vmatprep.subr.bf16.mxu0 %v4156_v0  ;;  %v4159_v3 = vld [vmem:[%s6569_s1 + $0x4] ss:$12 sps:$4 sm:$0xff]   ;;  %v5016_v6 = vld [vmem:[%s6569_s1 + $0xdc] ss:$12 sps:$4 sm:$0xff]   ;;  %v5035_v9 = vld [vmem:[%s6569_s1 + $0xc0] ss:$12 sps:$4 sm:$0xff]  }
   0x3   :  { %191 = vmatpush1.bf16.msra.mxu0 %v4158_v1  ;;  %v4162_v5 = vld [vmem:[%s6568_s0] sm:$0xff]   ;;  %v5042_v10 = vld [vmem:[%s6569_s1 + $0xac] ss:$12 sps:$4 sm:$0xff]   ;;  %v5053_v13 = vld [vmem:[%s6569_s1 + $0xa8] ss:$12 sps:$4 sm:$0xff]  }
   0x4   :  { %192 = vmatprep.subr.bf16.mxu0 %v4159_v3  ;;  %3957 = vmatprep.mubr.msk.bf16.mxu1 %vm165_vm0, %v4162_v5  ;;  %v5022_v7 = vld [vmem:[%s6569_s1 + $0xd8] ss:$12 sps:$4 sm:$0xff]   ;;  %v4180_v11 = vld [vmem:[%s6569_s1 + $0x20] ss:$12 sps:$4 sm:$0xff]   ;;  %v4184_v14 = vld [vmem:[%s6569_s1 + $0x8] ss:$12 sps:$4 sm:$0xff]  }
   0x5   :  { %v5028_v8 = vld [vmem:[%s6569_s1 + $0xc4] ss:$12 sps:$4 sm:$0xff]   ;;  %v4169_v12 = vld [vmem:[%s6568_s0 + $0x8] sm:$0xff]   ;;  %3953 = vmatprep.subr.bf16.mxu1 %v4180_v11  ;;  %v5063_v15 = vld [vmem:[%s6569_s1 + $0x94] ss:$12 sps:$4 sm:$0xff]  }
   0x6   :  { %3954 = vmatpush3.bf16.msra.mxu1 %v4180_v11  ;;  %v5069_v16 = vld [vmem:[%s6569_s1 + $0x90] ss:$12 sps:$4 sm:$0xff]   ;;  %v5082_v18 = vld [vmem:[%s6569_s1 + $0xe0] ss:$12 sps:$4 sm:$0xff]   ;;  %v5091_v21 = vld [vmem:[%s6569_s1 + $0x78] ss:$12 sps:$4 sm:$0xff]  }
   0x7   :  { %193 = vmatpush1.bf16.msra.mxu0 %v4161_v4  ;;  %3955 = vmatprep.subr.bf16.mxu1 %v4184_v14  ;;  %v5076_v17 = vld [vmem:[%s6569_s1 + $0x7c] ss:$12 sps:$4 sm:$0xff]   ;;  %v4176_v19 = vld [vmem:[%s6568_s0 + $0x10] sm:$0xff]   ;;  %v5110_v24 = vld [vmem:[%s6569_s1 + $0x60] ss:$12 sps:$4 sm:$0xff]  }
   0x8   :  { %448 = vmatprep.subr.bf16.mxu0 %v5016_v6  ;;  %v5097_v22 = vld [vmem:[%s6569_s1 + $0x64] ss:$12 sps:$4 sm:$0xff]   ;;  %v5105_v23 = vld [vmem:[%s6569_s1 + $0xc8] ss:$12 sps:$4 sm:$0xff]   ;;  %v5118_v25 = vld [vmem:[%s6569_s1 + $0x4c] ss:$12 sps:$4 sm:$0xff]  }
   0x9   :  { %6648 = vst [vmem:[#allocation5_spill] sm:$0xff] %v5118_v25  ;;  %v4185_v26 = vld [vmem:[%s6568_s0 + $0x18] sm:$0xff]   ;;  %v5133_v28 = vld [vmem:[%s6570_s2] sm:$0xff]  ;;  %v5140_v29 = vld [vmem:[%s6569_s1 + $0x48] ss:$12 sps:$4 sm:$0xff]  }
   0xa   :  { %3677 = vmatmul.mubr.msk.bf16.vlgmr.msra.gmra.mxu0 %vm165_vm0, %v4162_v5  ;;  %3956 = vmatpush3.bf16.msra.mxu1 %v4184_v14  ;;  %v5128_v27 = vld [vmem:[%s6569_s1 + $0xb0] ss:$12 sps:$4 sm:$0xff]   ;;  %6649 = vst [vmem:[#allocation6_spill] sm:$0xff] %v5140_v29  ;;  %v5147_v30 = vld [vmem:[%s6569_s1 + $0x34] ss:$12 sps:$4 sm:$0xff]  }
   0xb   :  { %449 = vmatpush1.bf16.msra.mxu0 %v5022_v7  ;;  %220 = vmatprep.mubr.bf16.mxu0 %v6572_v2  ;;  %6650 = vst [vmem:[#allocation7_spill] sm:$0xff] %v5147_v30  ;;  %v5152_v31 = vld [vmem:[%s6569_s1 + $0x98] ss:$12 sps:$4 sm:$0xff]   ;;  %v5161_v32 = vld [vmem:[%s6569_s1 + $0x30] ss:$12 sps:$4 sm:$0xff]  }
   0xc   :  { %450 = vmatprep.subr.bf16.mxu0 %v5028_v8  ;;  %3965 = vmatprep.subr.bf16.mxu1 %v6574_v20  ;;  %6651 = vst [vmem:[#allocation8_spill] sm:$0xff] %v5161_v32  ;;  %v5170_v33 = vld [vmem:[%s6569_s1 + $0x80] ss:$12 sps:$4 sm:$0xff]  }
   0xd   :  { %3958 = vmatmul.mubr.msk.bf16.vlgmr.msra.gmra.mxu1 %vm165_vm0, %v4169_v12  ;;  %3556 = vperm.xlu0 %4155, %v5133_v28  }
   0xe   :  { %3966 = vmatpush3.bf16.msra.mxu1 %v5082_v18  ;;  %3961 = vmatprep.mubr.msk.bf16.mxu1 %vm165_vm0, %v4176_v19 }
   0xf   :  { %451 = vmatpush1.bf16.msra.mxu0 %v5035_v9  ;;  %3967 = vmatprep.subr.bf16.mxu1 %v6574_v20 }
  0x10   :  { %452 = vmatprep.subr.bf16.mxu0 %v5042_v10 }
  0x12   :  { %3678 = vmatmul.mubr.msk.bf16.gmra.mxu0 %vm165_vm0, %v4169_v12  ;;  %3968 = vmatpush3.bf16.msra.mxu1 %v5105_v23 }
  0x13   :  { %453 = vmatpush1.bf16.msra.mxu0 %v5053_v13  ;;  %230 = vmatprep.mubr.bf16.mxu0 %v6572_v2 }
  0x14   :  { %454 = vmatprep.subr.bf16.mxu0 %v5063_v15  ;;  %3969 = vmatprep.subr.bf16.mxu1 %v6574_v20 }
  0x15   :  { %3962 = vmatmul.mubr.msk.bf16.gmra.mxu1 %vm165_vm0, %v4185_v26 }
  0x16   :  { %3970 = vmatpush3.bf16.msra.mxu1 %v5128_v27  ;;  %3981 = vmatprep.mubr.msk.bf16.mxu1 %vm4974_vm1, %v6574_v20 }
  0x17   :  { %455 = vmatpush1.bf16.msra.mxu0 %v5069_v16  ;;  %3971 = vmatprep.subr.bf16.mxu1 %v6574_v20 }
  0x18   :  { %456 = vmatprep.subr.bf16.mxu0 %v5076_v17 }
  0x1a   :  { %3679 = vmatmul.mubr.msk.bf16.gmra.mxu0 %vm165_vm0, %v4176_v19  ;;  %3972 = vmatpush3.bf16.msra.mxu1 %v5152_v31 }
  0x1b   :  { %457 = vmatpush1.bf16.msra.mxu0 %v5091_v21  ;;  %240 = vmatprep.mubr.bf16.mxu0 %v6572_v2 }
  0x1c   :  { %458 = vmatprep.subr.bf16.mxu0 %v5097_v22  ;;  %3973 = vmatprep.subr.bf16.mxu1 %v6574_v20 }
  0x1f   :  { %459 = vmatpush1.bf16.msra.mxu0 %v5110_v24 }
  0x20   :  { %460 = vmatprep.subr.bf16.mxu0 %v5118_v25 }
  0x22   :  { %3680 = vmatmul.mubr.msk.bf16.gmra.mxu0 %vm165_vm0, %v4185_v26 }
  0x23   :  { %461 = vmatpush1.bf16.msra.mxu0 %v5140_v29  ;;  %480 = vmatprep.mubr.bf16.mxu0 %v6572_v2 }
  0x24   :  { %462 = vmatprep.subr.bf16.mxu0 %v5147_v30 }
  0x25   :  { %8 = vsyncpa [#allocation3], 0  ;;  %3974 = vmatpush3.bf16.msra.mxu1 %v5170_v33  ;;  %v5182_v34 = vld [vmem:[%s6569_s1 + $0x68] ss:$12 sps:$4 sm:$0xff]   ;;  %v5193_v35 = vld [vmem:[%s6569_s1 + $0x50] ss:$12 sps:$4 sm:$0xff]   ;;  %v101_v44 = vlaneseq }
  0x26   :  { %3975 = vmatprep.subr.bf16.mxu1 %v6574_v20  ;;  %6652 = vst [vmem:[#allocation9_spill] sm:$0xff] %v5193_v35  ;;  %v5202_v36 = vld [vmem:[%s6569_s1 + $0x38] ss:$12 sps:$4 sm:$0xff]   ;;  %v91_v53 = vld [vmem:[%s6570_s2 + $0x8] sm:$0xff]  ;;  %vm771_vm2 = vcmask 1041409   ;;  %vm774_vm3 = vcmask 1042434  }
  0x27   :  { %463 = vmatpush1.bf16.msra.mxu0 %v5161_v32  ;;  %6653 = vst [vmem:[#allocation10_spill] sm:$0xff] %v5202_v36  ;;  %v5241_v48 = vshrl.u32 %v101_v44, 7  ;;  %vm777_vm4 = vcmask 1043459   ;;  %vm780_vm5 = vcmask 1044484   ;;  %vm783_vm6 = vcmask 1045509   ;;  %s4975_s9 = smov [#allocation2]  }
  0x28   :  { %793 = vmatprep.subr.bf16.mxu0 %v5016_v6  ;;  %vm786_vm7 = vcmask 1046534   ;;  %vm789_vm8 = vcmask 1047559   ;;  %s3659_s10 = sshll.u32 %s4975_s9, 4  ;;  %vm3651_vm9 = vcmask 57344   ;;  %s3660_s10 = int_to_ptr.vmem [resolvable:$true] %s3659_s10 }
  0x29   :  { %3976 = vmatpush3.bf16.msra.mxu1 %v5182_v34  ;;  %6654 = vst [vmem:[#allocation11_spill] sm:$0xff] %v5241_v48  ;;  %v5246_v52 = vsub.s32 0, %v5241_v48  ;;  %s4954_s11 = scalar_lea.vmem %s3660_s10, 32  ;;  %p4955_p1 = scmp.lt.s32.totalorder %s3660_s10, %s3660_s10 }
  0x2a   :  { %481 = vmatmul.mubr.bf16.vlgmr.msra.gmra.mxu0 %v6572_v2  ;;  %3977 = vmatprep.subr.bf16.mxu1 %v6574_v20 }
  0x2b   :  { %794 = vmatpush1.bf16.msra.mxu0 %v5022_v7  ;;  %825 = vmatprep.mubr.bf16.mxu0 %v6572_v2  ;;  %v104_v57 = vrot.slane %v5133_v28, %v5246_v52  ;;  %v5256_v58 = vrot.slane %v91_v53, %v5246_v52 }
  0x2c   :  { %795 = vmatprep.subr.bf16.mxu0 %v5028_v8 }
  0x2d   :  { %3978 = vmatpush3.bf16.msra.mxu1 %v5193_v35 }
  0x2e   :  { %3979 = vmatprep.subr.bf16.mxu1 %v6574_v20 }
  0x2f   :  { %796 = vmatpush1.bf16.msra.mxu0 %v5035_v9 }
  0x30   :  { %797 = vmatprep.subr.bf16.mxu0 %v5042_v10 }
  0x31   :  { %3980 = vmatpush3.bf16.msra.mxu1 %v5202_v36 }
  0x32   :  { %3985 = vmatprep.subr.bf16.mxu1 %v6574_v20 }
  0x33   :  { %798 = vmatpush1.bf16.msra.mxu0 %v5053_v13 }
  0x34   :  { %799 = vmatprep.subr.bf16.mxu0 %v5063_v15  ;;  %3982 = vmatmul.mubr.bf16.vlgmr.msra.gmra.mxu1 %v6572_v2 }
  0x35   :  { %3986 = vmatpush3.bf16.msra.mxu1 %v5082_v18  ;;  %4001 = vmatprep.mubr.msk.bf16.mxu1 %vm4974_vm1, %v6574_v20 }
  0x36   :  { %3987 = vmatprep.subr.bf16.mxu1 %v6574_v20 }
  0x37   :  { %800 = vmatpush1.bf16.msra.mxu0 %v5069_v16 }
  0x38   :  { %801 = vmatprep.subr.bf16.mxu0 %v5076_v17 }
  0x39   :  { %3988 = vmatpush3.bf16.msra.mxu1 %v5105_v23 }
  0x3a   :  { %3989 = vmatprep.subr.bf16.mxu1 %v6574_v20 }
  0x3b   :  { %802 = vmatpush1.bf16.msra.mxu0 %v5091_v21 }
  0x3c   :  { %803 = vmatprep.subr.bf16.mxu0 %v5097_v22 }
  0x3d   :  { %3990 = vmatpush3.bf16.msra.mxu1 %v5128_v27 }
  0x3e   :  { %3991 = vmatprep.subr.bf16.mxu1 %v6574_v20 }
  0x3f   :  { %804 = vmatpush1.bf16.msra.mxu0 %v5110_v24 }
  0x40   :  { %805 = vmatprep.subr.bf16.mxu0 %v5118_v25 }
  0x41   :  { %3992 = vmatpush3.bf16.msra.mxu1 %v5152_v31 }
  0x42   :  { %3993 = vmatprep.subr.bf16.mxu1 %v6574_v20 }
  0x43   :  { %806 = vmatpush1.bf16.msra.mxu0 %v5140_v29 }
  0x44   :  { %807 = vmatprep.subr.bf16.mxu0 %v5147_v30 }
  0x45   :  { %3994 = vmatpush3.bf16.msra.mxu1 %v5170_v33 }
  0x46   :  { %3995 = vmatprep.subr.bf16.mxu1 %v6574_v20 }
  0x47   :  { %808 = vmatpush1.bf16.msra.mxu0 %v5161_v32 }
  0x48   :  { %1155 = vmatprep.subr.bf16.mxu0 %v5016_v6 }
  0x49   :  { %3996 = vmatpush3.bf16.msra.mxu1 %v5182_v34 }
  0x4a   :  { %3997 = vmatprep.subr.bf16.mxu1 %v6574_v20 }
  0x4d   :  { %3998 = vmatpush3.bf16.msra.mxu1 %v5193_v35 }
  0x4e   :  { %3999 = vmatprep.subr.bf16.mxu1 %v6574_v20 }
  0x51   :  { %4000 = vmatpush3.bf16.msra.mxu1 %v5202_v36 }
  0x52   :  { %4005 = vmatprep.subr.bf16.mxu1 %v6574_v20 }
  0xca   :  { %v212_v37 = vpop.f32.mrf.mxu0 }
  0xcb   :  { %v5260_v62 = vadd.f32 %v212_v37, %v104_v57 }
  0xcc   :  { %v214_v38 = vpop.f32.mrf.mxu0 }
  0xcd   :  { %v5239_v46 = vpop.f32.mrf.mxu1  ;;  %6655 = vst [vmem:[#allocation12_spill] sm:$0xff] %v5260_v62  ;;  %v5263_v63 = vadd.f32 %v214_v38, %v5256_v58 }
  0xce   :  { %v216_v39 = vpop.f32.mrf.mxu0 }
  0xcf   :  { %v5243_v50 = vpop.f32.mrf.mxu1  ;;  %6656 = vst [vmem:[#allocation13_spill] sm:$0xff] %v5263_v63  ;;  %v5265_v0 = vadd.f32 %v216_v39, %v104_v57 }
  0xd0   :  { %v218_v40 = vpop.f32.mrf.mxu0 }
  0xd1   :  { %v5251_v55 = vpop.f32.mrf.mxu1  ;;  %v5270_v3 = vadd.f32 %v218_v40, %v5256_v58 }
  0xd2   :  { %v222_v41 = vpop.f32.mrf.mxu0 }
  0xd3   :  { %v5258_v60 = vpop.f32.mrf.mxu1  ;;  %v5272_v4 = vadd.f32 %v222_v41, %v104_v57 }
  0xd4   :  { %v224_v42 = vpop.f32.mrf.mxu0 }
  0xd5   :  { %v5267_v1 = vpop.f32.mrf.mxu1  ;;  %6657 = vst [vmem:[#allocation14_spill] sm:$0xff] %v5272_v4  ;;  %v5275_v5 = vadd.f32 %v224_v42, %v5256_v58 }
  0xd6   :  { %v226_v43 = vpop.f32.mrf.mxu0 }
  0xd7   :  { %v5277_v6 = vadd.f32 %v226_v43, %v104_v57 }
  0xd8   :  { %v228_v45 = vpop.f32.mrf.mxu0 }
  0xd9   :  { %6658 = vst [vmem:[#allocation15_spill] sm:$0xff] %v5277_v6  ;;  %v5280_v12 = vadd.f32 %v228_v45, %v5256_v58 }
  0xda   :  { %v232_v47 = vpop.f32.mrf.mxu0 }
  0xdb   :  { %v5282_v14 = vadd.f32 %v232_v47, %v104_v57  ;;  %v5299_v47 = vpop.f32.mrf.mxu1 }
  0xdc   :  { %v234_v49 = vpop.f32.mrf.mxu0 }
  0xdd   :  { %6659 = vst [vmem:[#allocation16_spill] sm:$0xff] %v5282_v14  ;;  %v5285_v19 = vadd.f32 %v234_v49, %v5256_v58 }
  0xde   :  { %v236_v51 = vpop.f32.mrf.mxu0 }
  0xdf   :  { %v5287_v26 = vadd.f32 %v236_v51, %v104_v57 }
  0xe0   :  { %v238_v54 = vpop.f32.mrf.mxu0 }
  0xe1   :  { %6660 = vst [vmem:[#allocation17_spill] sm:$0xff] %v5287_v26  ;;  %v5290_v37 = vadd.f32 %v238_v54, %v5256_v58 }
  0xe2   :  { %v242_v56 = vpop.f32.mrf.mxu0 }
  0xe3   :  { %v5292_v38 = vadd.f32 %v242_v56, %v104_v57 }
  0xe4   :  { %v244_v59 = vpop.f32.mrf.mxu0 }
  0xe5   :  { %v5295_v39 = vadd.f32 %v244_v59, %v5256_v58 }
  0xe6   :  { %v246_v61 = vpop.f32.mrf.mxu0 }
  0xe7   :  { %v5297_v40 = vadd.f32 %v246_v61, %v104_v57 }
  0xe8   :  { %v248_v11 = vpop.f32.mrf.mxu0 }
  0xea   :  { %v482_v41 = vpop.f32.mrf.mxu0 }
  0xeb   :  { %v531_v42 = vrot.slane %v482_v41, 1  ;;  %v533_v43 = vrot.slane %v482_v41, 2  ;;  %v535_v44 = vrot.slane %v482_v41, 3  ;;  %v537_v45 = vrot.slane %v482_v41, 4 }
  0xec   :  { %v539_v49 = vrot.slane %v482_v41, 5  ;;  %v541_v51 = vrot.slane %v482_v41, 6  ;;  %v543_v53 = vrot.slane %v482_v41, 7  ;;  %v561_v54 = vadd.f32 %v482_v41, %v5260_v62  ;;  %v484_v2 = vpop.f32.mrf.mxu0 }
  0xed   :  { %v563_v56 = vadd.f32 %v531_v42, %v5265_v0  ;;  %v565_v59 = vadd.f32 %v533_v43, %v5272_v4  ;;  %v567_v57 = vadd.f32 %v535_v44, %v5277_v6  ;;  %v569_v61 = vadd.f32 %v537_v45, %v5282_v14  ;;  %v5310_v42 = vpop.f32.mrf.mxu1 }
  0xee   :  { %v571_v20 = vadd.f32 %v539_v49, %v5287_v26  ;;  %v573_v36 = vadd.f32 %v541_v51, %v5292_v38  ;;  %v575_v32 = vadd.f32 %v543_v53, %v5297_v40  ;;  %v3709_v30 = vmul.f32 -1.442695, %v561_v54  ;;  %v486_v35 = vpop.f32.mrf.mxu0 }
  0xef   :  { %v3711_v29 = vmul.f32 -1.442695, %v563_v56  ;;  %v3713_v25 = vmul.f32 -1.442695, %v565_v59  ;;  %v3715_v41 = vmul.f32 -1.442695, %v567_v57  ;;  %v562_v62 = vadd.f32 %v484_v2, %v5263_v63  ;;  %v5313_v63 = vpop.f32.mrf.mxu1 }
  0xf0   :  { %4235 = vpow2.f32 %v3709_v30  ;;  %v3717_v43 = vmul.f32 -1.442695, %v569_v61  ;;  %v3719_v44 = vmul.f32 -1.442695, %v571_v20  ;;  %v3721_v6 = vmul.f32 -1.442695, %v573_v36  ;;  %v487_v45 = vpop.f32.mrf.mxu0 }
  0xf1   :  { %4237 = vpow2.f32 %v3711_v29  ;;  %v3723_v49 = vmul.f32 -1.442695, %v575_v32  ;;  %v532_v26 = vrot.slane %v484_v2, 1  ;;  %v534_v51 = vrot.slane %v484_v2, 2 }
  0xf2   :  { %4239 = vpow2.f32 %v3713_v25  ;;  %v536_v53 = vrot.slane %v484_v2, 3  ;;  %v538_v54 = vrot.slane %v484_v2, 4  ;;  %v540_v35 = vrot.slane %v484_v2, 5 }
  0xf3   :  { %4241 = vpow2.f32 %v3715_v41  ;;  %v542_v56 = vrot.slane %v484_v2, 6  ;;  %v544_v59 = vrot.slane %v484_v2, 7  ;;  %v564_v57 = vadd.f32 %v532_v26, %v5270_v3 }
  0xf4   :  { %4243 = vpow2.f32 %v3717_v43  ;;  %v566_v20 = vadd.f32 %v534_v51, %v5275_v5  ;;  %v568_v30 = vadd.f32 %v536_v53, %v5280_v12  ;;  %v570_v29 = vadd.f32 %v538_v54, %v5285_v19  ;;  %v523_v45 = vpop.f32.mrf.mxu1 }
  0xf5   :  { %v5319_v32 = vadd.f32 %v248_v11, %v5256_v58  ;;  %4245 = vpow2.f32 %v3719_v44  ;;  %v572_v25 = vadd.f32 %v540_v35, %v5290_v37  ;;  %v574_v36 = vadd.f32 %v542_v56, %v5295_v39 }
  0xf6   :  { %4247 = vpow2.f32 %v3721_v6  ;;  %v3710_v2 = vmul.f32 -1.442695, %v562_v62  ;;  %v3712_v26 = vmul.f32 -1.442695, %v564_v57  ;;  %v3714_v61 = vmul.f32 -1.442695, %v566_v20  ;;  %v3983_v58 = vpop.f32.mrf.mxu1 }
  0xf7   :  { %4249 = vpow2.f32 %v3723_v49  ;;  %v576_v41 = vadd.f32 %v544_v59, %v5319_v32  ;;  %v3716_v43 = vmul.f32 -1.442695, %v568_v30  ;;  %v3718_v51 = vmul.f32 -1.442695, %v570_v29  ;;  %v92_v58 = vld [vmem:[%s6570_s2 + $0x10] sm:$0xff] }
  0xf8   :  { %4251 = vpow2.f32 %v3710_v2  ;;  %v3720_v53 = vmul.f32 -1.442695, %v572_v25  ;;  %v3722_v11 = vmul.f32 -1.442695, %v574_v36  ;;  %v526_v54 = vpop.f32.mrf.mxu1  ;;  %v318_v57 = vsub.s32 1, %v5241_v48 }
  0xf9   :  { %4253 = vpow2.f32 %v3712_v26  ;;  %v3724_v44 = vmul.f32 -1.442695, %v576_v41 }
  0xfa   :  { %4255 = vpow2.f32 %v3714_v61  ;;  %v3984_v62 = vpop.f32.mrf.mxu1  ;;  %v5326_v41 = vrot.slane %v5133_v28, %v318_v57 }
  0xfb   :  { %4257 = vpow2.f32 %v3716_v43 }
  0xfc   :  { %4259 = vpow2.f32 %v3718_v51 }
  0xfd   :  { %v4236_v6 = vpop.eup %4235  ;;  %4261 = vpow2.f32 %v3720_v53 }
  0xfe   :  { %v4238_v35 = vpop.eup %4237  ;;  %v625_v49 = vadd.f32 1.0, %v4236_v6  ;;  %4263 = vpow2.f32 %v3722_v11 }
  0xff   :  { %v4240_v56 = vpop.eup %4239  ;;  %v627_v59 = vadd.f32 1.0, %v4238_v35  ;;  %4265 = vpow2.f32 %v3724_v44  ;;  %v673_v35 = vadd.f32 %v523_v45, %v5326_v41 }
 0x100   :  { %v4242_v20 = vpop.eup %4241  ;;  %v629_v30 = vadd.f32 1.0, %v4240_v56  ;;  %4267 = vrcp.f32 %v625_v49  ;;  %v112_v49 = vrot.slane %v92_v58, %v5246_v52 }
 0x101   :  { %v4244_v29 = vpop.eup %4243  ;;  %v631_v25 = vadd.f32 1.0, %v4242_v20  ;;  %4269 = vrcp.f32 %v627_v59  ;;  %v676_v45 = vrot.slane %v673_v35, 2 }
 0x102   :  { %v4246_v36 = vpop.eup %4245  ;;  %v633_v2 = vadd.f32 1.0, %v4244_v29  ;;  %4271 = vrcp.f32 %v629_v30  ;;  %v5337_v52 = vadd.f32 %v5243_v50, %v112_v49  ;;  %v680_v50 = vrot.slane %v673_v35, 6 }
 0x103   :  { %v4248_v26 = vpop.eup %4247  ;;  %v635_v61 = vadd.f32 1.0, %v4246_v36  ;;  %4273 = vrcp.f32 %v631_v25  ;;  %v675_v36 = vrot.slane %v673_v35, 1 }
 0x104   :  { %v4250_v43 = vpop.eup %4249  ;;  %v637_v51 = vadd.f32 1.0, %v4248_v26  ;;  %4275 = vrcp.f32 %v633_v2  ;;  %v5334_v26 = vadd.f32 %v5239_v46, %v112_v49  ;;  %v5343_v46 = vadd.f32 %v5258_v60, %v112_v49 }
 0x105   :  { %v4252_v53 = vpop.eup %4251  ;;  %v639_v11 = vadd.f32 1.0, %v4250_v43  ;;  %4277 = vrcp.f32 %v635_v61 }
 0x106   :  { %v4254_v44 = vpop.eup %4253  ;;  %4279 = vrcp.f32 %v637_v51  ;;  %v626_v54 = vadd.f32 1.0, %v4252_v53  ;;  %v677_v53 = vrot.slane %v673_v35, 3 }
 0x107   :  { %v4256_v6 = vpop.eup %4255  ;;  %4281 = vrcp.f32 %v639_v11  ;;  %v628_v62 = vadd.f32 1.0, %v4254_v44  ;;  %v5340_v11 = vadd.f32 %v5251_v55, %v112_v49  ;;  %v678_v44 = vrot.slane %v673_v35, 4 }
 0x108   :  { %v4258_v28 = vpop.eup %4257  ;;  %v630_v56 = vadd.f32 1.0, %v4256_v6  ;;  %4283 = vrcp.f32 %v626_v54  ;;  %v681_v55 = vrot.slane %v673_v35, 7 }
 0x109   :  { %v4260_v59 = vpop.eup %4259  ;;  %v632_v57 = vadd.f32 1.0, %v4258_v28  ;;  %4285 = vrcp.f32 %v628_v62  ;;  %6661 = vst [vmem:[#allocation18_spill] sm:$0xff] %v5340_v11  ;;  %v679_v62 = vrot.slane %v673_v35, 5 }
 0x10a   :  { %v4262_v20 = vpop.eup %4261  ;;  %v634_v30 = vadd.f32 1.0, %v4260_v59  ;;  %4287 = vrcp.f32 %v630_v56 }
 0x10b   :  { %v4264_v29 = vpop.eup %4263  ;;  %v636_v25 = vadd.f32 1.0, %v4262_v20  ;;  %4289 = vrcp.f32 %v632_v57 }
 0x10c   :  { %v4266_v2 = vpop.eup %4265  ;;  %v638_v61 = vadd.f32 1.0, %v4264_v29  ;;  %4291 = vrcp.f32 %v634_v30 }
 0x10d   :  { %v4268_v43 = vpop.eup %4267  ;;  %v640_v51 = vadd.f32 1.0, %v4266_v2  ;;  %4293 = vrcp.f32 %v636_v25 }
 0x10e   :  { %v4270_v58 = vpop.eup %4269  ;;  %v690_v54 = vmul.f32 %v4268_v43, %v673_v35  ;;  %4295 = vrcp.f32 %v638_v61  ;;  %v5348_v43 = vadd.f32 %v5299_v47, %v112_v49  ;;  %v5352_v61 = vadd.f32 %v5313_v63, %v112_v49 }
 0x10f   :  { %v4272_v6 = vpop.eup %4271  ;;  %v691_v28 = vmul.f32 %v4270_v58, %v675_v36  ;;  %4297 = vrcp.f32 %v640_v51  ;;  %v5356_v51 = vadd.f32 %v5267_v1, %v112_v49 }
 0x110   :  { %v4274_v56 = vpop.eup %4273  ;;  %v692_v59 = vmul.f32 %v4272_v6, %v676_v45  ;;  %v698_v57 = vadd.f32 %v690_v54, %v5337_v52  ;;  %6662 = vst [vmem:[#allocation19_spill] sm:$0xff] %v5348_v43  ;;  %6663 = vst [vmem:[#allocation20_spill] sm:$0xff] %v5352_v61 }
 0x111   :  { %v4276_v20 = vpop.eup %4275  ;;  %v693_v29 = vmul.f32 %v4274_v56, %v677_v53  ;;  %v699_v30 = vadd.f32 %v691_v28, %v5343_v46  ;;  %6664 = vst [vmem:[#allocation21_spill] sm:$0xff] %v5356_v51 }
 0x112   :  { %v4278_v2 = vpop.eup %4277  ;;  %v694_v60 = vmul.f32 %v4276_v20, %v678_v44  ;;  %v700_v25 = vadd.f32 %v692_v59, %v5334_v26  ;;  %4299 = vtanh.f32 %v698_v57  ;;  %v5360_v44 = vadd.f32 %v5310_v42, %v112_v49 }
 0x113   :  { %v4280_v36 = vpop.eup %4279  ;;  %v695_v45 = vmul.f32 %v4278_v2, %v679_v62  ;;  %v701_v58 = vadd.f32 %v693_v29, %v5340_v11  ;;  %4301 = vtanh.f32 %v699_v30 }
 0x114   :  { %v4282_v35 = vpop.eup %4281  ;;  %v696_v53 = vmul.f32 %v4280_v36, %v680_v50  ;;  %v702_v47 = vadd.f32 %v694_v60, %v5348_v43  ;;  %4303 = vtanh.f32 %v700_v25  ;;  %6665 = vst [vmem:[#allocation22_spill] sm:$0xff] %v5360_v44 }
 0x115   :  { %4305 = vtanh.f32 %v701_v58  ;;  %v697_v54 = vmul.f32 %v4282_v35, %v681_v55  ;;  %v703_v63 = vadd.f32 %v695_v45, %v5352_v61  ;;  %v4284_v62 = vpop.eup %4283 }
 0x116   :  { %4307 = vtanh.f32 %v702_v47  ;;  %v704_v6 = vadd.f32 %v696_v53, %v5356_v51  ;;  %v4286_v1 = vpop.eup %4285  ;;  %v714_v20 = vsub.f32 1.0, %v4284_v62  ;;  %v730_v30 = vmul.f32 0.0, %v4284_v62 }
 0x117   :  { %v705_v28 = vadd.f32 %v697_v54, %v5360_v44  ;;  %4309 = vtanh.f32 %v703_v63  ;;  %v4288_v56 = vpop.eup %4287  ;;  %v715_v29 = vsub.f32 1.0, %v4286_v1  ;;  %v731_v36 = vmul.f32 0.0, %v4286_v1 }
 0x118   :  { %4311 = vtanh.f32 %v704_v6  ;;  %v4290_v50 = vpop.eup %4289  ;;  %v716_v60 = vsub.f32 1.0, %v4288_v56  ;;  %v732_v45 = vmul.f32 0.0, %v4288_v56 }
 0x119   :  { %4313 = vtanh.f32 %v705_v28  ;;  %v4292_v59 = vpop.eup %4291  ;;  %v717_v35 = vsub.f32 1.0, %v4290_v50  ;;  %v733_v54 = vmul.f32 0.0, %v4290_v50 }
 0x11a   :  { %v4294_v57 = vpop.eup %4293  ;;  %v718_v53 = vsub.f32 1.0, %v4292_v59  ;;  %v734_v48 = vmul.f32 0.0, %v4292_v59 }
 0x11b   :  { %v4296_v42 = vpop.eup %4295  ;;  %v719_v6 = vsub.f32 1.0, %v4294_v57 }
 0x11c   :  { %v4298_v49 = vpop.eup %4297  ;;  %v720_v51 = vsub.f32 1.0, %v4296_v42  ;;  %v736_v43 = vmul.f32 0.0, %v4296_v42 }
 0x11f   :  { %v4300_v55 = vpop.eup %4299 }
 0x120   :  { %v4302_v2 = vpop.eup %4301  ;;  %v722_v25 = vmul.f32 %v4300_v55, %v714_v20  ;;  %v735_v20 = vmul.f32 0.0, %v4294_v57 }
 0x121   :  { %v4304_v58 = vpop.eup %4303  ;;  %v723_v47 = vmul.f32 %v4302_v2, %v715_v29  ;;  %v721_v2 = vsub.f32 1.0, %v4298_v49 }
 0x122   :  { %v4306_v63 = vpop.eup %4305  ;;  %v724_v28 = vmul.f32 %v4304_v58, %v716_v60  ;;  %v5365_v44 = vadd.f32 %v730_v30, %v722_v25 }
 0x123   :  { %v4308_v62 = vpop.eup %4307  ;;  %v725_v61 = vmul.f32 %v4306_v63, %v717_v35  ;;  %v5367_v1 = vadd.f32 %v731_v36, %v723_v47  ;;  %v737_v36 = vmul.f32 0.0, %v4298_v49 }
 0x124   :  { %v4310_v56 = vpop.eup %4309  ;;  %v726_v55 = vmul.f32 %v4308_v62, %v718_v53  ;;  %v5369_v11 = vadd.f32 %v732_v45, %v724_v28  ;;  %v746_v50 = vpack.c.bf16 %v5365_v44, %v5365_v44 }
 0x125   :  { %v4312_v29 = vpop.eup %4311  ;;  %v727_v59 = vmul.f32 %v4310_v56, %v719_v6  ;;  %v5373_v30 = vadd.f32 %v733_v54, %v725_v61  ;;  %v747_v60 = vpack.c.bf16 %v5367_v1, %v5367_v1 }
 0x126   :  { %v4314_v25 = vpop.eup %4313  ;;  %v728_v57 = vmul.f32 %v4312_v29, %v720_v51  ;;  %v5377_v58 = vadd.f32 %v734_v48, %v726_v55  ;;  %v748_v42 = vpack.c.bf16 %v5369_v11, %v5369_v11  ;;  %v762_v63 = vunpack.c.l.b16 %v746_v50 }
 0x127   :  { %v729_v45 = vmul.f32 %v4314_v25, %v721_v2  ;;  %v5381_v35 = vadd.f32 %v735_v20, %v727_v59  ;;  %v749_v53 = vpack.c.bf16 %v5373_v30, %v5373_v30  ;;  %v763_v47 = vunpack.c.l.b16 %v747_v60 }
 0x128   :  { %v5385_v61 = vadd.f32 %v736_v43, %v728_v57  ;;  %v750_v54 = vpack.c.bf16 %v5377_v58, %v5377_v58  ;;  %v764_v51 = vunpack.c.l.b16 %v748_v42 }
 0x129   :  { %v5389_v49 = vadd.f32 %v737_v36, %v729_v45  ;;  %v751_v48 = vpack.c.bf16 %v5381_v35, %v5381_v35  ;;  %v765_v6 = vunpack.c.l.b16 %v749_v53  ;;  %v770_v28 = vrot.slane %v763_v47, 7 }
 0x12a   :  { %v752_v62 = vpack.c.bf16 %v5385_v61, %v5385_v61  ;;  %v766_v20 = vunpack.c.l.b16 %v750_v54  ;;  %v773_v56 = vrot.slane %v764_v51, 6 }
 0x12b   :  { %v753_v43 = vpack.c.bf16 %v5389_v49, %v5389_v49  ;;  %v767_v55 = vunpack.c.l.b16 %v751_v48  ;;  %v772_v50 = vsel %vm771_vm2, %v770_v28, %v762_v63  ;;  %v776_v29 = vrot.slane %v765_v6, 5 }
 0x12c   :  { %v768_v2 = vunpack.c.l.b16 %v752_v62  ;;  %v775_v59 = vsel %vm774_vm3, %v773_v56, %v772_v50  ;;  %v779_v60 = vrot.slane %v766_v20, 4  ;;  %v6666_v48 = vmov 0.0   ;;  %v6674_v20 = vld [vmem:[#allocation12_spill] sm:$0xff] }
 0x12d   :  { %v769_v25 = vunpack.c.l.b16 %v753_v43  ;;  %v778_v57 = vsel %vm777_vm4, %v776_v29, %v775_v59  ;;  %v782_v36 = vrot.slane %v767_v55, 3  ;;  %v6667_v6 = vmov 0   ;;  %v6675_v55 = vld [vmem:[#allocation15_spill] sm:$0xff] }
 0x12e   :  { %v781_v42 = vsel %vm780_vm5, %v779_v60, %v778_v57  ;;  %v785_v45 = vrot.slane %v768_v2, 2  ;;  %v6676_v2 = vld [vmem:[#allocation17_spill] sm:$0xff] }
 0x12f   :  { %v784_v53 = vsel %vm783_vm6, %v782_v36, %v781_v42  ;;  %v788_v47 = vrot.slane %v769_v25, 1 }
 0x130   :  { %v787_v54 = vsel %vm786_vm7, %v785_v45, %v784_v53 }
 0x131   :  { %v790_v63 = vsel %vm789_vm8, %v788_v47, %v787_v54 }
 0x132   :  { %v791_v51 = vpack.c.b16 %v790_v63, %v790_v63 }
 0x134   :  { %826 = vmatmul.mubr.bf16.vlgmr.msra.gmra.mxu0 %v791_v51  ;;  %4002 = vmatmul.mubr.bf16.vlgmr.msra.gmra.mxu1 %v791_v51 }
 0x135   :  { %1156 = vmatpush1.bf16.msra.mxu0 %v5022_v7  ;;  %4006 = vmatpush3.bf16.msra.mxu1 %v5082_v18  ;;  %v6668_v7 = vld [vmem:[#allocation5_spill] sm:$0xff] }
 0x136   :  { %1157 = vmatprep.subr.bf16.mxu0 %v5028_v8  ;;  %4007 = vmatprep.subr.bf16.mxu1 %v6666_v48  ;;  %v6669_v8 = vld [vmem:[#allocation6_spill] sm:$0xff] }
 0x137   :  { %1187 = vmatprep.mubr.bf16.mxu0 %v6667_v6  ;;  %4021 = vmatprep.mubr.msk.bf16.mxu1 %vm4974_vm1, %v6666_v48 }
 0x139   :  { %1158 = vmatpush1.bf16.msra.mxu0 %v5035_v9  ;;  %4008 = vmatpush3.bf16.msra.mxu1 %v5105_v23  ;;  %v6670_v9 = vld [vmem:[#allocation9_spill] sm:$0xff] }
 0x13a   :  { %1159 = vmatprep.subr.bf16.mxu0 %v5042_v10  ;;  %4009 = vmatprep.subr.bf16.mxu1 %v6666_v48  ;;  %v6671_v10 = vld [vmem:[#allocation7_spill] sm:$0xff] }
 0x13d   :  { %1160 = vmatpush1.bf16.msra.mxu0 %v5053_v13  ;;  %4010 = vmatpush3.bf16.msra.mxu1 %v5128_v27  ;;  %v6672_v13 = vld [vmem:[#allocation8_spill] sm:$0xff] }
 0x13e   :  { %1161 = vmatprep.subr.bf16.mxu0 %v5063_v15  ;;  %4011 = vmatprep.subr.bf16.mxu1 %v6666_v48  ;;  %v6673_v15 = vld [vmem:[#allocation10_spill] sm:$0xff] }
 0x141   :  { %1162 = vmatpush1.bf16.msra.mxu0 %v5069_v16  ;;  %4012 = vmatpush3.bf16.msra.mxu1 %v5152_v31  ;;  %v5440_v16 = vld [vmem:[%s6569_s1 + $0xdc] ss:$12 sps:$4 sm:$0xff]  }
 0x142   :  { %1163 = vmatprep.subr.bf16.mxu0 %v5076_v17  ;;  %4013 = vmatprep.subr.bf16.mxu1 %v6666_v48 }
 0x145   :  { %1164 = vmatpush1.bf16.msra.mxu0 %v5091_v21  ;;  %4014 = vmatpush3.bf16.msra.mxu1 %v5170_v33 }
 0x146   :  { %1165 = vmatprep.subr.bf16.mxu0 %v5097_v22  ;;  %4015 = vmatprep.subr.bf16.mxu1 %v6666_v48 }
 0x149   :  { %1166 = vmatpush1.bf16.msra.mxu0 %v5110_v24  ;;  %4016 = vmatpush3.bf16.msra.mxu1 %v5182_v34 }
 0x14a   :  { %1167 = vmatprep.subr.bf16.mxu0 %v6668_v7  ;;  %4017 = vmatprep.subr.bf16.mxu1 %v6666_v48 }
 0x14d   :  { %1168 = vmatpush1.bf16.msra.mxu0 %v6669_v8  ;;  %4018 = vmatpush3.bf16.msra.mxu1 %v6670_v9 }
 0x14e   :  { %1169 = vmatprep.subr.bf16.mxu0 %v6671_v10  ;;  %4019 = vmatprep.subr.bf16.mxu1 %v6666_v48 }
 0x151   :  { %1170 = vmatpush1.bf16.msra.mxu0 %v6672_v13  ;;  %4020 = vmatpush3.bf16.msra.mxu1 %v6673_v15 }
 0x152   :  { %1517 = vmatprep.subr.bf16.mxu0 %v5440_v16  ;;  %4025 = vmatprep.subr.bf16.mxu1 %v6666_v48 }
 0x1f4   :  { %v827_v17 = vpop.f32.mrf.mxu0  ;;  %v5444_v18 = vpop.f32.mrf.mxu1 }
 0x1f5   :  { %v876_v21 = vrot.slane %v827_v17, 7  ;;  %v878_v22 = vrot.slane %v827_v17, 1  ;;  %v880_v23 = vrot.slane %v827_v17, 2  ;;  %v882_v24 = vrot.slane %v827_v17, 3 }
 0x1f6   :  { %v884_v27 = vrot.slane %v827_v17, 4  ;;  %v886_v31 = vrot.slane %v827_v17, 5  ;;  %v888_v33 = vrot.slane %v827_v17, 6  ;;  %v908_v34 = vadd.f32 %v827_v17, %v5265_v0  ;;  %v5447_v28 = vpop.f32.mrf.mxu0  ;;  %v4003_v62 = vpop.f32.mrf.mxu1 }
 0x1f7   :  { %v906_v56 = vadd.f32 %v876_v21, %v6674_v20  ;;  %v910_v43 = vadd.f32 %v878_v22, %v5272_v4  ;;  %v912_v50 = vadd.f32 %v880_v23, %v6675_v55  ;;  %v914_v29 = vadd.f32 %v882_v24, %v5282_v14  ;;  %v6677_v22 = vld [vmem:[#allocation13_spill] sm:$0xff] }
 0x1f8   :  { %v916_v59 = vadd.f32 %v884_v27, %v6676_v2  ;;  %v918_v60 = vadd.f32 %v886_v31, %v5292_v38  ;;  %v3727_v25 = vmul.f32 -1.442695, %v908_v34  ;;  %v831_v57 = vpop.f32.mrf.mxu0  ;;  %v871_v36 = vpop.f32.mrf.mxu1  ;;  %v920_v42 = vadd.f32 %v888_v33, %v5297_v40 }
 0x1f9   :  { %v3725_v45 = vmul.f32 -1.442695, %v906_v56  ;;  %v3729_v53 = vmul.f32 -1.442695, %v910_v43  ;;  %v3731_v47 = vmul.f32 -1.442695, %v912_v50  ;;  %v909_v24 = vadd.f32 %v5447_v28, %v5270_v3 }
 0x1fa   :  { %4315 = vpow2.f32 %v3727_v25  ;;  %v3733_v54 = vmul.f32 -1.442695, %v914_v29  ;;  %v832_v63 = vpop.f32.mrf.mxu0  ;;  %v4004_v51 = vpop.f32.mrf.mxu1  ;;  %v3735_v7 = vmul.f32 -1.442695, %v916_v59  ;;  %v3737_v8 = vmul.f32 -1.442695, %v918_v60 }
 0x1fb   :  { %4317 = vpow2.f32 %v3725_v45  ;;  %v3739_v9 = vmul.f32 -1.442695, %v920_v42  ;;  %v877_v10 = vrot.slane %v5447_v28, 7  ;;  %v879_v13 = vrot.slane %v5447_v28, 1 }
 0x1fc   :  { %4319 = vpow2.f32 %v3729_v53  ;;  %v881_v15 = vrot.slane %v5447_v28, 2  ;;  %v883_v17 = vrot.slane %v5447_v28, 3  ;;  %v885_v21 = vrot.slane %v5447_v28, 4 }
 0x1fd   :  { %4321 = vpow2.f32 %v3731_v47  ;;  %v907_v23 = vadd.f32 %v877_v10, %v6677_v22  ;;  %v911_v27 = vadd.f32 %v879_v13, %v5275_v5  ;;  %v3728_v56 = vmul.f32 -1.442695, %v909_v24 }
 0x1fe   :  { %4323 = vpow2.f32 %v3733_v54  ;;  %v913_v31 = vadd.f32 %v881_v15, %v5280_v12  ;;  %v915_v33 = vadd.f32 %v883_v17, %v5285_v19  ;;  %v917_v34 = vadd.f32 %v885_v21, %v5290_v37 }
 0x1ff   :  { %4325 = vpow2.f32 %v3735_v7  ;;  %v3726_v62 = vmul.f32 -1.442695, %v907_v23  ;;  %v3730_v43 = vmul.f32 -1.442695, %v911_v27  ;;  %v887_v60 = vrot.slane %v5447_v28, 5 }
 0x200   :  { %4327 = vpow2.f32 %v3737_v8  ;;  %v3732_v50 = vmul.f32 -1.442695, %v913_v31  ;;  %v3734_v29 = vmul.f32 -1.442695, %v915_v33  ;;  %v3736_v59 = vmul.f32 -1.442695, %v917_v34 }
 0x201   :  { %4329 = vpow2.f32 %v3739_v9  ;;  %v889_v57 = vrot.slane %v5447_v28, 6  ;;  %v919_v63 = vadd.f32 %v887_v60, %v5295_v39 }
 0x202   :  { %4331 = vpow2.f32 %v3726_v62  ;;  %v1018_v62 = vadd.f32 %v5444_v18, %v5326_v41 }
 0x203   :  { %4333 = vpow2.f32 %v3728_v56  ;;  %v921_v8 = vadd.f32 %v889_v57, %v5319_v32  ;;  %v3738_v21 = vmul.f32 -1.442695, %v919_v63 }
 0x204   :  { %4335 = vpow2.f32 %v3730_v43  ;;  %v1022_v63 = vrot.slane %v1018_v62, 2 }
 0x205   :  { %4337 = vpow2.f32 %v3732_v50  ;;  %v3740_v24 = vmul.f32 -1.442695, %v921_v8 }
 0x206   :  { %4339 = vpow2.f32 %v3734_v29 }
 0x207   :  { %v4316_v25 = vpop.eup %4315  ;;  %4341 = vpow2.f32 %v3736_v59 }
 0x208   :  { %v4318_v36 = vpop.eup %4317  ;;  %v972_v42 = vadd.f32 1.0, %v4316_v25 }
 0x209   :  { %v4320_v45 = vpop.eup %4319  ;;  %v970_v53 = vadd.f32 1.0, %v4318_v36  ;;  %v1020_v36 = vrot.slane %v1018_v62, 7 }
 0x20a   :  { %v4322_v47 = vpop.eup %4321  ;;  %v974_v54 = vadd.f32 1.0, %v4320_v45  ;;  %4343 = vrcp.f32 %v972_v42 }
 0x20b   :  { %v4324_v51 = vpop.eup %4323  ;;  %v976_v7 = vadd.f32 1.0, %v4322_v47  ;;  %4345 = vrcp.f32 %v970_v53  ;;  %v1021_v53 = vrot.slane %v1018_v62, 1 }
 0x20c   :  { %v4326_v9 = vpop.eup %4325  ;;  %v978_v10 = vadd.f32 1.0, %v4324_v51  ;;  %4347 = vrcp.f32 %v974_v54 }
 0x20d   :  { %v4328_v28 = vpop.eup %4327  ;;  %v980_v13 = vadd.f32 1.0, %v4326_v9  ;;  %4349 = vrcp.f32 %v976_v7  ;;  %v1023_v7 = vrot.slane %v1018_v62, 3 }
 0x20e   :  { %v4330_v15 = vpop.eup %4329  ;;  %v982_v17 = vadd.f32 1.0, %v4328_v28  ;;  %4351 = vrcp.f32 %v978_v10  ;;  %v1024_v28 = vrot.slane %v1018_v62, 4 }
 0x20f   :  { %v984_v23 = vadd.f32 1.0, %v4330_v15  ;;  %4353 = vrcp.f32 %v980_v13  ;;  %v4332_v27 = vpop.eup %4331 }
 0x210   :  { %4355 = vrcp.f32 %v982_v17  ;;  %v4334_v31 = vpop.eup %4333  ;;  %v971_v33 = vadd.f32 1.0, %v4332_v27 }
 0x211   :  { %4357 = vrcp.f32 %v984_v23  ;;  %v4336_v34 = vpop.eup %4335  ;;  %v973_v56 = vadd.f32 1.0, %v4334_v31  ;;  %v1026_v31 = vrot.slane %v1018_v62, 6 }
 0x212   :  { %4359 = vpow2.f32 %v3738_v21  ;;  %v4338_v43 = vpop.eup %4337  ;;  %v975_v50 = vadd.f32 1.0, %v4336_v34  ;;  %v1025_v21 = vrot.slane %v1018_v62, 5  ;;  %v6678_v34 = vld [vmem:[#allocation18_spill] sm:$0xff] }
 0x213   :  { %4361 = vpow2.f32 %v3740_v24  ;;  %v4340_v29 = vpop.eup %4339  ;;  %v977_v59 = vadd.f32 1.0, %v4338_v43 }
 0x214   :  { %v4342_v60 = vpop.eup %4341  ;;  %v979_v25 = vadd.f32 1.0, %v4340_v29  ;;  %4363 = vrcp.f32 %v971_v33  ;;  %v6679_v29 = vld [vmem:[#allocation19_spill] sm:$0xff] }
 0x215   :  { %v981_v42 = vadd.f32 1.0, %v4342_v60  ;;  %4365 = vrcp.f32 %v973_v56 }
 0x216   :  { %4367 = vrcp.f32 %v975_v50 }
 0x217   :  { %v4344_v57 = vpop.eup %4343  ;;  %4369 = vrcp.f32 %v977_v59 }
 0x218   :  { %v4346_v45 = vpop.eup %4345  ;;  %v1036_v47 = vmul.f32 %v4344_v57, %v1018_v62  ;;  %4371 = vrcp.f32 %v979_v25  ;;  %v6680_v57 = vld [vmem:[#allocation20_spill] sm:$0xff] }
 0x219   :  { %v4348_v54 = vpop.eup %4347  ;;  %v1035_v18 = vmul.f32 %v4346_v45, %v1020_v36  ;;  %4373 = vrcp.f32 %v981_v42 }
 0x21a   :  { %v4350_v51 = vpop.eup %4349  ;;  %v1037_v8 = vmul.f32 %v4348_v54, %v1021_v53  ;;  %v1044_v9 = vadd.f32 %v1036_v47, %v5343_v46  ;;  %v6681_v53 = vld [vmem:[#allocation21_spill] sm:$0xff]  ;;  %v6682_v54 = vld [vmem:[#allocation22_spill] sm:$0xff] }
 0x21b   :  { %v4352_v10 = vpop.eup %4351  ;;  %v1038_v13 = vmul.f32 %v4350_v51, %v1022_v63  ;;  %v1043_v15 = vadd.f32 %v1035_v18, %v5337_v52 }
 0x21c   :  { %v4354_v17 = vpop.eup %4353  ;;  %v1039_v23 = vmul.f32 %v4352_v10, %v1023_v7  ;;  %v1045_v24 = vadd.f32 %v1037_v8, %v5334_v26  ;;  %4375 = vtanh.f32 %v1044_v9 }
 0x21d   :  { %v4356_v27 = vpop.eup %4355  ;;  %v1040_v33 = vmul.f32 %v4354_v17, %v1024_v28  ;;  %v1046_v56 = vadd.f32 %v1038_v13, %v6678_v34  ;;  %4377 = vtanh.f32 %v1043_v15  ;;  %v1083_v28 = vrot.slane %v5365_v44, 7 }
 0x21e   :  { %v4358_v43 = vpop.eup %4357  ;;  %v1041_v50 = vmul.f32 %v4356_v27, %v1025_v21  ;;  %v1047_v59 = vadd.f32 %v1039_v23, %v6679_v29  ;;  %4379 = vtanh.f32 %v1045_v24  ;;  %v1084_v13 = vrot.slane %v5367_v1, 7 }
 0x21f   :  { %v4360_v60 = vpop.eup %4359  ;;  %4381 = vtanh.f32 %v1046_v56  ;;  %v1042_v25 = vmul.f32 %v4358_v43, %v1026_v31  ;;  %v1048_v36 = vadd.f32 %v1040_v33, %v6680_v57  ;;  %v1085_v21 = vrot.slane %v5369_v11, 7 }
 0x220   :  { %v4362_v42 = vpop.eup %4361  ;;  %4383 = vtanh.f32 %v1047_v59  ;;  %v983_v45 = vadd.f32 1.0, %v4360_v60  ;;  %v1049_v47 = vadd.f32 %v1041_v50, %v6681_v53  ;;  %v1086_v23 = vrot.slane %v5373_v30, 7 }
 0x221   :  { %v985_v62 = vadd.f32 1.0, %v4362_v42  ;;  %v1050_v63 = vadd.f32 %v1042_v25, %v6682_v54  ;;  %4385 = vtanh.f32 %v1048_v36  ;;  %v4364_v18 = vpop.eup %4363  ;;  %v1087_v24 = vrot.slane %v5377_v58, 7 }
 0x222   :  { %4387 = vrcp.f32 %v983_v45  ;;  %v4366_v51 = vpop.eup %4365  ;;  %v1059_v27 = vsub.f32 1.0, %v4364_v18  ;;  %v1088_v33 = vrot.slane %v5381_v35, 7  ;;  %v1089_v44 = vrot.slane %v5385_v61, 7 }
 0x223   :  { %4389 = vrcp.f32 %v985_v62  ;;  %v4368_v7 = vpop.eup %4367  ;;  %v1060_v15 = vsub.f32 1.0, %v4366_v51  ;;  %v1100_v50 = vmul.f32 %v4366_v51, %v1084_v13  ;;  %v1099_v25 = vmul.f32 %v4364_v18, %v1083_v28 }
 0x224   :  { %4391 = vtanh.f32 %v1049_v47  ;;  %v4370_v8 = vpop.eup %4369  ;;  %v1061_v56 = vsub.f32 1.0, %v4368_v7  ;;  %v1101_v45 = vmul.f32 %v4368_v7, %v1085_v21  ;;  %v1090_v51 = vrot.slane %v5389_v49, 7 }
 0x225   :  { %4393 = vtanh.f32 %v1050_v63  ;;  %v4372_v9 = vpop.eup %4371  ;;  %v1062_v60 = vsub.f32 1.0, %v4370_v8  ;;  %v1102_v63 = vmul.f32 %v4370_v8, %v1086_v23 }
 0x226   :  { %v4374_v10 = vpop.eup %4373  ;;  %v1063_v42 = vsub.f32 1.0, %v4372_v9  ;;  %v1103_v61 = vmul.f32 %v4372_v9, %v1087_v24 }
 0x227   :  { %v1064_v47 = vsub.f32 1.0, %v4374_v10 }
 0x229   :  { %v4376_v17 = vpop.eup %4375 }
 0x22a   :  { %v4378_v31 = vpop.eup %4377  ;;  %v1068_v43 = vmul.f32 %v4376_v17, %v1060_v15 }
 0x22b   :  { %v4380_v59 = vpop.eup %4379  ;;  %v1067_v1 = vmul.f32 %v4378_v31, %v1059_v27  ;;  %v1104_v27 = vmul.f32 %v4374_v10, %v1088_v33 }
 0x22c   :  { %v4382_v36 = vpop.eup %4381  ;;  %v1069_v11 = vmul.f32 %v4380_v59, %v1061_v56  ;;  %v5489_v30 = vadd.f32 %v1100_v50, %v1068_v43 }
 0x22d   :  { %v4384_v58 = vpop.eup %4383  ;;  %v1070_v62 = vmul.f32 %v4382_v36, %v1062_v60  ;;  %v5491_v35 = vadd.f32 %v1099_v25, %v1067_v1 }
 0x22e   :  { %v4386_v15 = vpop.eup %4385  ;;  %v1071_v13 = vmul.f32 %v4384_v58, %v1063_v42  ;;  %v5494_v17 = vadd.f32 %v1101_v45, %v1069_v11  ;;  %v1116_v23 = vpack.c.bf16 %v5489_v30, %v5489_v30 }
 0x22f   :  { %v4388_v18 = vpop.eup %4387  ;;  %v1072_v28 = vmul.f32 %v4386_v15, %v1064_v47  ;;  %v5496_v31 = vadd.f32 %v1102_v63, %v1070_v62  ;;  %v1115_v7 = vpack.c.bf16 %v5491_v35, %v5491_v35 }
 0x230   :  { %v4390_v21 = vpop.eup %4389  ;;  %v1065_v56 = vsub.f32 1.0, %v4388_v18  ;;  %v5500_v8 = vadd.f32 %v1103_v61, %v1071_v13  ;;  %v1117_v49 = vpack.c.bf16 %v5494_v17, %v5494_v17  ;;  %v1105_v43 = vmul.f32 %v4388_v18, %v1089_v44 }
 0x231   :  { %v4392_v9 = vpop.eup %4391  ;;  %v1066_v24 = vsub.f32 1.0, %v4390_v21  ;;  %v5506_v50 = vadd.f32 %v1104_v27, %v1072_v28  ;;  %v1118_v10 = vpack.c.bf16 %v5496_v31, %v5496_v31  ;;  %v1106_v60 = vmul.f32 %v4390_v21, %v1090_v51 }
 0x232   :  { %v4394_v33 = vpop.eup %4393  ;;  %v1073_v59 = vmul.f32 %v4392_v9, %v1065_v56  ;;  %v1119_v1 = vpack.c.bf16 %v5500_v8, %v5500_v8  ;;  %v1131_v25 = vunpack.c.l.b16 %v1115_v7  ;;  %v1133_v11 = vunpack.c.l.b16 %v1117_v49 }
 0x233   :  { %v1074_v36 = vmul.f32 %v4394_v33, %v1066_v24  ;;  %v1120_v42 = vpack.c.bf16 %v5506_v50, %v5506_v50  ;;  %v1134_v45 = vunpack.c.l.b16 %v1118_v10  ;;  %v1132_v44 = vunpack.c.l.b16 %v1116_v23 }
 0x234   :  { %v5514_v58 = vadd.f32 %v1105_v43, %v1073_v59  ;;  %v1135_v47 = vunpack.c.l.b16 %v1119_v1  ;;  %v1139_v62 = vrot.slane %v1131_v25, 1  ;;  %v1141_v13 = vrot.slane %v1133_v11, 7  ;;  %v5532_v1 = vld [vmem:[%s6569_s1 + $0xd8] ss:$12 sps:$4 sm:$0xff]   ;;  %v5538_v25 = vld [vmem:[%s6569_s1 + $0xe0] ss:$12 sps:$4 sm:$0xff]  }
 0x235   :  { %v5516_v63 = vadd.f32 %v1106_v60, %v1074_v36  ;;  %v1136_v15 = vunpack.c.l.b16 %v1120_v42  ;;  %v1143_v18 = vrot.slane %v1134_v45, 6  ;;  %v5544_v36 = vld [vmem:[%s6569_s1 + $0xc4] ss:$12 sps:$4 sm:$0xff]   ;;  %v5554_v42 = vld [vmem:[%s6569_s1 + $0xc0] ss:$12 sps:$4 sm:$0xff]  }
 0x236   :  { %v1121_v51 = vpack.c.bf16 %v5514_v58, %v5514_v58  ;;  %v1140_v61 = vsel %vm771_vm2, %v1132_v44, %v1139_v62  ;;  %v1145_v7 = vrot.slane %v1135_v47, 5  ;;  %v5560_v11 = vld [vmem:[%s6569_s1 + $0xc8] ss:$12 sps:$4 sm:$0xff]   ;;  %v5566_v45 = vld [vmem:[%s6569_s1 + $0xac] ss:$12 sps:$4 sm:$0xff]  }
 0x237   :  { %v1122_v28 = vpack.c.bf16 %v5516_v63, %v5516_v63  ;;  %v1142_v27 = vsel %vm774_vm3, %v1141_v13, %v1140_v61  ;;  %v1147_v23 = vrot.slane %v1136_v15, 4  ;;  %v5573_v44 = vld [vmem:[%s6569_s1 + $0xa8] ss:$12 sps:$4 sm:$0xff]   ;;  %v5579_v47 = vld [vmem:[%s6569_s1 + $0xb0] ss:$12 sps:$4 sm:$0xff]  }
 0x238   :  { %v1137_v21 = vunpack.c.l.b16 %v1121_v51  ;;  %v1144_v56 = vsel %vm777_vm4, %v1143_v18, %v1142_v27  ;;  %6683 = vst [vmem:[#allocation5_spill] sm:$0xff] %v5579_v47  ;;  %v5585_v62 = vld [vmem:[%s6569_s1 + $0x94] ss:$12 sps:$4 sm:$0xff]   ;;  %v5592_v15 = vld [vmem:[%s6569_s1 + $0x90] ss:$12 sps:$4 sm:$0xff]  }
 0x239   :  { %v1138_v49 = vunpack.c.l.b16 %v1122_v28  ;;  %v1146_v9 = vsel %vm780_vm5, %v1145_v7, %v1144_v56  ;;  %6684 = vst [vmem:[#allocation6_spill] sm:$0xff] %v5585_v62  ;;  %6685 = vst [vmem:[#allocation9_spill] sm:$0xff] %v5592_v15  ;;  %v5598_v13 = vld [vmem:[%s6569_s1 + $0x98] ss:$12 sps:$4 sm:$0xff]   ;;  %v5604_v51 = vld [vmem:[%s6569_s1 + $0x7c] ss:$12 sps:$4 sm:$0xff]  }
 0x23a   :  { %v1148_v24 = vsel %vm783_vm6, %v1147_v23, %v1146_v9  ;;  %v1149_v43 = vrot.slane %v1137_v21, 3  ;;  %6686 = vst [vmem:[#allocation7_spill] sm:$0xff] %v5598_v13  ;;  %6687 = vst [vmem:[#allocation8_spill] sm:$0xff] %v5604_v51  ;;  %v5611_v61 = vld [vmem:[%s6569_s1 + $0x78] ss:$12 sps:$4 sm:$0xff]  }
 0x23b   :  { %v1151_v10 = vrot.slane %v1138_v49, 2  ;;  %6688 = vst [vmem:[#allocation10_spill] sm:$0xff] %v5611_v61  ;;  %v5617_v18 = vld [vmem:[%s6569_s1 + $0x80] ss:$12 sps:$4 sm:$0xff]   ;;  %v5623_v28 = vld [vmem:[%s6569_s1 + $0x64] ss:$12 sps:$4 sm:$0xff]  }
 0x23c   :  { %v1150_v33 = vsel %vm786_vm7, %v1149_v43, %v1148_v24  ;;  %6689 = vst [vmem:[#allocation15_spill] sm:$0xff] %v5617_v18  ;;  %6690 = vst [vmem:[#allocation17_spill] sm:$0xff] %v5623_v28  ;;  %v5630_v27 = vld [vmem:[%s6569_s1 + $0x60] ss:$12 sps:$4 sm:$0xff]   ;;  %v5636_v7 = vld [vmem:[%s6569_s1 + $0x68] ss:$12 sps:$4 sm:$0xff]  }
 0x23d   :  { %v1152_v59 = vsel %vm789_vm8, %v1151_v10, %v1150_v33  ;;  %6691 = vst [vmem:[#allocation13_spill] sm:$0xff] %v5630_v27  ;;  %6692 = vst [vmem:[#allocation23_spill] sm:$0xff] %v5636_v7  ;;  %v5642_v21 = vld [vmem:[%s6569_s1 + $0x4c] ss:$12 sps:$4 sm:$0xff]   ;;  %v5649_v56 = vld [vmem:[%s6569_s1 + $0x48] ss:$12 sps:$4 sm:$0xff]  }
 0x23e   :  { %v1153_v60 = vpack.c.b16 %v1152_v59, %v1152_v59  ;;  %6693 = vst [vmem:[#allocation24_spill] sm:$0xff] %v5642_v21  ;;  %6694 = vst [vmem:[#allocation25_spill] sm:$0xff] %v5649_v56  ;;  %v5655_v23 = vld [vmem:[%s6569_s1 + $0x50] ss:$12 sps:$4 sm:$0xff]   ;;  %v5661_v49 = vld [vmem:[%s6569_s1 + $0x34] ss:$12 sps:$4 sm:$0xff]  }
 0x23f   :  { %6695 = vst [vmem:[#allocation26_spill] sm:$0xff] %v5655_v23  ;;  %6696 = vst [vmem:[#allocation27_spill] sm:$0xff] %v5661_v49  ;;  %v5668_v9 = vld [vmem:[%s6569_s1 + $0x30] ss:$12 sps:$4 sm:$0xff]   ;;  %v5674_v24 = vld [vmem:[%s6569_s1 + $0x38] ss:$12 sps:$4 sm:$0xff]  }
 0x240   :  { %1188 = vmatmul.mubr.bf16.vlgmr.msra.gmra.mxu0 %v1153_v60  ;;  %4022 = vmatmul.mubr.bf16.vlgmr.msra.gmra.mxu1 %v1153_v60  ;;  %6697 = vst [vmem:[#allocation28_spill] sm:$0xff] %v5668_v9  ;;  %6698 = vst [vmem:[#allocation29_spill] sm:$0xff] %v5674_v24 }
 0x241   :  { %1518 = vmatpush1.bf16.msra.mxu0 %v5532_v1  ;;  %4026 = vmatpush3.bf16.msra.mxu1 %v5538_v25 }
 0x242   :  { %1519 = vmatprep.subr.bf16.mxu0 %v5544_v36  ;;  %4027 = vmatprep.subr.bf16.mxu1 %v6666_v48 }
 0x243   :  { %1549 = vmatprep.mubr.bf16.mxu0 %v6667_v6  ;;  %4041 = vmatprep.mubr.msk.bf16.mxu1 %vm4974_vm1, %v6666_v48 }
 0x245   :  { %1520 = vmatpush1.bf16.msra.mxu0 %v5554_v42  ;;  %4028 = vmatpush3.bf16.msra.mxu1 %v5560_v11 }
 0x246   :  { %1521 = vmatprep.subr.bf16.mxu0 %v5566_v45  ;;  %4029 = vmatprep.subr.bf16.mxu1 %v6666_v48 }
 0x249   :  { %1522 = vmatpush1.bf16.msra.mxu0 %v5573_v44  ;;  %4030 = vmatpush3.bf16.msra.mxu1 %v5579_v47 }
 0x24a   :  { %1523 = vmatprep.subr.bf16.mxu0 %v5585_v62  ;;  %4031 = vmatprep.subr.bf16.mxu1 %v6666_v48 }
 0x24d   :  { %1524 = vmatpush1.bf16.msra.mxu0 %v5592_v15  ;;  %4032 = vmatpush3.bf16.msra.mxu1 %v5598_v13 }
 0x24e   :  { %1525 = vmatprep.subr.bf16.mxu0 %v5604_v51  ;;  %4033 = vmatprep.subr.bf16.mxu1 %v6666_v48 }
 0x251   :  { %1526 = vmatpush1.bf16.msra.mxu0 %v5611_v61  ;;  %4034 = vmatpush3.bf16.msra.mxu1 %v5617_v18 }
 0x252   :  { %1527 = vmatprep.subr.bf16.mxu0 %v5623_v28  ;;  %4035 = vmatprep.subr.bf16.mxu1 %v6666_v48 }
 0x255   :  { %1528 = vmatpush1.bf16.msra.mxu0 %v5630_v27  ;;  %4036 = vmatpush3.bf16.msra.mxu1 %v5636_v7 }
 0x256   :  { %1529 = vmatprep.subr.bf16.mxu0 %v5642_v21  ;;  %4037 = vmatprep.subr.bf16.mxu1 %v6666_v48 }
 0x259   :  { %1530 = vmatpush1.bf16.msra.mxu0 %v5649_v56  ;;  %4038 = vmatpush3.bf16.msra.mxu1 %v5655_v23 }
 0x25a   :  { %1531 = vmatprep.subr.bf16.mxu0 %v5661_v49  ;;  %4039 = vmatprep.subr.bf16.mxu1 %v6666_v48 }
 0x25d   :  { %1532 = vmatpush1.bf16.msra.mxu0 %v5668_v9  ;;  %4040 = vmatpush3.bf16.msra.mxu1 %v5674_v24 }
 0x25e   :  { %1879 = vmatprep.subr.bf16.mxu0 %v5440_v16  ;;  %4045 = vmatprep.subr.bf16.mxu1 %v6666_v48 }
 0x300   :  { %v1189_v43 = vpop.f32.mrf.mxu0  ;;  %v5679_v10 = vpop.f32.mrf.mxu1 }
 0x301   :  { %v1238_v33 = vrot.slane %v1189_v43, 6  ;;  %v1240_v59 = vrot.slane %v1189_v43, 7  ;;  %v1242_v60 = vrot.slane %v1189_v43, 1  ;;  %v1244_v49 = vrot.slane %v1189_v43, 2 }
 0x302   :  { %v1246_v23 = vrot.slane %v1189_v43, 3  ;;  %v1248_v9 = vrot.slane %v1189_v43, 4  ;;  %v1250_v56 = vrot.slane %v1189_v43, 5  ;;  %v1272_v21 = vadd.f32 %v1189_v43, %v5272_v4  ;;  %v5682_v7 = vpop.f32.mrf.mxu0  ;;  %v4023_v27 = vpop.f32.mrf.mxu1 }
 0x303   :  { %v1268_v24 = vadd.f32 %v1238_v33, %v6674_v20  ;;  %v1270_v16 = vadd.f32 %v1240_v59, %v5265_v0  ;;  %v1274_v28 = vadd.f32 %v1242_v60, %v6675_v55  ;;  %v1276_v18 = vadd.f32 %v1244_v49, %v5282_v14 }
 0x304   :  { %v1278_v61 = vadd.f32 %v1246_v23, %v6676_v2  ;;  %v1280_v51 = vadd.f32 %v1248_v9, %v5292_v38  ;;  %v3745_v13 = vmul.f32 -1.442695, %v1272_v21  ;;  %v1193_v15 = vpop.f32.mrf.mxu0  ;;  %v1233_v62 = vpop.f32.mrf.mxu1  ;;  %v1282_v43 = vadd.f32 %v1250_v56, %v5297_v40 }
 0x305   :  { %v3741_v4 = vmul.f32 -1.442695, %v1268_v24  ;;  %v3743_v47 = vmul.f32 -1.442695, %v1270_v16  ;;  %v3747_v27 = vmul.f32 -1.442695, %v1274_v28 }
 0x306   :  { %4395 = vpow2.f32 %v3745_v13  ;;  %v3749_v33 = vmul.f32 -1.442695, %v1276_v18  ;;  %v1194_v20 = vpop.f32.mrf.mxu0  ;;  %v4024_v59 = vpop.f32.mrf.mxu1  ;;  %v3751_v60 = vmul.f32 -1.442695, %v1278_v61  ;;  %v3753_v49 = vmul.f32 -1.442695, %v1280_v51 }
 0x307   :  { %4397 = vpow2.f32 %v3741_v4  ;;  %v3755_v23 = vmul.f32 -1.442695, %v1282_v43  ;;  %v1239_v9 = vrot.slane %v5682_v7, 6  ;;  %v1241_v62 = vrot.slane %v5682_v7, 7 }
 0x308   :  { %4399 = vpow2.f32 %v3743_v47  ;;  %v1243_v15 = vrot.slane %v5682_v7, 1  ;;  %v1245_v21 = vrot.slane %v5682_v7, 2  ;;  %v1247_v13 = vrot.slane %v5682_v7, 3 }
 0x309   :  { %4401 = vpow2.f32 %v3747_v27  ;;  %v1269_v4 = vadd.f32 %v1239_v9, %v6677_v22  ;;  %v1271_v20 = vadd.f32 %v1241_v62, %v5270_v3  ;;  %v1273_v47 = vadd.f32 %v5682_v7, %v5275_v5 }
 0x30a   :  { %4403 = vpow2.f32 %v3749_v33  ;;  %v1275_v51 = vadd.f32 %v1243_v15, %v5280_v12  ;;  %v1277_v61 = vadd.f32 %v1245_v21, %v5285_v19  ;;  %v1279_v18 = vadd.f32 %v1247_v13, %v5290_v37 }
 0x30b   :  { %4405 = vpow2.f32 %v3751_v60  ;;  %v3742_v28 = vmul.f32 -1.442695, %v1269_v4  ;;  %v3744_v56 = vmul.f32 -1.442695, %v1271_v20  ;;  %v3746_v24 = vmul.f32 -1.442695, %v1273_v47 }
 0x30c   :  { %4407 = vpow2.f32 %v3753_v49  ;;  %v3748_v16 = vmul.f32 -1.442695, %v1275_v51  ;;  %v3750_v43 = vmul.f32 -1.442695, %v1277_v61  ;;  %v3752_v27 = vmul.f32 -1.442695, %v1279_v18 }
 0x30d   :  { %4409 = vpow2.f32 %v3755_v23  ;;  %v1249_v33 = vrot.slane %v5682_v7, 4  ;;  %v1251_v60 = vrot.slane %v5682_v7, 5 }
 0x30e   :  { %4411 = vpow2.f32 %v3742_v28 }
 0x30f   :  { %4413 = vpow2.f32 %v3744_v56  ;;  %v1281_v13 = vadd.f32 %v1249_v33, %v5295_v39  ;;  %v1283_v47 = vadd.f32 %v1251_v60, %v5319_v32 }
 0x310   :  { %4415 = vpow2.f32 %v3746_v24 }
 0x311   :  { %4417 = vpow2.f32 %v3748_v16  ;;  %v3754_v24 = vmul.f32 -1.442695, %v1281_v13 }
 0x312   :  { %4419 = vpow2.f32 %v3750_v43  ;;  %v3756_v43 = vmul.f32 -1.442695, %v1283_v47 }
 0x313   :  { %v4396_v59 = vpop.eup %4395  ;;  %4421 = vpow2.f32 %v3752_v27 }
 0x314   :  { %v4398_v49 = vpop.eup %4397  ;;  %v1336_v23 = vadd.f32 1.0, %v4396_v59 }
 0x315   :  { %v4400_v9 = vpop.eup %4399  ;;  %v1332_v62 = vadd.f32 1.0, %v4398_v49  ;;  %v1380_v49 = vadd.f32 %v5679_v10, %v5326_v41 }
 0x316   :  { %v4402_v15 = vpop.eup %4401  ;;  %v1334_v21 = vadd.f32 1.0, %v4400_v9  ;;  %4423 = vrcp.f32 %v1336_v23 }
 0x317   :  { %v4404_v4 = vpop.eup %4403  ;;  %v1338_v20 = vadd.f32 1.0, %v4402_v15  ;;  %4425 = vrcp.f32 %v1332_v62  ;;  %v1382_v47 = vrot.slane %v1380_v49, 6 }
 0x318   :  { %v4406_v51 = vpop.eup %4405  ;;  %v1340_v61 = vadd.f32 1.0, %v4404_v4  ;;  %4427 = vrcp.f32 %v1334_v21 }
 0x319   :  { %v4408_v7 = vpop.eup %4407  ;;  %v1342_v18 = vadd.f32 1.0, %v4406_v51  ;;  %4429 = vrcp.f32 %v1338_v20 }
 0x31a   :  { %v4410_v28 = vpop.eup %4409  ;;  %v1344_v56 = vadd.f32 1.0, %v4408_v7  ;;  %4431 = vrcp.f32 %v1340_v61  ;;  %v1383_v7 = vrot.slane %v1380_v49, 7 }
 0x31b   :  { %v1346_v16 = vadd.f32 1.0, %v4410_v28  ;;  %4433 = vrcp.f32 %v1342_v18  ;;  %v4412_v27 = vpop.eup %4411 }
 0x31c   :  { %4435 = vrcp.f32 %v1344_v56  ;;  %v4414_v33 = vpop.eup %4413  ;;  %v1333_v59 = vadd.f32 1.0, %v4412_v27  ;;  %v1384_v56 = vrot.slane %v1380_v49, 1 }
 0x31d   :  { %4437 = vrcp.f32 %v1346_v16  ;;  %v4416_v60 = vpop.eup %4415  ;;  %v1335_v23 = vadd.f32 1.0, %v4414_v33  ;;  %v1385_v16 = vrot.slane %v1380_v49, 2 }
 0x31e   :  { %4439 = vpow2.f32 %v3754_v24  ;;  %v4418_v9 = vpop.eup %4417  ;;  %v1337_v62 = vadd.f32 1.0, %v4416_v60 }
 0x31f   :  { %4441 = vpow2.f32 %v3756_v43  ;;  %v4420_v15 = vpop.eup %4419  ;;  %v1339_v21 = vadd.f32 1.0, %v4418_v9 }
 0x320   :  { %v4422_v13 = vpop.eup %4421  ;;  %v1341_v4 = vadd.f32 1.0, %v4420_v15  ;;  %4443 = vrcp.f32 %v1333_v59  ;;  %v1386_v59 = vrot.slane %v1380_v49, 3  ;;  %v1387_v15 = vrot.slane %v1380_v49, 4 }
 0x321   :  { %v1343_v51 = vadd.f32 1.0, %v4422_v13  ;;  %4445 = vrcp.f32 %v1335_v23 }
 0x322   :  { %4447 = vrcp.f32 %v1337_v62 }
 0x323   :  { %v4424_v20 = vpop.eup %4423  ;;  %4449 = vrcp.f32 %v1339_v21  ;;  %v1388_v21 = vrot.slane %v1380_v49, 5 }
 0x324   :  { %v4426_v61 = vpop.eup %4425  ;;  %v1399_v18 = vmul.f32 %v4424_v20, %v1380_v49  ;;  %4451 = vrcp.f32 %v1341_v4 }
 0x325   :  { %v4428_v28 = vpop.eup %4427  ;;  %v1397_v10 = vmul.f32 %v4426_v61, %v1382_v47  ;;  %4453 = vrcp.f32 %v1343_v51 }
 0x326   :  { %v4430_v24 = vpop.eup %4429  ;;  %v1398_v43 = vmul.f32 %v4428_v28, %v1383_v7  ;;  %v1407_v27 = vadd.f32 %v1399_v18, %v5334_v26 }
 0x327   :  { %v4432_v33 = vpop.eup %4431  ;;  %v1400_v60 = vmul.f32 %v4430_v24, %v1384_v56  ;;  %v1405_v9 = vadd.f32 %v1397_v10, %v5337_v52 }
 0x328   :  { %v4434_v23 = vpop.eup %4433  ;;  %v1401_v13 = vmul.f32 %v4432_v33, %v1385_v16  ;;  %v1406_v62 = vadd.f32 %v1398_v43, %v5343_v46  ;;  %4455 = vtanh.f32 %v1407_v27 }
 0x329   :  { %v4436_v20 = vpop.eup %4435  ;;  %v1402_v47 = vmul.f32 %v4434_v23, %v1386_v59  ;;  %v1408_v61 = vadd.f32 %v1400_v60, %v6678_v34  ;;  %4457 = vtanh.f32 %v1405_v9 }
 0x32a   :  { %v4438_v7 = vpop.eup %4437  ;;  %v1403_v4 = vmul.f32 %v4436_v20, %v1387_v15  ;;  %v1409_v18 = vadd.f32 %v1401_v13, %v6679_v29  ;;  %4459 = vtanh.f32 %v1406_v62  ;;  %v1446_v15 = vrot.slane %v5489_v30, 7 }
 0x32b   :  { %v4440_v28 = vpop.eup %4439  ;;  %4461 = vtanh.f32 %v1408_v61  ;;  %v1404_v51 = vmul.f32 %v4438_v7, %v1388_v21  ;;  %v1410_v56 = vadd.f32 %v1402_v47, %v6680_v57  ;;  %v1447_v13 = vrot.slane %v5494_v17, 7 }
 0x32c   :  { %v4442_v10 = vpop.eup %4441  ;;  %4463 = vtanh.f32 %v1409_v18  ;;  %v1345_v24 = vadd.f32 1.0, %v4440_v28  ;;  %v1411_v16 = vadd.f32 %v1403_v4, %v6681_v53  ;;  %v1445_v21 = vrot.slane %v5491_v35, 7 }
 0x32d   :  { %v1347_v49 = vadd.f32 1.0, %v4442_v10  ;;  %v1412_v43 = vadd.f32 %v1404_v51, %v6682_v54  ;;  %4465 = vtanh.f32 %v1410_v56  ;;  %v4444_v27 = vpop.eup %4443  ;;  %v1448_v47 = vrot.slane %v5496_v31, 7 }
 0x32e   :  { %4467 = vrcp.f32 %v1345_v24  ;;  %v4446_v33 = vpop.eup %4445  ;;  %v1449_v61 = vrot.slane %v5500_v8, 7  ;;  %v1421_v7 = vsub.f32 1.0, %v4444_v27  ;;  %v1450_v18 = vrot.slane %v5506_v50, 7 }
 0x32f   :  { %4469 = vrcp.f32 %v1347_v49  ;;  %v4448_v59 = vpop.eup %4447  ;;  %v1422_v28 = vsub.f32 1.0, %v4446_v33  ;;  %v1451_v30 = vrot.slane %v5514_v58, 7  ;;  %v1462_v54 = vmul.f32 %v4446_v33, %v1446_v15 }
 0x330   :  { %4471 = vtanh.f32 %v1411_v16  ;;  %v4450_v60 = vpop.eup %4449  ;;  %v1423_v62 = vsub.f32 1.0, %v4448_v59  ;;  %v1463_v56 = vmul.f32 %v4448_v59, %v1447_v13  ;;  %v1461_v16 = vmul.f32 %v4444_v27, %v1445_v21 }
 0x331   :  { %4473 = vtanh.f32 %v1412_v43  ;;  %v4452_v9 = vpop.eup %4451  ;;  %v1424_v24 = vsub.f32 1.0, %v4450_v60  ;;  %v1464_v29 = vmul.f32 %v4450_v60, %v1448_v47  ;;  %v1452_v59 = vrot.slane %v5516_v63, 7 }
 0x332   :  { %v4454_v23 = vpop.eup %4453  ;;  %v1425_v43 = vsub.f32 1.0, %v4452_v9  ;;  %v1465_v58 = vmul.f32 %v4452_v9, %v1449_v61 }
 0x333   :  { %v1426_v53 = vsub.f32 1.0, %v4454_v23 }
 0x335   :  { %v4456_v20 = vpop.eup %4455 }
 0x336   :  { %v4458_v4 = vpop.eup %4457  ;;  %v1431_v51 = vmul.f32 %v4456_v20, %v1423_v62 }
 0x337   :  { %v4460_v10 = vpop.eup %4459  ;;  %v1429_v17 = vmul.f32 %v4458_v4, %v1421_v7  ;;  %v1466_v7 = vmul.f32 %v4454_v23, %v1450_v18 }
 0x338   :  { %v4462_v49 = vpop.eup %4461  ;;  %v1430_v35 = vmul.f32 %v4460_v10, %v1422_v28  ;;  %v5724_v31 = vadd.f32 %v1463_v56, %v1431_v51 }
 0x339   :  { %v4464_v8 = vpop.eup %4463  ;;  %v1432_v57 = vmul.f32 %v4462_v49, %v1424_v24  ;;  %v5726_v50 = vadd.f32 %v1461_v16, %v1429_v17 }
 0x33a   :  { %v4466_v62 = vpop.eup %4465  ;;  %v1433_v13 = vmul.f32 %v4464_v8, %v1425_v43  ;;  %v5729_v20 = vadd.f32 %v1462_v54, %v1430_v35  ;;  %v1479_v63 = vpack.c.bf16 %v5724_v31, %v5724_v31 }
 0x33b   :  { %v4468_v27 = vpop.eup %4467  ;;  %v1434_v21 = vmul.f32 %v4466_v62, %v1426_v53  ;;  %v5731_v4 = vadd.f32 %v1464_v29, %v1432_v57  ;;  %v1477_v33 = vpack.c.bf16 %v5726_v50, %v5726_v50 }
 0x33c   :  { %v4470_v15 = vpop.eup %4469  ;;  %v1427_v28 = vsub.f32 1.0, %v4468_v27  ;;  %v5735_v60 = vadd.f32 %v1465_v58, %v1433_v13  ;;  %v1478_v47 = vpack.c.bf16 %v5729_v20, %v5729_v20  ;;  %v1467_v61 = vmul.f32 %v4468_v27, %v1451_v30 }
 0x33d   :  { %v4472_v54 = vpop.eup %4471  ;;  %v1428_v9 = vsub.f32 1.0, %v4470_v15  ;;  %v5741_v53 = vadd.f32 %v1466_v7, %v1434_v21  ;;  %v1480_v29 = vpack.c.bf16 %v5731_v4, %v5731_v4  ;;  %v1493_v51 = vunpack.c.l.b16 %v1477_v33 }
 0x33e   :  { %v4474_v57 = vpop.eup %4473  ;;  %v1435_v23 = vmul.f32 %v4472_v54, %v1427_v28  ;;  %v1481_v18 = vpack.c.bf16 %v5735_v60, %v5735_v60  ;;  %v1494_v56 = vunpack.c.l.b16 %v1478_v47  ;;  %v1468_v24 = vmul.f32 %v4470_v15, %v1452_v59 }
 0x33f   :  { %v1436_v10 = vmul.f32 %v4474_v57, %v1428_v9  ;;  %v1482_v17 = vpack.c.bf16 %v5741_v53, %v5741_v53  ;;  %v1496_v16 = vunpack.c.l.b16 %v1480_v29  ;;  %v1501_v43 = vrot.slane %v1493_v51, 2  ;;  %v6702_v51 = vld [vmem:[#allocation7_spill] sm:$0xff] }
 0x340   :  { %v5749_v49 = vadd.f32 %v1467_v61, %v1435_v23  ;;  %v1497_v30 = vunpack.c.l.b16 %v1481_v18  ;;  %v1502_v35 = vrot.slane %v1494_v56, 1  ;;  %v1495_v62 = vunpack.c.l.b16 %v1479_v63  ;;  %v6703_v56 = vld [vmem:[#allocation8_spill] sm:$0xff] }
 0x341   :  { %v5751_v8 = vadd.f32 %v1468_v24, %v1436_v10  ;;  %v1498_v13 = vunpack.c.l.b16 %v1482_v17  ;;  %v1505_v21 = vrot.slane %v1496_v16, 7  ;;  %v6708_v10 = vld [vmem:[#allocation23_spill] sm:$0xff]  ;;  %v6709_v24 = vld [vmem:[#allocation24_spill] sm:$0xff]  ;;  %v6710_v17 = vld [vmem:[#allocation25_spill] sm:$0xff] }
 0x342   :  { %v1483_v58 = vpack.c.bf16 %v5749_v49, %v5749_v49  ;;  %v1503_v27 = vsel %vm771_vm2, %v1502_v35, %v1501_v43  ;;  %v1507_v33 = vrot.slane %v1497_v30, 6  ;;  %v6711_v16 = vld [vmem:[#allocation26_spill] sm:$0xff]  ;;  %v6712_v30 = vld [vmem:[#allocation27_spill] sm:$0xff]  ;;  %v6713_v43 = vld [vmem:[#allocation28_spill] sm:$0xff] }
 0x343   :  { %v1484_v59 = vpack.c.bf16 %v5751_v8, %v5751_v8  ;;  %v1504_v7 = vsel %vm774_vm3, %v1495_v62, %v1503_v27  ;;  %v1509_v47 = vrot.slane %v1498_v13, 5  ;;  %v6714_v35 = vld [vmem:[#allocation29_spill] sm:$0xff] }
 0x344   :  { %v1499_v15 = vunpack.c.l.b16 %v1483_v58  ;;  %v1506_v28 = vsel %vm777_vm4, %v1505_v21, %v1504_v7  ;;  %v5800_v62 = vld [vmem:[%s6569_s1 + $0xdc] ss:$12 sps:$4 sm:$0xff]  }
 0x345   :  { %v1500_v54 = vunpack.c.l.b16 %v1484_v59  ;;  %v1508_v63 = vsel %vm780_vm5, %v1507_v33, %v1506_v28 }
 0x346   :  { %v1510_v9 = vsel %vm783_vm6, %v1509_v47, %v1508_v63  ;;  %v1511_v61 = vrot.slane %v1499_v15, 4 }
 0x347   :  { %v1513_v29 = vrot.slane %v1500_v54, 3 }
 0x348   :  { %v1512_v57 = vsel %vm786_vm7, %v1511_v61, %v1510_v9  ;;  %v6715_v9 = vld [vmem:[#allocation12_spill] sm:$0xff] }
 0x349   :  { %v1514_v23 = vsel %vm789_vm8, %v1513_v29, %v1512_v57  ;;  %v6716_v57 = vld [vmem:[#allocation14_spill] sm:$0xff] }
 0x34a   :  { %v1515_v18 = vpack.c.b16 %v1514_v23, %v1514_v23 }
 0x34c   :  { %1550 = vmatmul.mubr.bf16.vlgmr.msra.gmra.mxu0 %v1515_v18  ;;  %4042 = vmatmul.mubr.bf16.vlgmr.msra.gmra.mxu1 %v1515_v18 }
 0x34d   :  { %1880 = vmatpush1.bf16.msra.mxu0 %v5532_v1  ;;  %4046 = vmatpush3.bf16.msra.mxu1 %v5538_v25  ;;  %v6699_v1 = vld [vmem:[#allocation5_spill] sm:$0xff]  ;;  %v6700_v25 = vld [vmem:[#allocation6_spill] sm:$0xff] }
 0x34e   :  { %1881 = vmatprep.subr.bf16.mxu0 %v5544_v36  ;;  %4047 = vmatprep.subr.bf16.mxu1 %v6666_v48  ;;  %v6701_v36 = vld [vmem:[#allocation9_spill] sm:$0xff] }
 0x34f   :  { %1911 = vmatprep.mubr.bf16.mxu0 %v6667_v6  ;;  %4061 = vmatprep.mubr.msk.bf16.mxu1 %vm4974_vm1, %v6666_v48 }
 0x351   :  { %1882 = vmatpush1.bf16.msra.mxu0 %v5554_v42  ;;  %4048 = vmatpush3.bf16.msra.mxu1 %v5560_v11  ;;  %v6704_v42 = vld [vmem:[#allocation10_spill] sm:$0xff]  ;;  %v6705_v11 = vld [vmem:[#allocation15_spill] sm:$0xff] }
 0x352   :  { %1883 = vmatprep.subr.bf16.mxu0 %v5566_v45  ;;  %4049 = vmatprep.subr.bf16.mxu1 %v6666_v48  ;;  %v6706_v45 = vld [vmem:[#allocation17_spill] sm:$0xff] }
 0x355   :  { %1884 = vmatpush1.bf16.msra.mxu0 %v5573_v44  ;;  %4050 = vmatpush3.bf16.msra.mxu1 %v6699_v1  ;;  %v6707_v44 = vld [vmem:[#allocation13_spill] sm:$0xff] }
 0x356   :  { %1885 = vmatprep.subr.bf16.mxu0 %v6700_v25  ;;  %4051 = vmatprep.subr.bf16.mxu1 %v6666_v48 }
 0x359   :  { %1886 = vmatpush1.bf16.msra.mxu0 %v6701_v36  ;;  %4052 = vmatpush3.bf16.msra.mxu1 %v6702_v51 }
 0x35a   :  { %1887 = vmatprep.subr.bf16.mxu0 %v6703_v56  ;;  %4053 = vmatprep.subr.bf16.mxu1 %v6666_v48 }
 0x35d   :  { %1888 = vmatpush1.bf16.msra.mxu0 %v6704_v42  ;;  %4054 = vmatpush3.bf16.msra.mxu1 %v6705_v11 }
 0x35e   :  { %1889 = vmatprep.subr.bf16.mxu0 %v6706_v45  ;;  %4055 = vmatprep.subr.bf16.mxu1 %v6666_v48 }
 0x361   :  { %1890 = vmatpush1.bf16.msra.mxu0 %v6707_v44  ;;  %4056 = vmatpush3.bf16.msra.mxu1 %v6708_v10 }
 0x362   :  { %1891 = vmatprep.subr.bf16.mxu0 %v6709_v24  ;;  %4057 = vmatprep.subr.bf16.mxu1 %v6666_v48 }
 0x365   :  { %1892 = vmatpush1.bf16.msra.mxu0 %v6710_v17  ;;  %4058 = vmatpush3.bf16.msra.mxu1 %v6711_v16 }
 0x366   :  { %1893 = vmatprep.subr.bf16.mxu0 %v6712_v30  ;;  %4059 = vmatprep.subr.bf16.mxu1 %v6666_v48 }
 0x369   :  { %1894 = vmatpush1.bf16.msra.mxu0 %v6713_v43  ;;  %4060 = vmatpush3.bf16.msra.mxu1 %v6714_v35 }
 0x36a   :  { %2241 = vmatprep.subr.bf16.mxu0 %v5800_v62  ;;  %4065 = vmatprep.subr.bf16.mxu1 %v6666_v48 }
 0x40c   :  { %v1551_v13 = vpop.f32.mrf.mxu0  ;;  %v5804_v58 = vpop.f32.mrf.mxu1 }
 0x40d   :  { %v1600_v27 = vrot.slane %v1551_v13, 5  ;;  %v1602_v21 = vrot.slane %v1551_v13, 6  ;;  %v1604_v59 = vrot.slane %v1551_v13, 7  ;;  %v1606_v7 = vrot.slane %v1551_v13, 1 }
 0x40e   :  { %v1608_v33 = vrot.slane %v1551_v13, 2  ;;  %v1610_v15 = vrot.slane %v1551_v13, 3  ;;  %v1612_v28 = vrot.slane %v1551_v13, 4  ;;  %v1636_v47 = vadd.f32 %v1551_v13, %v6675_v55  ;;  %v5807_v54 = vpop.f32.mrf.mxu0  ;;  %v4043_v63 = vpop.f32.mrf.mxu1 }
 0x40f   :  { %v1630_v61 = vadd.f32 %v1600_v27, %v6715_v9  ;;  %v1632_v29 = vadd.f32 %v1602_v21, %v5265_v0  ;;  %v1634_v23 = vadd.f32 %v1604_v59, %v6716_v57  ;;  %v1638_v18 = vadd.f32 %v1606_v7, %v5282_v14 }
 0x410   :  { %v1640_v1 = vadd.f32 %v1608_v33, %v6676_v2  ;;  %v1642_v25 = vadd.f32 %v1610_v15, %v5292_v38  ;;  %v3763_v36 = vmul.f32 -1.442695, %v1636_v47  ;;  %v1555_v51 = vpop.f32.mrf.mxu0  ;;  %v1595_v56 = vpop.f32.mrf.mxu1  ;;  %v1644_v42 = vadd.f32 %v1612_v28, %v5297_v40 }
 0x411   :  { %v3757_v11 = vmul.f32 -1.442695, %v1630_v61  ;;  %v3759_v45 = vmul.f32 -1.442695, %v1632_v29  ;;  %v3761_v44 = vmul.f32 -1.442695, %v1634_v23  ;;  %v1637_v28 = vadd.f32 %v5807_v54, %v5280_v12 }
 0x412   :  { %4475 = vpow2.f32 %v3763_v36  ;;  %v3765_v10 = vmul.f32 -1.442695, %v1638_v18  ;;  %v1556_v24 = vpop.f32.mrf.mxu0  ;;  %v4044_v17 = vpop.f32.mrf.mxu1  ;;  %v3767_v16 = vmul.f32 -1.442695, %v1640_v1  ;;  %v3769_v30 = vmul.f32 -1.442695, %v1642_v25 }
 0x413   :  { %4477 = vpow2.f32 %v3757_v11  ;;  %v3771_v43 = vmul.f32 -1.442695, %v1644_v42  ;;  %v1601_v35 = vrot.slane %v5807_v54, 5  ;;  %v1603_v13 = vrot.slane %v5807_v54, 6 }
 0x414   :  { %4479 = vpow2.f32 %v3759_v45  ;;  %v1605_v27 = vrot.slane %v5807_v54, 7  ;;  %v1607_v21 = vrot.slane %v5807_v54, 1  ;;  %v1609_v59 = vrot.slane %v5807_v54, 2 }
 0x415   :  { %4481 = vpow2.f32 %v3761_v44  ;;  %v1631_v7 = vadd.f32 %v1601_v35, %v6677_v22  ;;  %v1633_v33 = vadd.f32 %v1603_v13, %v5270_v3  ;;  %v3764_v18 = vmul.f32 -1.442695, %v1637_v28 }
 0x416   :  { %4483 = vpow2.f32 %v3765_v10  ;;  %v1635_v15 = vadd.f32 %v1605_v27, %v5275_v5  ;;  %v1639_v47 = vadd.f32 %v1607_v21, %v5285_v19  ;;  %v1641_v63 = vadd.f32 %v1609_v59, %v5290_v37 }
 0x417   :  { %4485 = vpow2.f32 %v3767_v16  ;;  %v3758_v61 = vmul.f32 -1.442695, %v1631_v7  ;;  %v3760_v29 = vmul.f32 -1.442695, %v1633_v33  ;;  %v1611_v36 = vrot.slane %v5807_v54, 3 }
 0x418   :  { %4487 = vpow2.f32 %v3769_v30  ;;  %v3762_v23 = vmul.f32 -1.442695, %v1635_v15  ;;  %v3766_v1 = vmul.f32 -1.442695, %v1639_v47  ;;  %v3768_v25 = vmul.f32 -1.442695, %v1641_v63 }
 0x419   :  { %4489 = vpow2.f32 %v3771_v43  ;;  %v1613_v56 = vrot.slane %v5807_v54, 4  ;;  %v1643_v17 = vadd.f32 %v1611_v36, %v5295_v39 }
 0x41a   :  { %4491 = vpow2.f32 %v3758_v61 }
 0x41b   :  { %4493 = vpow2.f32 %v3760_v29  ;;  %v1645_v43 = vadd.f32 %v1613_v56, %v5319_v32  ;;  %v3770_v7 = vmul.f32 -1.442695, %v1643_v17  ;;  %v1742_v29 = vadd.f32 %v5804_v58, %v5326_v41 }
 0x41c   :  { %4495 = vpow2.f32 %v3762_v23 }
 0x41d   :  { %4497 = vpow2.f32 %v3764_v18  ;;  %v3772_v15 = vmul.f32 -1.442695, %v1645_v43  ;;  %v1747_v43 = vrot.slane %v1742_v29, 1 }
 0x41e   :  { %4499 = vpow2.f32 %v3766_v1 }
 0x41f   :  { %v4476_v51 = vpop.eup %4475  ;;  %4501 = vpow2.f32 %v3768_v25 }
 0x420   :  { %v4478_v42 = vpop.eup %4477  ;;  %v1700_v11 = vadd.f32 1.0, %v4476_v51 }
 0x421   :  { %v4480_v45 = vpop.eup %4479  ;;  %v1694_v44 = vadd.f32 1.0, %v4478_v42 }
 0x422   :  { %v4482_v10 = vpop.eup %4481  ;;  %v1696_v24 = vadd.f32 1.0, %v4480_v45  ;;  %4503 = vrcp.f32 %v1700_v11  ;;  %v1744_v11 = vrot.slane %v1742_v29, 5 }
 0x423   :  { %v4484_v16 = vpop.eup %4483  ;;  %v1698_v30 = vadd.f32 1.0, %v4482_v10  ;;  %4505 = vrcp.f32 %v1694_v44  ;;  %v1745_v10 = vrot.slane %v1742_v29, 6 }
 0x424   :  { %v4486_v35 = vpop.eup %4485  ;;  %v1702_v13 = vadd.f32 1.0, %v4484_v16  ;;  %4507 = vrcp.f32 %v1696_v24  ;;  %v1746_v16 = vrot.slane %v1742_v29, 7 }
 0x425   :  { %v4488_v54 = vpop.eup %4487  ;;  %v1704_v27 = vadd.f32 1.0, %v4486_v35  ;;  %4509 = vrcp.f32 %v1698_v30 }
 0x426   :  { %v4490_v21 = vpop.eup %4489  ;;  %v1706_v59 = vadd.f32 1.0, %v4488_v54  ;;  %4511 = vrcp.f32 %v1702_v13 }
 0x427   :  { %v1708_v33 = vadd.f32 1.0, %v4490_v21  ;;  %4513 = vrcp.f32 %v1704_v27  ;;  %v4492_v28 = vpop.eup %4491  ;;  %v1748_v27 = vrot.slane %v1742_v29, 2 }
 0x428   :  { %4515 = vrcp.f32 %v1706_v59  ;;  %v4494_v47 = vpop.eup %4493  ;;  %v1695_v63 = vadd.f32 1.0, %v4492_v28 }
 0x429   :  { %4517 = vrcp.f32 %v1708_v33  ;;  %v4496_v61 = vpop.eup %4495  ;;  %v1697_v23 = vadd.f32 1.0, %v4494_v47  ;;  %v1749_v33 = vrot.slane %v1742_v29, 3 }
 0x42a   :  { %4519 = vpow2.f32 %v3770_v7  ;;  %v4498_v18 = vpop.eup %4497  ;;  %v1699_v25 = vadd.f32 1.0, %v4496_v61 }
 0x42b   :  { %4521 = vpow2.f32 %v3772_v15  ;;  %v4500_v1 = vpop.eup %4499  ;;  %v1701_v36 = vadd.f32 1.0, %v4498_v18 }
 0x42c   :  { %v4502_v51 = vpop.eup %4501  ;;  %v1703_v56 = vadd.f32 1.0, %v4500_v1  ;;  %4523 = vrcp.f32 %v1695_v63  ;;  %v1750_v63 = vrot.slane %v1742_v29, 4 }
 0x42d   :  { %v1705_v45 = vadd.f32 1.0, %v4502_v51  ;;  %4525 = vrcp.f32 %v1697_v23 }
 0x42e   :  { %4527 = vrcp.f32 %v1701_v36 }
 0x42f   :  { %v4504_v42 = vpop.eup %4503  ;;  %4529 = vrcp.f32 %v1699_v25  ;;  %v6717_v25 = vld [vmem:[#allocation19_spill] sm:$0xff] }
 0x430   :  { %v4506_v44 = vpop.eup %4505  ;;  %v1762_v24 = vmul.f32 %v4504_v42, %v1742_v29  ;;  %4531 = vrcp.f32 %v1703_v56  ;;  %v6718_v42 = vld [vmem:[#allocation20_spill] sm:$0xff] }
 0x431   :  { %v4508_v17 = vpop.eup %4507  ;;  %v1759_v58 = vmul.f32 %v4506_v44, %v1744_v11  ;;  %4533 = vrcp.f32 %v1705_v45 }
 0x432   :  { %v4510_v30 = vpop.eup %4509  ;;  %v1760_v35 = vmul.f32 %v4508_v17, %v1745_v10  ;;  %v1770_v13 = vadd.f32 %v1762_v24, %v6678_v34  ;;  %v6719_v10 = vld [vmem:[#allocation21_spill] sm:$0xff]  ;;  %v6720_v17 = vld [vmem:[#allocation22_spill] sm:$0xff] }
 0x433   :  { %v4512_v54 = vpop.eup %4511  ;;  %v1761_v21 = vmul.f32 %v4510_v30, %v1746_v16  ;;  %v1767_v59 = vadd.f32 %v1759_v58, %v5337_v52 }
 0x434   :  { %v4514_v7 = vpop.eup %4513  ;;  %v1763_v15 = vmul.f32 %v4512_v54, %v1747_v43  ;;  %v1768_v28 = vadd.f32 %v1760_v35, %v5343_v46  ;;  %4535 = vtanh.f32 %v1770_v13 }
 0x435   :  { %v4516_v47 = vpop.eup %4515  ;;  %v1764_v61 = vmul.f32 %v4514_v7, %v1748_v27  ;;  %v1769_v23 = vadd.f32 %v1761_v21, %v5334_v26  ;;  %4537 = vtanh.f32 %v1767_v59  ;;  %v1809_v27 = vrot.slane %v5724_v31, 7 }
 0x436   :  { %v4518_v18 = vpop.eup %4517  ;;  %v1765_v1 = vmul.f32 %v4516_v47, %v1749_v33  ;;  %v1771_v36 = vadd.f32 %v1763_v15, %v6717_v25  ;;  %4539 = vtanh.f32 %v1768_v28  ;;  %v1810_v21 = vrot.slane %v5731_v4, 7 }
 0x437   :  { %v4520_v51 = vpop.eup %4519  ;;  %4541 = vtanh.f32 %v1769_v23  ;;  %v1766_v56 = vmul.f32 %v4518_v18, %v1750_v63  ;;  %v1772_v11 = vadd.f32 %v1764_v61, %v6718_v42  ;;  %v1807_v33 = vrot.slane %v5726_v50, 7 }
 0x438   :  { %v4522_v45 = vpop.eup %4521  ;;  %4543 = vtanh.f32 %v1771_v36  ;;  %v1707_v44 = vadd.f32 1.0, %v4520_v51  ;;  %v1773_v24 = vadd.f32 %v1765_v1, %v6719_v10  ;;  %v1808_v15 = vrot.slane %v5729_v20, 7 }
 0x439   :  { %v1709_v29 = vadd.f32 1.0, %v4522_v45  ;;  %v1774_v16 = vadd.f32 %v1766_v56, %v6720_v17  ;;  %4545 = vtanh.f32 %v1772_v11  ;;  %v4524_v58 = vpop.eup %4523  ;;  %v1811_v28 = vrot.slane %v5735_v60, 7 }
 0x43a   :  { %4547 = vrcp.f32 %v1707_v44  ;;  %v4526_v30 = vpop.eup %4525  ;;  %v1783_v47 = vsub.f32 1.0, %v4524_v58  ;;  %v1812_v61 = vrot.slane %v5741_v53, 7  ;;  %v1813_v31 = vrot.slane %v5749_v49, 7 }
 0x43b   :  { %4549 = vrcp.f32 %v1709_v29  ;;  %v4528_v43 = vpop.eup %4527  ;;  %v1784_v23 = vsub.f32 1.0, %v4526_v30  ;;  %v1823_v56 = vmul.f32 %v4524_v58, %v1807_v33  ;;  %v1824_v44 = vmul.f32 %v4526_v30, %v1808_v15 }
 0x43c   :  { %4551 = vtanh.f32 %v1773_v24  ;;  %v4530_v35 = vpop.eup %4529  ;;  %v1786_v59 = vsub.f32 1.0, %v4528_v43  ;;  %v1826_v1 = vmul.f32 %v4528_v43, %v1810_v21  ;;  %v1814_v43 = vrot.slane %v5751_v8, 7 }
 0x43d   :  { %4553 = vtanh.f32 %v1774_v16  ;;  %v4532_v13 = vpop.eup %4531  ;;  %v1785_v51 = vsub.f32 1.0, %v4530_v35  ;;  %v1825_v16 = vmul.f32 %v4530_v35, %v1809_v27 }
 0x43e   :  { %v4534_v54 = vpop.eup %4533  ;;  %v1787_v45 = vsub.f32 1.0, %v4532_v13  ;;  %v1827_v49 = vmul.f32 %v4532_v13, %v1811_v28 }
 0x43f   :  { %v1788_v24 = vsub.f32 1.0, %v4534_v54 }
 0x441   :  { %v4536_v7 = vpop.eup %4535 }
 0x442   :  { %v4538_v63 = vpop.eup %4537  ;;  %v1794_v18 = vmul.f32 %v4536_v7, %v1786_v59 }
 0x443   :  { %v4540_v36 = vpop.eup %4539  ;;  %v1791_v4 = vmul.f32 %v4538_v63, %v1783_v47  ;;  %v1828_v47 = vmul.f32 %v4534_v54, %v1812_v61 }
 0x444   :  { %v4542_v11 = vpop.eup %4541  ;;  %v1792_v50 = vmul.f32 %v4540_v36, %v1784_v23  ;;  %v5849_v20 = vadd.f32 %v1826_v1, %v1794_v18 }
 0x445   :  { %v4544_v60 = vpop.eup %4543  ;;  %v1793_v29 = vmul.f32 %v4542_v11, %v1785_v51  ;;  %v5851_v53 = vadd.f32 %v1823_v56, %v1791_v4 }
 0x446   :  { %v4546_v59 = vpop.eup %4545  ;;  %v1795_v21 = vmul.f32 %v4544_v60, %v1787_v45  ;;  %v5854_v7 = vadd.f32 %v1824_v44, %v1792_v50  ;;  %v1842_v8 = vpack.c.bf16 %v5849_v20, %v5849_v20 }
 0x447   :  { %v4548_v58 = vpop.eup %4547  ;;  %v1796_v33 = vmul.f32 %v4546_v59, %v1788_v24  ;;  %v5856_v63 = vadd.f32 %v1825_v16, %v1793_v29  ;;  %v1839_v30 = vpack.c.bf16 %v5851_v53, %v5851_v53 }
 0x448   :  { %v4550_v15 = vpop.eup %4549  ;;  %v1789_v23 = vsub.f32 1.0, %v4548_v58  ;;  %v5860_v35 = vadd.f32 %v1827_v49, %v1795_v21  ;;  %v1840_v27 = vpack.c.bf16 %v5854_v7, %v5854_v7  ;;  %v1829_v18 = vmul.f32 %v4548_v58, %v1813_v31 }
 0x449   :  { %v4552_v13 = vpop.eup %4551  ;;  %v1790_v28 = vsub.f32 1.0, %v4550_v15  ;;  %v5866_v1 = vadd.f32 %v1828_v47, %v1796_v33  ;;  %v1841_v54 = vpack.c.bf16 %v5856_v63, %v5856_v63  ;;  %v1855_v4 = vunpack.c.l.b16 %v1839_v30 }
 0x44a   :  { %v4554_v61 = vpop.eup %4553  ;;  %v1797_v36 = vmul.f32 %v4552_v13, %v1789_v23  ;;  %v1843_v51 = vpack.c.bf16 %v5860_v35, %v5860_v35  ;;  %v1856_v56 = vunpack.c.l.b16 %v1840_v27  ;;  %v1830_v45 = vmul.f32 %v4550_v15, %v1814_v43 }
 0x44b   :  { %v1798_v11 = vmul.f32 %v4554_v61, %v1790_v28  ;;  %v1844_v50 = vpack.c.bf16 %v5866_v1, %v5866_v1  ;;  %v1857_v44 = vunpack.c.l.b16 %v1841_v54  ;;  %v1863_v24 = vrot.slane %v1855_v4, 3  ;;  %v5892_v4 = vld [vmem:[%s6569_s1 + $0xd8] ss:$12 sps:$4 sm:$0xff]  }
 0x44c   :  { %v5874_v60 = vadd.f32 %v1829_v18, %v1797_v36  ;;  %v1859_v31 = vunpack.c.l.b16 %v1843_v51  ;;  %v1864_v29 = vrot.slane %v1856_v56, 2  ;;  %v1858_v58 = vunpack.c.l.b16 %v1842_v8  ;;  %v5898_v56 = vld [vmem:[%s6569_s1 + $0xe0] ss:$12 sps:$4 sm:$0xff]  }
 0x44d   :  { %v5876_v16 = vadd.f32 %v1830_v45, %v1798_v11  ;;  %v1860_v59 = vunpack.c.l.b16 %v1844_v50  ;;  %v1866_v21 = vrot.slane %v1857_v44, 1  ;;  %v5904_v11 = vld [vmem:[%s6569_s1 + $0xc4] ss:$12 sps:$4 sm:$0xff]   ;;  %v5914_v45 = vld [vmem:[%s6569_s1 + $0xc0] ss:$12 sps:$4 sm:$0xff]  }
 0x44e   :  { %v1845_v49 = vpack.c.bf16 %v5874_v60, %v5874_v60  ;;  %v1865_v33 = vsel %vm771_vm2, %v1864_v29, %v1863_v24  ;;  %v1869_v30 = vrot.slane %v1859_v31, 7  ;;  %v5920_v50 = vld [vmem:[%s6569_s1 + $0xc8] ss:$12 sps:$4 sm:$0xff]   ;;  %v5926_v44 = vld [vmem:[%s6569_s1 + $0xac] ss:$12 sps:$4 sm:$0xff]  }
 0x44f   :  { %v1846_v43 = vpack.c.bf16 %v5876_v16, %v5876_v16  ;;  %v1867_v47 = vsel %vm774_vm3, %v1866_v21, %v1865_v33  ;;  %v1871_v27 = vrot.slane %v1860_v59, 6  ;;  %v5933_v31 = vld [vmem:[%s6569_s1 + $0xa8] ss:$12 sps:$4 sm:$0xff]   ;;  %v5939_v24 = vld [vmem:[%s6569_s1 + $0xb0] ss:$12 sps:$4 sm:$0xff]  }
 0x450   :  { %v1861_v15 = vunpack.c.l.b16 %v1845_v49  ;;  %v1868_v23 = vsel %vm777_vm4, %v1858_v58, %v1867_v47  ;;  %6721 = vst [vmem:[#allocation5_spill] sm:$0xff] %v5933_v31  ;;  %6722 = vst [vmem:[#allocation6_spill] sm:$0xff] %v5939_v24  ;;  %v5945_v29 = vld [vmem:[%s6569_s1 + $0x94] ss:$12 sps:$4 sm:$0xff]   ;;  %v5952_v59 = vld [vmem:[%s6569_s1 + $0x90] ss:$12 sps:$4 sm:$0xff]  }
 0x451   :  { %v1862_v13 = vunpack.c.l.b16 %v1846_v43  ;;  %v1870_v28 = vsel %vm780_vm5, %v1869_v30, %v1868_v23  ;;  %6723 = vst [vmem:[#allocation9_spill] sm:$0xff] %v5945_v29  ;;  %6724 = vst [vmem:[#allocation7_spill] sm:$0xff] %v5952_v59  ;;  %v5958_v21 = vld [vmem:[%s6569_s1 + $0x98] ss:$12 sps:$4 sm:$0xff]   ;;  %v5964_v49 = vld [vmem:[%s6569_s1 + $0x7c] ss:$12 sps:$4 sm:$0xff]  }
 0x452   :  { %v1872_v18 = vsel %vm783_vm6, %v1871_v27, %v1870_v28  ;;  %v1873_v54 = vrot.slane %v1861_v15, 5  ;;  %6725 = vst [vmem:[#allocation8_spill] sm:$0xff] %v5958_v21  ;;  %6726 = vst [vmem:[#allocation10_spill] sm:$0xff] %v5964_v49  ;;  %v5971_v58 = vld [vmem:[%s6569_s1 + $0x78] ss:$12 sps:$4 sm:$0xff]  }
 0x453   :  { %v1875_v61 = vrot.slane %v1862_v13, 4  ;;  %6727 = vst [vmem:[#allocation15_spill] sm:$0xff] %v5971_v58  ;;  %v5977_v33 = vld [vmem:[%s6569_s1 + $0x80] ss:$12 sps:$4 sm:$0xff]   ;;  %v5983_v43 = vld [vmem:[%s6569_s1 + $0x64] ss:$12 sps:$4 sm:$0xff]  }
 0x454   :  { %v1874_v8 = vsel %vm786_vm7, %v1873_v54, %v1872_v18  ;;  %6728 = vst [vmem:[#allocation17_spill] sm:$0xff] %v5977_v33  ;;  %6729 = vst [vmem:[#allocation13_spill] sm:$0xff] %v5983_v43  ;;  %v5990_v47 = vld [vmem:[%s6569_s1 + $0x60] ss:$12 sps:$4 sm:$0xff]   ;;  %v5996_v30 = vld [vmem:[%s6569_s1 + $0x68] ss:$12 sps:$4 sm:$0xff]  }
 0x455   :  { %v1876_v36 = vsel %vm789_vm8, %v1875_v61, %v1874_v8  ;;  %6730 = vst [vmem:[#allocation23_spill] sm:$0xff] %v5990_v47  ;;  %6731 = vst [vmem:[#allocation24_spill] sm:$0xff] %v5996_v30  ;;  %v6002_v15 = vld [vmem:[%s6569_s1 + $0x4c] ss:$12 sps:$4 sm:$0xff]   ;;  %v6009_v23 = vld [vmem:[%s6569_s1 + $0x48] ss:$12 sps:$4 sm:$0xff]  }
 0x456   :  { %v1877_v51 = vpack.c.b16 %v1876_v36, %v1876_v36  ;;  %6732 = vst [vmem:[#allocation25_spill] sm:$0xff] %v6002_v15  ;;  %6733 = vst [vmem:[#allocation26_spill] sm:$0xff] %v6009_v23  ;;  %v6015_v27 = vld [vmem:[%s6569_s1 + $0x50] ss:$12 sps:$4 sm:$0xff]   ;;  %v6021_v13 = vld [vmem:[%s6569_s1 + $0x34] ss:$12 sps:$4 sm:$0xff]  }
 0x457   :  { %6734 = vst [vmem:[#allocation27_spill] sm:$0xff] %v6015_v27  ;;  %6735 = vst [vmem:[#allocation28_spill] sm:$0xff] %v6021_v13  ;;  %v6028_v28 = vld [vmem:[%s6569_s1 + $0x30] ss:$12 sps:$4 sm:$0xff]   ;;  %v6034_v18 = vld [vmem:[%s6569_s1 + $0x38] ss:$12 sps:$4 sm:$0xff]  }
 0x458   :  { %1912 = vmatmul.mubr.bf16.vlgmr.msra.gmra.mxu0 %v1877_v51  ;;  %4062 = vmatmul.mubr.bf16.vlgmr.msra.gmra.mxu1 %v1877_v51  ;;  %6736 = vst [vmem:[#allocation29_spill] sm:$0xff] %v6028_v28  ;;  %6737 = vst [vmem:[#allocation12_spill] sm:$0xff] %v6034_v18 }
 0x459   :  { %2242 = vmatpush1.bf16.msra.mxu0 %v5892_v4  ;;  %4066 = vmatpush3.bf16.msra.mxu1 %v5898_v56 }
 0x45a   :  { %2243 = vmatprep.subr.bf16.mxu0 %v5904_v11  ;;  %4067 = vmatprep.subr.bf16.mxu1 %v6666_v48 }
 0x45b   :  { %2273 = vmatprep.mubr.bf16.mxu0 %v6667_v6  ;;  %4081 = vmatprep.mubr.msk.bf16.mxu1 %vm4974_vm1, %v6666_v48 }
 0x45d   :  { %2244 = vmatpush1.bf16.msra.mxu0 %v5914_v45  ;;  %4068 = vmatpush3.bf16.msra.mxu1 %v5920_v50 }
 0x45e   :  { %2245 = vmatprep.subr.bf16.mxu0 %v5926_v44  ;;  %4069 = vmatprep.subr.bf16.mxu1 %v6666_v48 }
 0x461   :  { %2246 = vmatpush1.bf16.msra.mxu0 %v5933_v31  ;;  %4070 = vmatpush3.bf16.msra.mxu1 %v5939_v24 }
 0x462   :  { %2247 = vmatprep.subr.bf16.mxu0 %v5945_v29  ;;  %4071 = vmatprep.subr.bf16.mxu1 %v6666_v48 }
 0x465   :  { %2248 = vmatpush1.bf16.msra.mxu0 %v5952_v59  ;;  %4072 = vmatpush3.bf16.msra.mxu1 %v5958_v21 }
 0x466   :  { %2249 = vmatprep.subr.bf16.mxu0 %v5964_v49  ;;  %4073 = vmatprep.subr.bf16.mxu1 %v6666_v48 }
 0x469   :  { %2250 = vmatpush1.bf16.msra.mxu0 %v5971_v58  ;;  %4074 = vmatpush3.bf16.msra.mxu1 %v5977_v33 }
 0x46a   :  { %2251 = vmatprep.subr.bf16.mxu0 %v5983_v43  ;;  %4075 = vmatprep.subr.bf16.mxu1 %v6666_v48 }
 0x46d   :  { %2252 = vmatpush1.bf16.msra.mxu0 %v5990_v47  ;;  %4076 = vmatpush3.bf16.msra.mxu1 %v5996_v30 }
 0x46e   :  { %2253 = vmatprep.subr.bf16.mxu0 %v6002_v15  ;;  %4077 = vmatprep.subr.bf16.mxu1 %v6666_v48 }
 0x471   :  { %2254 = vmatpush1.bf16.msra.mxu0 %v6009_v23  ;;  %4078 = vmatpush3.bf16.msra.mxu1 %v6015_v27 }
 0x472   :  { %2255 = vmatprep.subr.bf16.mxu0 %v6021_v13  ;;  %4079 = vmatprep.subr.bf16.mxu1 %v6666_v48 }
 0x475   :  { %2256 = vmatpush1.bf16.msra.mxu0 %v6028_v28  ;;  %4080 = vmatpush3.bf16.msra.mxu1 %v6034_v18 }
 0x476   :  { %2603 = vmatprep.subr.bf16.mxu0 %v5800_v62  ;;  %4085 = vmatprep.subr.bf16.mxu1 %v6666_v48 }
 0x518   :  { %v1913_v54 = vpop.f32.mrf.mxu0  ;;  %v6039_v61 = vpop.f32.mrf.mxu1 }
 0x519   :  { %v1962_v8 = vrot.slane %v1913_v54, 4  ;;  %v1964_v36 = vrot.slane %v1913_v54, 5  ;;  %v1966_v51 = vrot.slane %v1913_v54, 6  ;;  %v1968_v13 = vrot.slane %v1913_v54, 7 }
 0x51a   :  { %v1970_v27 = vrot.slane %v1913_v54, 1  ;;  %v1972_v28 = vrot.slane %v1913_v54, 2  ;;  %v1974_v23 = vrot.slane %v1913_v54, 3  ;;  %v2000_v15 = vadd.f32 %v1913_v54, %v5282_v14  ;;  %v6042_v30 = vpop.f32.mrf.mxu0  ;;  %v4063_v47 = vpop.f32.mrf.mxu1 }
 0x51b   :  { %v1992_v18 = vadd.f32 %v1962_v8, %v6715_v9  ;;  %v1994_v62 = vadd.f32 %v1964_v36, %v5265_v0  ;;  %v1996_v43 = vadd.f32 %v1966_v51, %v6716_v57  ;;  %v1998_v33 = vadd.f32 %v1968_v13, %v6675_v55 }
 0x51c   :  { %v2002_v58 = vadd.f32 %v1970_v27, %v6676_v2  ;;  %v2004_v49 = vadd.f32 %v1972_v28, %v5292_v38  ;;  %v3781_v21 = vmul.f32 -1.442695, %v2000_v15  ;;  %v1917_v59 = vpop.f32.mrf.mxu0  ;;  %v1957_v29 = vpop.f32.mrf.mxu1  ;;  %v2006_v54 = vadd.f32 %v1974_v23, %v5297_v40 }
 0x51d   :  { %v3773_v14 = vmul.f32 -1.442695, %v1992_v18  ;;  %v3775_v24 = vmul.f32 -1.442695, %v1994_v62  ;;  %v3777_v47 = vmul.f32 -1.442695, %v1996_v43 }
 0x51e   :  { %v3779_v31 = vmul.f32 -1.442695, %v1998_v33  ;;  %4555 = vpow2.f32 %v3781_v21  ;;  %v1918_v8 = vpop.f32.mrf.mxu0  ;;  %v4064_v36 = vpop.f32.mrf.mxu1  ;;  %v3783_v51 = vmul.f32 -1.442695, %v2002_v58  ;;  %v3785_v13 = vmul.f32 -1.442695, %v2004_v49 }
 0x51f   :  { %4557 = vpow2.f32 %v3773_v14  ;;  %v3787_v27 = vmul.f32 -1.442695, %v2006_v54  ;;  %v1963_v28 = vrot.slane %v6042_v30, 4  ;;  %v1965_v29 = vrot.slane %v6042_v30, 5 }
 0x520   :  { %4559 = vpow2.f32 %v3775_v24  ;;  %v1967_v59 = vrot.slane %v6042_v30, 6  ;;  %v1969_v15 = vrot.slane %v6042_v30, 7  ;;  %v1971_v21 = vrot.slane %v6042_v30, 1 }
 0x521   :  { %4561 = vpow2.f32 %v3777_v47  ;;  %v1993_v14 = vadd.f32 %v1963_v28, %v6677_v22  ;;  %v1995_v24 = vadd.f32 %v1965_v29, %v5270_v3  ;;  %v1973_v8 = vrot.slane %v6042_v30, 2 }
 0x522   :  { %4563 = vpow2.f32 %v3779_v31  ;;  %v1997_v49 = vadd.f32 %v1967_v59, %v5275_v5  ;;  %v1999_v58 = vadd.f32 %v1969_v15, %v5280_v12  ;;  %v2001_v31 = vadd.f32 %v6042_v30, %v5285_v19 }
 0x523   :  { %4565 = vpow2.f32 %v3783_v51  ;;  %v2003_v33 = vadd.f32 %v1971_v21, %v5290_v37  ;;  %v3774_v43 = vmul.f32 -1.442695, %v1993_v14  ;;  %v3776_v23 = vmul.f32 -1.442695, %v1995_v24 }
 0x524   :  { %4567 = vpow2.f32 %v3785_v13  ;;  %v3778_v18 = vmul.f32 -1.442695, %v1997_v49  ;;  %v3780_v62 = vmul.f32 -1.442695, %v1999_v58  ;;  %v3782_v54 = vmul.f32 -1.442695, %v2001_v31 }
 0x525   :  { %4569 = vpow2.f32 %v3787_v27  ;;  %v3784_v47 = vmul.f32 -1.442695, %v2003_v33  ;;  %v1975_v51 = vrot.slane %v6042_v30, 3  ;;  %v2005_v21 = vadd.f32 %v1973_v8, %v5295_v39 }
 0x526   :  { %4571 = vpow2.f32 %v3774_v43 }
 0x527   :  { %4573 = vpow2.f32 %v3776_v23  ;;  %v2007_v49 = vadd.f32 %v1975_v51, %v5319_v32 }
 0x528   :  { %4575 = vpow2.f32 %v3778_v18  ;;  %v3786_v18 = vmul.f32 -1.442695, %v2005_v21 }
 0x529   :  { %4577 = vpow2.f32 %v3780_v62 }
 0x52a   :  { %4579 = vpow2.f32 %v3782_v54  ;;  %v3788_v54 = vmul.f32 -1.442695, %v2007_v49 }
 0x52b   :  { %v4556_v36 = vpop.eup %4555  ;;  %4581 = vpow2.f32 %v3784_v47 }
 0x52c   :  { %v4558_v13 = vpop.eup %4557  ;;  %v2064_v27 = vadd.f32 1.0, %v4556_v36 }
 0x52d   :  { %v4560_v28 = vpop.eup %4559  ;;  %v2056_v29 = vadd.f32 1.0, %v4558_v13  ;;  %v2104_v13 = vadd.f32 %v6039_v61, %v5326_v41 }
 0x52e   :  { %v4562_v59 = vpop.eup %4561  ;;  %v2058_v15 = vadd.f32 1.0, %v4560_v28  ;;  %4583 = vrcp.f32 %v2064_v27 }
 0x52f   :  { %v4564_v14 = vpop.eup %4563  ;;  %v2060_v24 = vadd.f32 1.0, %v4562_v59  ;;  %4585 = vrcp.f32 %v2056_v29  ;;  %v2106_v49 = vrot.slane %v2104_v13, 4 }
 0x530   :  { %v4566_v58 = vpop.eup %4565  ;;  %v2062_v31 = vadd.f32 1.0, %v4564_v14  ;;  %4587 = vrcp.f32 %v2058_v15 }
 0x531   :  { %v4568_v30 = vpop.eup %4567  ;;  %v2066_v33 = vadd.f32 1.0, %v4566_v58  ;;  %4589 = vrcp.f32 %v2060_v24 }
 0x532   :  { %v4570_v43 = vpop.eup %4569  ;;  %v2068_v23 = vadd.f32 1.0, %v4568_v30  ;;  %4591 = vrcp.f32 %v2062_v31  ;;  %v2107_v30 = vrot.slane %v2104_v13, 5 }
 0x533   :  { %v2070_v62 = vadd.f32 1.0, %v4570_v43  ;;  %4593 = vrcp.f32 %v2066_v33  ;;  %v4572_v47 = vpop.eup %4571 }
 0x534   :  { %4595 = vrcp.f32 %v2068_v23  ;;  %v4574_v8 = vpop.eup %4573  ;;  %v2057_v36 = vadd.f32 1.0, %v4572_v47  ;;  %v2108_v23 = vrot.slane %v2104_v13, 6 }
 0x535   :  { %4597 = vrcp.f32 %v2070_v62  ;;  %v4576_v51 = vpop.eup %4575  ;;  %v2059_v27 = vadd.f32 1.0, %v4574_v8  ;;  %v2109_v62 = vrot.slane %v2104_v13, 7 }
 0x536   :  { %4599 = vpow2.f32 %v3786_v18  ;;  %v4578_v28 = vpop.eup %4577  ;;  %v2061_v59 = vadd.f32 1.0, %v4576_v51 }
 0x537   :  { %4601 = vpow2.f32 %v3788_v54  ;;  %v4580_v29 = vpop.eup %4579  ;;  %v2063_v21 = vadd.f32 1.0, %v4578_v28 }
 0x538   :  { %v4582_v15 = vpop.eup %4581  ;;  %v2065_v14 = vadd.f32 1.0, %v4580_v29  ;;  %4603 = vrcp.f32 %v2057_v36  ;;  %v2110_v36 = vrot.slane %v2104_v13, 1  ;;  %v2111_v29 = vrot.slane %v2104_v13, 2 }
 0x539   :  { %v2067_v58 = vadd.f32 1.0, %v4582_v15  ;;  %4605 = vrcp.f32 %v2059_v27 }
 0x53a   :  { %4607 = vrcp.f32 %v2065_v14 }
 0x53b   :  { %v4584_v24 = vpop.eup %4583  ;;  %4609 = vrcp.f32 %v2061_v59  ;;  %v2112_v59 = vrot.slane %v2104_v13, 3 }
 0x53c   :  { %v4586_v31 = vpop.eup %4585  ;;  %v2125_v33 = vmul.f32 %v4584_v24, %v2104_v13  ;;  %4611 = vrcp.f32 %v2063_v21 }
 0x53d   :  { %v4588_v43 = vpop.eup %4587  ;;  %v2121_v61 = vmul.f32 %v4586_v31, %v2106_v49  ;;  %4613 = vrcp.f32 %v2067_v58 }
 0x53e   :  { %v4590_v18 = vpop.eup %4589  ;;  %v2122_v54 = vmul.f32 %v4588_v43, %v2107_v30  ;;  %v2133_v47 = vadd.f32 %v2125_v33, %v6717_v25 }
 0x53f   :  { %v4592_v8 = vpop.eup %4591  ;;  %v2123_v51 = vmul.f32 %v4590_v18, %v2108_v23  ;;  %v2129_v28 = vadd.f32 %v2121_v61, %v5337_v52 }
 0x540   :  { %v4594_v27 = vpop.eup %4593  ;;  %v2124_v15 = vmul.f32 %v4592_v8, %v2109_v62  ;;  %v2130_v14 = vadd.f32 %v2122_v54, %v5343_v46  ;;  %4615 = vtanh.f32 %v2133_v47 }
 0x541   :  { %v4596_v24 = vpop.eup %4595  ;;  %v2126_v49 = vmul.f32 %v4594_v27, %v2110_v36  ;;  %v2131_v31 = vadd.f32 %v2123_v51, %v5334_v26  ;;  %4617 = vtanh.f32 %v2129_v28 }
 0x542   :  { %v4598_v30 = vpop.eup %4597  ;;  %v2127_v21 = vmul.f32 %v4596_v24, %v2111_v29  ;;  %v2132_v33 = vadd.f32 %v2124_v15, %v6678_v34  ;;  %4619 = vtanh.f32 %v2130_v14  ;;  %v2172_v29 = vrot.slane %v5849_v20, 7 }
 0x543   :  { %v4600_v43 = vpop.eup %4599  ;;  %4621 = vtanh.f32 %v2131_v31  ;;  %v2128_v58 = vmul.f32 %v4598_v30, %v2112_v59  ;;  %v2134_v23 = vadd.f32 %v2126_v49, %v6718_v42  ;;  %v2173_v15 = vrot.slane %v5860_v35, 7 }
 0x544   :  { %v4602_v61 = vpop.eup %4601  ;;  %4623 = vtanh.f32 %v2132_v33  ;;  %v2069_v18 = vadd.f32 1.0, %v4600_v43  ;;  %v2135_v62 = vadd.f32 %v2127_v21, %v6719_v10  ;;  %v2169_v59 = vrot.slane %v5851_v53, 7 }
 0x545   :  { %v2071_v13 = vadd.f32 1.0, %v4602_v61  ;;  %v2136_v54 = vadd.f32 %v2128_v58, %v6720_v17  ;;  %4625 = vtanh.f32 %v2134_v23  ;;  %v4604_v47 = vpop.eup %4603  ;;  %v2170_v49 = vrot.slane %v5854_v7, 7 }
 0x546   :  { %4627 = vrcp.f32 %v2069_v18  ;;  %v4606_v8 = vpop.eup %4605  ;;  %v2171_v31 = vrot.slane %v5856_v63, 7  ;;  %v2145_v30 = vsub.f32 1.0, %v4604_v47  ;;  %v2174_v33 = vrot.slane %v5866_v1, 7 }
 0x547   :  { %4629 = vrcp.f32 %v2071_v13  ;;  %v4608_v36 = vpop.eup %4607  ;;  %v2146_v43 = vsub.f32 1.0, %v4606_v8  ;;  %v2175_v20 = vrot.slane %v5874_v60, 7  ;;  %v2186_v17 = vmul.f32 %v4606_v8, %v2170_v49 }
 0x548   :  { %4631 = vtanh.f32 %v2135_v62  ;;  %v4610_v51 = vpop.eup %4609  ;;  %v2149_v14 = vsub.f32 1.0, %v4608_v36  ;;  %v2189_v23 = vmul.f32 %v4608_v36, %v2173_v15  ;;  %v2185_v62 = vmul.f32 %v4604_v47, %v2169_v59 }
 0x549   :  { %4633 = vtanh.f32 %v2136_v54  ;;  %v4612_v28 = vpop.eup %4611  ;;  %v2147_v18 = vsub.f32 1.0, %v4610_v51  ;;  %v2187_v34 = vmul.f32 %v4610_v51, %v2171_v31  ;;  %v2176_v36 = vrot.slane %v5876_v16, 7 }
 0x54a   :  { %v4614_v27 = vpop.eup %4613  ;;  %v2148_v54 = vsub.f32 1.0, %v4612_v28  ;;  %v2188_v60 = vmul.f32 %v4612_v28, %v2172_v29 }
 0x54b   :  { %v2150_v10 = vsub.f32 1.0, %v4614_v27 }
 0x54d   :  { %v4616_v24 = vpop.eup %4615 }
 0x54e   :  { %v4618_v21 = vpop.eup %4617  ;;  %v2157_v58 = vmul.f32 %v4616_v24, %v2149_v14 }
 0x54f   :  { %v4620_v61 = vpop.eup %4619  ;;  %v2153_v35 = vmul.f32 %v4618_v21, %v2145_v30  ;;  %v2190_v30 = vmul.f32 %v4614_v27, %v2174_v33 }
 0x550   :  { %v4622_v13 = vpop.eup %4621  ;;  %v2154_v53 = vmul.f32 %v4620_v61, %v2146_v43  ;;  %v6084_v7 = vadd.f32 %v2189_v23, %v2157_v58 }
 0x551   :  { %v4624_v63 = vpop.eup %4623  ;;  %v2155_v25 = vmul.f32 %v4622_v13, %v2147_v18  ;;  %v6086_v1 = vadd.f32 %v2185_v62, %v2153_v35 }
 0x552   :  { %v4626_v14 = vpop.eup %4625  ;;  %v2156_v15 = vmul.f32 %v4624_v63, %v2148_v54  ;;  %v6089_v24 = vadd.f32 %v2186_v17, %v2154_v53  ;;  %v2205_v16 = vpack.c.bf16 %v6084_v7, %v6084_v7 }
 0x553   :  { %v4628_v47 = vpop.eup %4627  ;;  %v2158_v59 = vmul.f32 %v4626_v14, %v2150_v10  ;;  %v6091_v21 = vadd.f32 %v2187_v34, %v2155_v25  ;;  %v2201_v8 = vpack.c.bf16 %v6086_v1, %v6086_v1 }
 0x554   :  { %v4630_v49 = vpop.eup %4629  ;;  %v2151_v43 = vsub.f32 1.0, %v4628_v47  ;;  %v6095_v51 = vadd.f32 %v2188_v60, %v2156_v15  ;;  %v2202_v31 = vpack.c.bf16 %v6089_v24, %v6089_v24  ;;  %v2191_v29 = vmul.f32 %v4628_v47, %v2175_v20 }
 0x555   :  { %v4632_v17 = vpop.eup %4631  ;;  %v2152_v28 = vsub.f32 1.0, %v4630_v49  ;;  %v6101_v10 = vadd.f32 %v2190_v30, %v2158_v59  ;;  %v2203_v34 = vpack.c.bf16 %v6091_v21, %v6091_v21  ;;  %v2217_v58 = vunpack.c.l.b16 %v2201_v8 }
 0x556   :  { %v4634_v25 = vpop.eup %4633  ;;  %v2159_v27 = vmul.f32 %v4632_v17, %v2151_v43  ;;  %v2204_v33 = vpack.c.bf16 %v6095_v51, %v6095_v51  ;;  %v2218_v23 = vunpack.c.l.b16 %v2202_v31  ;;  %v2192_v18 = vmul.f32 %v4630_v49, %v2176_v36 }
 0x557   :  { %v2160_v61 = vmul.f32 %v4634_v25, %v2152_v28  ;;  %v2206_v35 = vpack.c.bf16 %v6101_v10, %v6101_v10  ;;  %v2219_v62 = vunpack.c.l.b16 %v2203_v34  ;;  %v2225_v54 = vrot.slane %v2217_v58, 4 }
 0x558   :  { %v6109_v13 = vadd.f32 %v2191_v29, %v2159_v27  ;;  %v2220_v20 = vunpack.c.l.b16 %v2204_v33  ;;  %v2226_v53 = vrot.slane %v2218_v23, 3  ;;  %v2221_v30 = vunpack.c.l.b16 %v2205_v16  ;;  %v6741_v16 = vld [vmem:[#allocation7_spill] sm:$0xff]  ;;  %v6742_v23 = vld [vmem:[#allocation8_spill] sm:$0xff] }
 0x559   :  { %v6111_v63 = vadd.f32 %v2192_v18, %v2160_v61  ;;  %v2222_v14 = vunpack.c.l.b16 %v2206_v35  ;;  %v2228_v15 = vrot.slane %v2219_v62, 2  ;;  %v6743_v61 = vld [vmem:[#allocation10_spill] sm:$0xff]  ;;  %v6747_v18 = vld [vmem:[#allocation23_spill] sm:$0xff]  ;;  %v6748_v35 = vld [vmem:[#allocation24_spill] sm:$0xff] }
 0x55a   :  { %v2207_v60 = vpack.c.bf16 %v6109_v13, %v6109_v13  ;;  %v2227_v47 = vsel %vm771_vm2, %v2226_v53, %v2225_v54  ;;  %v2230_v59 = vrot.slane %v2220_v20, 1  ;;  %v6749_v62 = vld [vmem:[#allocation25_spill] sm:$0xff]  ;;  %v6750_v20 = vld [vmem:[#allocation26_spill] sm:$0xff]  ;;  %v6751_v54 = vld [vmem:[#allocation27_spill] sm:$0xff] }
 0x55b   :  { %v2208_v36 = vpack.c.bf16 %v6111_v63, %v6111_v63  ;;  %v2229_v8 = vsel %vm774_vm3, %v2228_v15, %v2227_v47  ;;  %v2233_v31 = vrot.slane %v2222_v14, 7  ;;  %v6752_v53 = vld [vmem:[#allocation28_spill] sm:$0xff]  ;;  %v6753_v14 = vld [vmem:[#allocation29_spill] sm:$0xff] }
 0x55c   :  { %v2223_v49 = vunpack.c.l.b16 %v2207_v60  ;;  %v2231_v43 = vsel %vm777_vm4, %v2230_v59, %v2229_v8  ;;  %v6754_v15 = vld [vmem:[#allocation12_spill] sm:$0xff] }
 0x55d   :  { %v2224_v17 = vunpack.c.l.b16 %v2208_v36  ;;  %v2232_v28 = vsel %vm780_vm5, %v2221_v30, %v2231_v43  ;;  %v4923_v60 = vld [vmem:[%s6569_s1 + $0xdc] ss:$12 sps:$4 sm:$0xff]  }
 0x55e   :  { %v2234_v29 = vsel %vm783_vm6, %v2233_v31, %v2232_v28  ;;  %v2235_v34 = vrot.slane %v2223_v49, 6 }
 0x55f   :  { %v2237_v25 = vrot.slane %v2224_v17, 5 }
 0x560   :  { %v2236_v27 = vsel %vm786_vm7, %v2235_v34, %v2234_v29 }
 0x561   :  { %v2238_v33 = vsel %vm789_vm8, %v2237_v25, %v2236_v27 }
 0x562   :  { %v2239_v58 = vpack.c.b16 %v2238_v33, %v2238_v33 }
 0x564   :  { %2274 = vmatmul.mubr.bf16.vlgmr.msra.gmra.mxu0 %v2239_v58  ;;  %4082 = vmatmul.mubr.bf16.vlgmr.msra.gmra.mxu1 %v2239_v58 }
 0x565   :  { %2604 = vmatpush1.bf16.msra.mxu0 %v5892_v4  ;;  %4086 = vmatpush3.bf16.msra.mxu1 %v5898_v56  ;;  %v6738_v4 = vld [vmem:[#allocation5_spill] sm:$0xff]  ;;  %v6739_v56 = vld [vmem:[#allocation6_spill] sm:$0xff] }
 0x566   :  { %2605 = vmatprep.subr.bf16.mxu0 %v5904_v11  ;;  %4087 = vmatprep.subr.bf16.mxu1 %v6666_v48  ;;  %v6740_v11 = vld [vmem:[#allocation9_spill] sm:$0xff] }
 0x567   :  { %2635 = vmatprep.mubr.bf16.mxu0 %v6667_v6  ;;  %4101 = vmatprep.mubr.msk.bf16.mxu1 %vm4974_vm1, %v6666_v48 }
 0x569   :  { %2606 = vmatpush1.bf16.msra.mxu0 %v5914_v45  ;;  %4088 = vmatpush3.bf16.msra.mxu1 %v5920_v50  ;;  %v6744_v45 = vld [vmem:[#allocation15_spill] sm:$0xff]  ;;  %v6745_v50 = vld [vmem:[#allocation17_spill] sm:$0xff] }
 0x56a   :  { %2607 = vmatprep.subr.bf16.mxu0 %v5926_v44  ;;  %4089 = vmatprep.subr.bf16.mxu1 %v6666_v48  ;;  %v6746_v44 = vld [vmem:[#allocation13_spill] sm:$0xff] }
 0x56d   :  { %2608 = vmatpush1.bf16.msra.mxu0 %v6738_v4  ;;  %4090 = vmatpush3.bf16.msra.mxu1 %v6739_v56  ;;  %v6755_v4 = vld [vmem:[#allocation16_spill] sm:$0xff] }
 0x56e   :  { %2609 = vmatprep.subr.bf16.mxu0 %v6740_v11  ;;  %4091 = vmatprep.subr.bf16.mxu1 %v6666_v48 }
 0x571   :  { %2610 = vmatpush1.bf16.msra.mxu0 %v6741_v16  ;;  %4092 = vmatpush3.bf16.msra.mxu1 %v6742_v23 }
 0x572   :  { %2611 = vmatprep.subr.bf16.mxu0 %v6743_v61  ;;  %4093 = vmatprep.subr.bf16.mxu1 %v6666_v48 }
 0x575   :  { %2612 = vmatpush1.bf16.msra.mxu0 %v6744_v45  ;;  %4094 = vmatpush3.bf16.msra.mxu1 %v6745_v50 }
 0x576   :  { %2613 = vmatprep.subr.bf16.mxu0 %v6746_v44  ;;  %4095 = vmatprep.subr.bf16.mxu1 %v6666_v48 }
 0x579   :  { %2614 = vmatpush1.bf16.msra.mxu0 %v6747_v18  ;;  %4096 = vmatpush3.bf16.msra.mxu1 %v6748_v35 }
 0x57a   :  { %2615 = vmatprep.subr.bf16.mxu0 %v6749_v62  ;;  %4097 = vmatprep.subr.bf16.mxu1 %v6666_v48 }
 0x57d   :  { %2616 = vmatpush1.bf16.msra.mxu0 %v6750_v20  ;;  %4098 = vmatpush3.bf16.msra.mxu1 %v6751_v54 }
 0x57e   :  { %2617 = vmatprep.subr.bf16.mxu0 %v6752_v53  ;;  %4099 = vmatprep.subr.bf16.mxu1 %v6666_v48 }
 0x581   :  { %2618 = vmatpush1.bf16.msra.mxu0 %v6753_v14  ;;  %4100 = vmatpush3.bf16.msra.mxu1 %v6754_v15 }
 0x582   :  { %2965 = vmatprep.subr.bf16.mxu0 %v4923_v60  ;;  %4105 = vmatprep.subr.bf16.mxu1 %v6666_v48 }
 0x624   :  { %v2275_v47 = vpop.f32.mrf.mxu0  ;;  %v6161_v59 = vpop.f32.mrf.mxu1 }
 0x625   :  { %v2324_v36 = vrot.slane %v2275_v47, 3  ;;  %v2326_v30 = vrot.slane %v2275_v47, 4  ;;  %v2328_v8 = vrot.slane %v2275_v47, 5  ;;  %v2330_v49 = vrot.slane %v2275_v47, 6 }
 0x626   :  { %v2332_v43 = vrot.slane %v2275_v47, 7  ;;  %v2334_v31 = vrot.slane %v2275_v47, 1  ;;  %v2336_v17 = vrot.slane %v2275_v47, 2  ;;  %v2364_v28 = vadd.f32 %v2275_v47, %v6676_v2  ;;  %v6164_v29 = vpop.f32.mrf.mxu0  ;;  %v4083_v34 = vpop.f32.mrf.mxu1 }
 0x627   :  { %v2354_v25 = vadd.f32 %v2324_v36, %v6715_v9  ;;  %v2356_v27 = vadd.f32 %v2326_v30, %v5265_v0  ;;  %v2358_v33 = vadd.f32 %v2328_v8, %v6716_v57  ;;  %v2360_v58 = vadd.f32 %v2330_v49, %v6675_v55 }
 0x628   :  { %v2362_v56 = vadd.f32 %v2332_v43, %v6755_v4  ;;  %v2366_v11 = vadd.f32 %v2334_v31, %v5292_v38  ;;  %v3799_v16 = vmul.f32 -1.442695, %v2364_v28  ;;  %v2279_v23 = vpop.f32.mrf.mxu0  ;;  %v2319_v61 = vpop.f32.mrf.mxu1  ;;  %v2368_v45 = vadd.f32 %v2336_v17, %v5297_v40 }
 0x629   :  { %v3789_v50 = vmul.f32 -1.442695, %v2354_v25  ;;  %v3791_v44 = vmul.f32 -1.442695, %v2356_v27  ;;  %v3793_v18 = vmul.f32 -1.442695, %v2358_v33  ;;  %v2365_v28 = vadd.f32 %v6164_v29, %v5290_v37 }
 0x62a   :  { %v3795_v35 = vmul.f32 -1.442695, %v2360_v58  ;;  %4635 = vpow2.f32 %v3799_v16  ;;  %v2280_v62 = vpop.f32.mrf.mxu0  ;;  %v4084_v20 = vpop.f32.mrf.mxu1  ;;  %v3797_v54 = vmul.f32 -1.442695, %v2362_v56  ;;  %v3801_v53 = vmul.f32 -1.442695, %v2366_v11 }
 0x62b   :  { %4637 = vpow2.f32 %v3789_v50  ;;  %v3803_v14 = vmul.f32 -1.442695, %v2368_v45  ;;  %v2325_v15 = vrot.slane %v6164_v29, 3  ;;  %v2327_v60 = vrot.slane %v6164_v29, 4 }
 0x62c   :  { %4639 = vpow2.f32 %v3791_v44  ;;  %v2329_v47 = vrot.slane %v6164_v29, 5  ;;  %v2331_v36 = vrot.slane %v6164_v29, 6  ;;  %v2333_v30 = vrot.slane %v6164_v29, 7 }
 0x62d   :  { %4641 = vpow2.f32 %v3793_v18  ;;  %v2355_v8 = vadd.f32 %v2325_v15, %v6677_v22  ;;  %v2357_v49 = vadd.f32 %v2327_v60, %v5270_v3  ;;  %v3800_v56 = vmul.f32 -1.442695, %v2365_v28 }
 0x62e   :  { %4643 = vpow2.f32 %v3795_v35  ;;  %v2359_v43 = vadd.f32 %v2329_v47, %v5275_v5  ;;  %v2361_v31 = vadd.f32 %v2331_v36, %v5280_v12  ;;  %v2363_v17 = vadd.f32 %v2333_v30, %v5285_v19 }
 0x62f   :  { %4645 = vpow2.f32 %v3797_v54  ;;  %v3790_v34 = vmul.f32 -1.442695, %v2355_v8  ;;  %v3792_v25 = vmul.f32 -1.442695, %v2357_v49  ;;  %v2335_v11 = vrot.slane %v6164_v29, 1 }
 0x630   :  { %4647 = vpow2.f32 %v3801_v53  ;;  %v3794_v27 = vmul.f32 -1.442695, %v2359_v43  ;;  %v3796_v33 = vmul.f32 -1.442695, %v2361_v31  ;;  %v3798_v58 = vmul.f32 -1.442695, %v2363_v17 }
 0x631   :  { %4649 = vpow2.f32 %v3803_v14  ;;  %v2337_v23 = vrot.slane %v6164_v29, 2  ;;  %v2367_v62 = vadd.f32 %v2335_v11, %v5295_v39 }
 0x632   :  { %4651 = vpow2.f32 %v3790_v34  ;;  %v2466_v34 = vadd.f32 %v6161_v59, %v5326_v41 }
 0x633   :  { %4653 = vpow2.f32 %v3792_v25  ;;  %v2369_v53 = vadd.f32 %v2337_v23, %v5319_v32  ;;  %v3802_v30 = vmul.f32 -1.442695, %v2367_v62 }
 0x634   :  { %4655 = vpow2.f32 %v3794_v27  ;;  %v2468_v23 = vrot.slane %v2466_v34, 3  ;;  %v2470_v62 = vrot.slane %v2466_v34, 5 }
 0x635   :  { %4657 = vpow2.f32 %v3796_v33  ;;  %v3804_v49 = vmul.f32 -1.442695, %v2369_v53 }
 0x636   :  { %4659 = vpow2.f32 %v3798_v58 }
 0x637   :  { %v4636_v16 = vpop.eup %4635  ;;  %4661 = vpow2.f32 %v3800_v56 }
 0x638   :  { %v4638_v61 = vpop.eup %4637  ;;  %v2428_v45 = vadd.f32 1.0, %v4636_v16 }
 0x639   :  { %v4640_v50 = vpop.eup %4639  ;;  %v2418_v44 = vadd.f32 1.0, %v4638_v61 }
 0x63a   :  { %v4642_v18 = vpop.eup %4641  ;;  %v2420_v35 = vadd.f32 1.0, %v4640_v50  ;;  %4663 = vrcp.f32 %v2428_v45 }
 0x63b   :  { %v4644_v20 = vpop.eup %4643  ;;  %v2422_v54 = vadd.f32 1.0, %v4642_v18  ;;  %4665 = vrcp.f32 %v2418_v44  ;;  %v2469_v44 = vrot.slane %v2466_v34, 4 }
 0x63c   :  { %v4646_v14 = vpop.eup %4645  ;;  %v2424_v15 = vadd.f32 1.0, %v4644_v20  ;;  %4667 = vrcp.f32 %v2420_v35 }
 0x63d   :  { %v4648_v29 = vpop.eup %4647  ;;  %v2426_v60 = vadd.f32 1.0, %v4646_v14  ;;  %4669 = vrcp.f32 %v2422_v54  ;;  %v2471_v54 = vrot.slane %v2466_v34, 6 }
 0x63e   :  { %v4650_v47 = vpop.eup %4649  ;;  %v2430_v36 = vadd.f32 1.0, %v4648_v29  ;;  %4671 = vrcp.f32 %v2424_v15  ;;  %v2472_v29 = vrot.slane %v2466_v34, 7 }
 0x63f   :  { %v2432_v8 = vadd.f32 1.0, %v4650_v47  ;;  %4673 = vrcp.f32 %v2426_v60  ;;  %v4652_v43 = vpop.eup %4651 }
 0x640   :  { %4675 = vrcp.f32 %v2430_v36  ;;  %v4654_v31 = vpop.eup %4653  ;;  %v2419_v17 = vadd.f32 1.0, %v4652_v43 }
 0x641   :  { %4677 = vrcp.f32 %v2432_v8  ;;  %v4656_v28 = vpop.eup %4655  ;;  %v2421_v25 = vadd.f32 1.0, %v4654_v31  ;;  %v2474_v31 = vrot.slane %v2466_v34, 2 }
 0x642   :  { %4679 = vpow2.f32 %v3802_v30  ;;  %v4658_v27 = vpop.eup %4657  ;;  %v2423_v33 = vadd.f32 1.0, %v4656_v28  ;;  %v2473_v30 = vrot.slane %v2466_v34, 1 }
 0x643   :  { %4681 = vpow2.f32 %v3804_v49  ;;  %v4660_v58 = vpop.eup %4659  ;;  %v2425_v11 = vadd.f32 1.0, %v4658_v27 }
 0x644   :  { %v4662_v56 = vpop.eup %4661  ;;  %4683 = vrcp.f32 %v2419_v17  ;;  %v2427_v61 = vadd.f32 1.0, %v4660_v58 }
 0x645   :  { %v2429_v45 = vadd.f32 1.0, %v4662_v56  ;;  %4685 = vrcp.f32 %v2421_v25 }
 0x646   :  { %4687 = vrcp.f32 %v2423_v33  ;;  %v6756_v33 = vld [vmem:[#allocation18_spill] sm:$0xff] }
 0x647   :  { %v4664_v16 = vpop.eup %4663  ;;  %4689 = vrcp.f32 %v2429_v45 }
 0x648   :  { %v4666_v50 = vpop.eup %4665  ;;  %v2488_v18 = vmul.f32 %v4664_v16, %v2466_v34  ;;  %4691 = vrcp.f32 %v2425_v11  ;;  %v6757_v11 = vld [vmem:[#allocation19_spill] sm:$0xff] }
 0x649   :  { %v4668_v35 = vpop.eup %4667  ;;  %v2483_v59 = vmul.f32 %v4666_v50, %v2468_v23  ;;  %4693 = vrcp.f32 %v2427_v61  ;;  %v6758_v50 = vld [vmem:[#allocation21_spill] sm:$0xff] }
 0x64a   :  { %v4670_v20 = vpop.eup %4669  ;;  %v2484_v53 = vmul.f32 %v4668_v35, %v2469_v44  ;;  %v2496_v14 = vadd.f32 %v2488_v18, %v6718_v42  ;;  %v6759_v18 = vld [vmem:[#allocation22_spill] sm:$0xff] }
 0x64b   :  { %v4672_v15 = vpop.eup %4671  ;;  %v2485_v60 = vmul.f32 %v4670_v20, %v2470_v62  ;;  %v2491_v47 = vadd.f32 %v2483_v59, %v5337_v52 }
 0x64c   :  { %v4674_v36 = vpop.eup %4673  ;;  %v2486_v8 = vmul.f32 %v4672_v15, %v2471_v54  ;;  %v2492_v49 = vadd.f32 %v2484_v53, %v5343_v46  ;;  %4695 = vtanh.f32 %v2496_v14  ;;  %v2535_v15 = vrot.slane %v6084_v7, 7 }
 0x64d   :  { %v4676_v43 = vpop.eup %4675  ;;  %v2487_v17 = vmul.f32 %v4674_v36, %v2472_v29  ;;  %v2493_v28 = vadd.f32 %v2485_v60, %v5334_v26  ;;  %4697 = vtanh.f32 %v2491_v47  ;;  %v2536_v29 = vrot.slane %v6101_v10, 7 }
 0x64e   :  { %v4678_v25 = vpop.eup %4677  ;;  %v2489_v27 = vmul.f32 %v4676_v43, %v2473_v30  ;;  %v2494_v58 = vadd.f32 %v2486_v8, %v6756_v33  ;;  %4699 = vtanh.f32 %v2492_v49  ;;  %v2531_v36 = vrot.slane %v6086_v1, 7 }
 0x64f   :  { %v4680_v56 = vpop.eup %4679  ;;  %v2495_v16 = vadd.f32 %v2487_v17, %v6757_v11  ;;  %4701 = vtanh.f32 %v2493_v28  ;;  %v2490_v23 = vmul.f32 %v4678_v25, %v2474_v31  ;;  %v2532_v30 = vrot.slane %v6089_v24, 7 }
 0x650   :  { %v4682_v61 = vpop.eup %4681  ;;  %4703 = vtanh.f32 %v2494_v58  ;;  %v2431_v45 = vadd.f32 1.0, %v4680_v56  ;;  %v2497_v44 = vadd.f32 %v2489_v27, %v6758_v50  ;;  %v2533_v8 = vrot.slane %v6091_v21, 7 }
 0x651   :  { %4705 = vtanh.f32 %v2495_v16  ;;  %v2433_v34 = vadd.f32 1.0, %v4682_v61  ;;  %v2498_v35 = vadd.f32 %v2490_v23, %v6759_v18  ;;  %v4684_v62 = vpop.eup %4683  ;;  %v2534_v31 = vrot.slane %v6095_v51, 7 }
 0x652   :  { %4707 = vrcp.f32 %v2431_v45  ;;  %v4686_v59 = vpop.eup %4685  ;;  %v2507_v49 = vsub.f32 1.0, %v4684_v62  ;;  %v2537_v7 = vrot.slane %v6109_v13, 7  ;;  %v2547_v56 = vmul.f32 %v4684_v62, %v2531_v36 }
 0x653   :  { %4709 = vrcp.f32 %v2433_v34  ;;  %v4688_v20 = vpop.eup %4687  ;;  %v2508_v17 = vsub.f32 1.0, %v4686_v59  ;;  %v2548_v61 = vmul.f32 %v4686_v59, %v2532_v30 }
 0x654   :  { %4711 = vtanh.f32 %v2497_v44  ;;  %v4690_v54 = vpop.eup %4689  ;;  %v2509_v58 = vsub.f32 1.0, %v4688_v20  ;;  %v2549_v34 = vmul.f32 %v4688_v20, %v2533_v8 }
 0x655   :  { %4713 = vtanh.f32 %v2498_v35  ;;  %v4692_v53 = vpop.eup %4691  ;;  %v2512_v60 = vsub.f32 1.0, %v4690_v54  ;;  %v2552_v25 = vmul.f32 %v4690_v54, %v2536_v29  ;;  %v2538_v54 = vrot.slane %v6111_v63, 7 }
 0x656   :  { %v4694_v14 = vpop.eup %4693  ;;  %v2510_v23 = vsub.f32 1.0, %v4692_v53  ;;  %v2550_v13 = vmul.f32 %v4692_v53, %v2534_v31 }
 0x657   :  { %v2511_v45 = vsub.f32 1.0, %v4694_v14  ;;  %v2551_v36 = vmul.f32 %v4694_v14, %v2535_v15 }
 0x659   :  { %v4696_v47 = vpop.eup %4695 }
 0x65a   :  { %v4698_v43 = vpop.eup %4697  ;;  %v2520_v28 = vmul.f32 %v4696_v47, %v2512_v60 }
 0x65b   :  { %v4700_v27 = vpop.eup %4699  ;;  %v2515_v10 = vmul.f32 %v4698_v43, %v2507_v49 }
 0x65c   :  { %v4702_v16 = vpop.eup %4701  ;;  %v2516_v1 = vmul.f32 %v4700_v27, %v2508_v17  ;;  %v6206_v24 = vadd.f32 %v2552_v25, %v2520_v28 }
 0x65d   :  { %v4704_v21 = vpop.eup %4703  ;;  %v2517_v44 = vmul.f32 %v4702_v16, %v2509_v58  ;;  %v6208_v51 = vadd.f32 %v2547_v56, %v2515_v10 }
 0x65e   :  { %v4706_v35 = vpop.eup %4705  ;;  %v2518_v29 = vmul.f32 %v4704_v21, %v2510_v23  ;;  %v6211_v60 = vadd.f32 %v2548_v61, %v2516_v1  ;;  %v2568_v63 = vpack.c.bf16 %v6206_v24, %v6206_v24 }
 0x65f   :  { %v4708_v62 = vpop.eup %4707  ;;  %v2519_v47 = vmul.f32 %v4706_v35, %v2511_v45  ;;  %v6213_v49 = vadd.f32 %v2549_v34, %v2517_v44  ;;  %v2563_v59 = vpack.c.bf16 %v6208_v51, %v6208_v51 }
 0x660   :  { %v4710_v30 = vpop.eup %4709  ;;  %v2513_v43 = vsub.f32 1.0, %v4708_v62  ;;  %v6217_v20 = vadd.f32 %v2550_v13, %v2518_v29  ;;  %v2564_v8 = vpack.c.bf16 %v6211_v60, %v6211_v60  ;;  %v2553_v17 = vmul.f32 %v4708_v62, %v2537_v7 }
 0x661   :  { %v4712_v53 = vpop.eup %4711  ;;  %v2514_v31 = vsub.f32 1.0, %v4710_v30  ;;  %v6223_v28 = vadd.f32 %v2551_v36, %v2519_v47  ;;  %v2565_v14 = vpack.c.bf16 %v6213_v49, %v6213_v49  ;;  %v2579_v58 = vunpack.c.l.b16 %v2563_v59 }
 0x662   :  { %v4714_v15 = vpop.eup %4713  ;;  %v2521_v25 = vmul.f32 %v4712_v53, %v2513_v43  ;;  %v2566_v27 = vpack.c.bf16 %v6217_v20, %v6217_v20  ;;  %v2580_v10 = vunpack.c.l.b16 %v2564_v8  ;;  %v2554_v16 = vmul.f32 %v4710_v30, %v2538_v54 }
 0x663   :  { %v2522_v56 = vmul.f32 %v4714_v15, %v2514_v31  ;;  %v2567_v23 = vpack.c.bf16 %v6223_v28, %v6223_v28  ;;  %v2581_v1 = vunpack.c.l.b16 %v2565_v14  ;;  %v2587_v21 = vrot.slane %v2579_v58, 5  ;;  %v4925_v58 = vld [vmem:[%s6569_s1 + $0xe0] ss:$12 sps:$4 sm:$0xff]  }
 0x664   :  { %v6231_v61 = vadd.f32 %v2553_v17, %v2521_v25  ;;  %v2582_v7 = vunpack.c.l.b16 %v2566_v27  ;;  %v2588_v45 = vrot.slane %v2580_v10, 4  ;;  %v2584_v59 = vunpack.c.l.b16 %v2568_v63  ;;  %v4924_v63 = vld [vmem:[%s6569_s1 + $0xd8] ss:$12 sps:$4 sm:$0xff]  }
 0x665   :  { %v6233_v44 = vadd.f32 %v2554_v16, %v2522_v56  ;;  %v2583_v34 = vunpack.c.l.b16 %v2567_v23  ;;  %v2590_v35 = vrot.slane %v2581_v1, 3  ;;  %v4926_v10 = vld [vmem:[%s6569_s1 + $0xc4] ss:$12 sps:$4 sm:$0xff]   ;;  %v4927_v56 = vld [vmem:[%s6569_s1 + $0xc0] ss:$12 sps:$4 sm:$0xff]  }
 0x666   :  { %v2569_v29 = vpack.c.bf16 %v6231_v61, %v6231_v61  ;;  %v2589_v13 = vsel %vm771_vm2, %v2588_v45, %v2587_v21  ;;  %v2592_v62 = vrot.slane %v2582_v7, 2  ;;  %v4928_v16 = vld [vmem:[%s6569_s1 + $0xc8] ss:$12 sps:$4 sm:$0xff]   ;;  %v4929_v23 = vld [vmem:[%s6569_s1 + $0xac] ss:$12 sps:$4 sm:$0xff]  }
 0x667   :  { %v2570_v54 = vpack.c.bf16 %v6233_v44, %v6233_v44  ;;  %v2591_v47 = vsel %vm774_vm3, %v2590_v35, %v2589_v13  ;;  %v2594_v36 = vrot.slane %v2583_v34, 1  ;;  %v4930_v1 = vld [vmem:[%s6569_s1 + $0xa8] ss:$12 sps:$4 sm:$0xff]   ;;  %v4931_v7 = vld [vmem:[%s6569_s1 + $0xb0] ss:$12 sps:$4 sm:$0xff]  }
 0x668   :  { %v2585_v30 = vunpack.c.l.b16 %v2569_v29  ;;  %v2593_v43 = vsel %vm777_vm4, %v2592_v62, %v2591_v47  ;;  %v4932_v21 = vld [vmem:[%s6569_s1 + $0x94] ss:$12 sps:$4 sm:$0xff]   ;;  %v4933_v45 = vld [vmem:[%s6569_s1 + $0x90] ss:$12 sps:$4 sm:$0xff]   ;;  %v4934_v34 = vld [vmem:[%s6569_s1 + $0x98] ss:$12 sps:$4 sm:$0xff]  }
 0x669   :  { %v2586_v8 = vunpack.c.l.b16 %v2570_v54  ;;  %v2595_v53 = vsel %vm780_vm5, %v2594_v36, %v2593_v43  ;;  %v4935_v35 = vld [vmem:[%s6569_s1 + $0x7c] ss:$12 sps:$4 sm:$0xff]   ;;  %v4936_v29 = vld [vmem:[%s6569_s1 + $0x78] ss:$12 sps:$4 sm:$0xff]   ;;  %v4937_v13 = vld [vmem:[%s6569_s1 + $0x80] ss:$12 sps:$4 sm:$0xff]  }
 0x66a   :  { %v2596_v31 = vsel %vm783_vm6, %v2584_v59, %v2595_v53  ;;  %v2597_v17 = vrot.slane %v2585_v30, 7  ;;  %v4938_v62 = vld [vmem:[%s6569_s1 + $0x64] ss:$12 sps:$4 sm:$0xff]   ;;  %v4939_v54 = vld [vmem:[%s6569_s1 + $0x60] ss:$12 sps:$4 sm:$0xff]  }
 0x66b   :  { %v2599_v14 = vrot.slane %v2586_v8, 6  ;;  %v4940_v47 = vld [vmem:[%s6569_s1 + $0x68] ss:$12 sps:$4 sm:$0xff]   ;;  %v4941_v36 = vld [vmem:[%s6569_s1 + $0x4c] ss:$12 sps:$4 sm:$0xff]  }
 0x66c   :  { %v2598_v15 = vsel %vm786_vm7, %v2597_v17, %v2596_v31  ;;  %v4942_v59 = vld [vmem:[%s6569_s1 + $0x48] ss:$12 sps:$4 sm:$0xff]   ;;  %v4943_v30 = vld [vmem:[%s6569_s1 + $0x50] ss:$12 sps:$4 sm:$0xff]   ;;  %v4946_v53 = vld [vmem:[%s6569_s1 + $0x38] ss:$12 sps:$4 sm:$0xff]  }
 0x66d   :  { %v2600_v25 = vsel %vm789_vm8, %v2599_v14, %v2598_v15  ;;  %v4944_v43 = vld [vmem:[%s6569_s1 + $0x34] ss:$12 sps:$4 sm:$0xff]   ;;  %v4945_v8 = vld [vmem:[%s6569_s1 + $0x30] ss:$12 sps:$4 sm:$0xff]  }
 0x66e   :  { %v2601_v27 = vpack.c.b16 %v2600_v25, %v2600_v25 }
 0x670   :  { %2636 = vmatmul.mubr.bf16.vlgmr.msra.gmra.mxu0 %v2601_v27  ;;  %4102 = vmatmul.mubr.bf16.vlgmr.msra.gmra.mxu1 %v2601_v27 }
 0x671   :  { %2966 = vmatpush1.bf16.msra.mxu0 %v4924_v63  ;;  %4106 = vmatpush3.bf16.msra.mxu1 %v4925_v58 }
 0x672   :  { %2967 = vmatprep.subr.bf16.mxu0 %v4926_v10  ;;  %4107 = vmatprep.subr.bf16.mxu1 %v6666_v48 }
 0x673   :  { %2997 = vmatprep.mubr.bf16.mxu0 %v6667_v6  ;;  %4121 = vmatprep.mubr.msk.bf16.mxu1 %vm4974_vm1, %v6666_v48 }
 0x675   :  { %2968 = vmatpush1.bf16.msra.mxu0 %v4927_v56  ;;  %4108 = vmatpush3.bf16.msra.mxu1 %v4928_v16 }
 0x676   :  { %2969 = vmatprep.subr.bf16.mxu0 %v4929_v23  ;;  %4109 = vmatprep.subr.bf16.mxu1 %v6666_v48 }
 0x679   :  { %2970 = vmatpush1.bf16.msra.mxu0 %v4930_v1  ;;  %4110 = vmatpush3.bf16.msra.mxu1 %v4931_v7 }
 0x67a   :  { %2971 = vmatprep.subr.bf16.mxu0 %v4932_v21  ;;  %4111 = vmatprep.subr.bf16.mxu1 %v6666_v48 }
 0x67d   :  { %2972 = vmatpush1.bf16.msra.mxu0 %v4933_v45  ;;  %4112 = vmatpush3.bf16.msra.mxu1 %v4934_v34 }
 0x67e   :  { %2973 = vmatprep.subr.bf16.mxu0 %v4935_v35  ;;  %4113 = vmatprep.subr.bf16.mxu1 %v6666_v48 }
 0x681   :  { %2974 = vmatpush1.bf16.msra.mxu0 %v4936_v29  ;;  %4114 = vmatpush3.bf16.msra.mxu1 %v4937_v13 }
 0x682   :  { %2975 = vmatprep.subr.bf16.mxu0 %v4938_v62  ;;  %4115 = vmatprep.subr.bf16.mxu1 %v6666_v48 }
 0x685   :  { %2976 = vmatpush1.bf16.msra.mxu0 %v4939_v54  ;;  %4116 = vmatpush3.bf16.msra.mxu1 %v4940_v47 }
 0x686   :  { %2977 = vmatprep.subr.bf16.mxu0 %v4941_v36  ;;  %4117 = vmatprep.subr.bf16.mxu1 %v6666_v48 }
 0x689   :  { %2978 = vmatpush1.bf16.msra.mxu0 %v4942_v59  ;;  %4118 = vmatpush3.bf16.msra.mxu1 %v4943_v30 }
 0x68a   :  { %2979 = vmatprep.subr.bf16.mxu0 %v4944_v43  ;;  %4119 = vmatprep.subr.bf16.mxu1 %v6666_v48 }
 0x68d   :  { %2980 = vmatpush1.bf16.msra.mxu0 %v4945_v8  ;;  %4120 = vmatpush3.bf16.msra.mxu1 %v4946_v53 }
 0x68e   :  { %4125 = vmatprep.subr.bf16.mxu1 %v6666_v48 }
 0x730   :  { %v2637_v31 = vpop.f32.mrf.mxu0  ;;  %v6326_v17 = vpop.f32.mrf.mxu1 }
 0x731   :  { %v2686_v14 = vrot.slane %v2637_v31, 2  ;;  %v2688_v15 = vrot.slane %v2637_v31, 3  ;;  %v2690_v25 = vrot.slane %v2637_v31, 4  ;;  %v2692_v27 = vrot.slane %v2637_v31, 5 }
 0x732   :  { %v2694_v63 = vrot.slane %v2637_v31, 6  ;;  %v2696_v58 = vrot.slane %v2637_v31, 7  ;;  %v2698_v10 = vrot.slane %v2637_v31, 1  ;;  %v2728_v56 = vadd.f32 %v2637_v31, %v5292_v38  ;;  %v6329_v16 = vpop.f32.mrf.mxu0  ;;  %v4103_v23 = vpop.f32.mrf.mxu1 }
 0x733   :  { %v2716_v1 = vadd.f32 %v2686_v14, %v6715_v9  ;;  %v2718_v7 = vadd.f32 %v2688_v15, %v5265_v0  ;;  %v2720_v21 = vadd.f32 %v2690_v25, %v6716_v57  ;;  %v2722_v45 = vadd.f32 %v2692_v27, %v6675_v55 }
 0x734   :  { %v2724_v34 = vadd.f32 %v2694_v63, %v6755_v4  ;;  %v2726_v35 = vadd.f32 %v2696_v58, %v6676_v2  ;;  %v3817_v29 = vmul.f32 -1.442695, %v2728_v56  ;;  %v2641_v13 = vpop.f32.mrf.mxu0  ;;  %v2681_v62 = vpop.f32.mrf.mxu1  ;;  %v2730_v54 = vadd.f32 %v2698_v10, %v5297_v40 }
 0x735   :  { %v3805_v47 = vmul.f32 -1.442695, %v2716_v1  ;;  %v3807_v36 = vmul.f32 -1.442695, %v2718_v7  ;;  %v3809_v59 = vmul.f32 -1.442695, %v2720_v21 }
 0x736   :  { %v3811_v30 = vmul.f32 -1.442695, %v2722_v45  ;;  %4715 = vpow2.f32 %v3817_v29  ;;  %v2642_v43 = vpop.f32.mrf.mxu0  ;;  %v4104_v8 = vpop.f32.mrf.mxu1  ;;  %v3813_v53 = vmul.f32 -1.442695, %v2724_v34  ;;  %v3815_v31 = vmul.f32 -1.442695, %v2726_v35 }
 0x737   :  { %4717 = vpow2.f32 %v3805_v47  ;;  %v3819_v14 = vmul.f32 -1.442695, %v2730_v54  ;;  %v2687_v15 = vrot.slane %v6329_v16, 2  ;;  %v2689_v25 = vrot.slane %v6329_v16, 3 }
 0x738   :  { %4719 = vpow2.f32 %v3807_v36  ;;  %v2691_v27 = vrot.slane %v6329_v16, 4  ;;  %v2693_v63 = vrot.slane %v6329_v16, 5  ;;  %v2695_v58 = vrot.slane %v6329_v16, 6 }
 0x739   :  { %4721 = vpow2.f32 %v3809_v59  ;;  %v2697_v10 = vrot.slane %v6329_v16, 7  ;;  %v2717_v56 = vadd.f32 %v2687_v15, %v6677_v22  ;;  %v2719_v23 = vadd.f32 %v2689_v25, %v5270_v3 }
 0x73a   :  { %4723 = vpow2.f32 %v3811_v30  ;;  %v2721_v1 = vadd.f32 %v2691_v27, %v5275_v5  ;;  %v2723_v7 = vadd.f32 %v2693_v63, %v5280_v12  ;;  %v2725_v21 = vadd.f32 %v2695_v58, %v5285_v19 }
 0x73b   :  { %4725 = vpow2.f32 %v3813_v53  ;;  %v2727_v45 = vadd.f32 %v2697_v10, %v5290_v37  ;;  %v3806_v34 = vmul.f32 -1.442695, %v2717_v56  ;;  %v3808_v35 = vmul.f32 -1.442695, %v2719_v23 }
 0x73c   :  { %4727 = vpow2.f32 %v3815_v31  ;;  %v3810_v29 = vmul.f32 -1.442695, %v2721_v1  ;;  %v3812_v13 = vmul.f32 -1.442695, %v2723_v7  ;;  %v3814_v62 = vmul.f32 -1.442695, %v2725_v21 }
 0x73d   :  { %4729 = vpow2.f32 %v3819_v14  ;;  %v3816_v54 = vmul.f32 -1.442695, %v2727_v45  ;;  %v2699_v36 = vrot.slane %v6329_v16, 1  ;;  %v2729_v14 = vadd.f32 %v6329_v16, %v5295_v39 }
 0x73e   :  { %4731 = vpow2.f32 %v3806_v34 }
 0x73f   :  { %4733 = vpow2.f32 %v3808_v35  ;;  %v2731_v27 = vadd.f32 %v2699_v36, %v5319_v32  ;;  %v3818_v7 = vmul.f32 -1.442695, %v2729_v14 }
 0x740   :  { %4735 = vpow2.f32 %v3810_v29 }
 0x741   :  { %4737 = vpow2.f32 %v3812_v13  ;;  %v3820_v45 = vmul.f32 -1.442695, %v2731_v27  ;;  %v2828_v13 = vadd.f32 %v6326_v17, %v5326_v41 }
 0x742   :  { %4739 = vpow2.f32 %v3814_v62 }
 0x743   :  { %v4716_v47 = vpop.eup %4715  ;;  %4741 = vpow2.f32 %v3816_v54 }
 0x744   :  { %v4718_v59 = vpop.eup %4717  ;;  %v2792_v30 = vadd.f32 1.0, %v4716_v47 }
 0x745   :  { %v4720_v43 = vpop.eup %4719  ;;  %v2780_v8 = vadd.f32 1.0, %v4718_v59 }
 0x746   :  { %v4722_v53 = vpop.eup %4721  ;;  %v2782_v31 = vadd.f32 1.0, %v4720_v43  ;;  %4743 = vrcp.f32 %v2792_v30 }
 0x747   :  { %v4724_v15 = vpop.eup %4723  ;;  %v2784_v25 = vadd.f32 1.0, %v4722_v53  ;;  %4745 = vrcp.f32 %v2780_v8  ;;  %v2830_v53 = vrot.slane %v2828_v13, 2 }
 0x748   :  { %v4726_v63 = vpop.eup %4725  ;;  %v2786_v58 = vadd.f32 1.0, %v4724_v15  ;;  %4747 = vrcp.f32 %v2782_v31  ;;  %v2831_v15 = vrot.slane %v2828_v13, 3 }
 0x749   :  { %v4728_v10 = vpop.eup %4727  ;;  %v2788_v56 = vadd.f32 1.0, %v4726_v63  ;;  %4749 = vrcp.f32 %v2784_v25  ;;  %v2832_v63 = vrot.slane %v2828_v13, 4 }
 0x74a   :  { %v4730_v23 = vpop.eup %4729  ;;  %v2790_v1 = vadd.f32 1.0, %v4728_v10  ;;  %4751 = vrcp.f32 %v2786_v58  ;;  %v2833_v10 = vrot.slane %v2828_v13, 5 }
 0x74b   :  { %v2794_v21 = vadd.f32 1.0, %v4730_v23  ;;  %4753 = vrcp.f32 %v2788_v56  ;;  %v4732_v16 = vpop.eup %4731 }
 0x74c   :  { %4755 = vrcp.f32 %v2790_v1  ;;  %v4734_v34 = vpop.eup %4733  ;;  %v2781_v35 = vadd.f32 1.0, %v4732_v16 }
 0x74d   :  { %4757 = vrcp.f32 %v2794_v21  ;;  %v4736_v29 = vpop.eup %4735  ;;  %v2783_v62 = vadd.f32 1.0, %v4734_v34  ;;  %v2835_v34 = vrot.slane %v2828_v13, 7 }
 0x74e   :  { %4759 = vpow2.f32 %v3818_v7  ;;  %v4738_v54 = vpop.eup %4737  ;;  %v2785_v47 = vadd.f32 1.0, %v4736_v29  ;;  %v2834_v7 = vrot.slane %v2828_v13, 6 }
 0x74f   :  { %4761 = vpow2.f32 %v3820_v45  ;;  %v4740_v36 = vpop.eup %4739  ;;  %v2787_v59 = vadd.f32 1.0, %v4738_v54  ;;  %v2836_v54 = vrot.slane %v2828_v13, 1 }
 0x750   :  { %v4742_v30 = vpop.eup %4741  ;;  %v2789_v43 = vadd.f32 1.0, %v4740_v36  ;;  %4763 = vrcp.f32 %v2781_v35 }
 0x751   :  { %v2791_v31 = vadd.f32 1.0, %v4742_v30  ;;  %4765 = vrcp.f32 %v2783_v62 }
 0x752   :  { %4767 = vrcp.f32 %v2785_v47 }
 0x753   :  { %v4744_v8 = vpop.eup %4743  ;;  %4769 = vrcp.f32 %v2787_v59 }
 0x754   :  { %v4746_v14 = vpop.eup %4745  ;;  %v2851_v25 = vmul.f32 %v4744_v8, %v2828_v13  ;;  %4771 = vrcp.f32 %v2789_v43 }
 0x755   :  { %v4748_v27 = vpop.eup %4747  ;;  %v2845_v17 = vmul.f32 %v4746_v14, %v2830_v53  ;;  %4773 = vrcp.f32 %v2791_v31 }
 0x756   :  { %v4750_v58 = vpop.eup %4749  ;;  %v2846_v56 = vmul.f32 %v4748_v27, %v2831_v15  ;;  %v2859_v23 = vadd.f32 %v2851_v25, %v6758_v50 }
 0x757   :  { %v4752_v1 = vpop.eup %4751  ;;  %v2847_v21 = vmul.f32 %v4750_v58, %v2832_v63  ;;  %v2853_v45 = vadd.f32 %v2845_v17, %v5337_v52 }
 0x758   :  { %v4754_v16 = vpop.eup %4753  ;;  %v2848_v35 = vmul.f32 %v4752_v1, %v2833_v10  ;;  %v2854_v29 = vadd.f32 %v2846_v56, %v5343_v46  ;;  %4775 = vtanh.f32 %v2859_v23  ;;  %v2898_v1 = vrot.slane %v6206_v24, 7 }
 0x759   :  { %v4756_v62 = vpop.eup %4755  ;;  %v2849_v47 = vmul.f32 %v4754_v16, %v2834_v7  ;;  %v2855_v36 = vadd.f32 %v2847_v21, %v5334_v26  ;;  %4777 = vtanh.f32 %v2853_v45  ;;  %v2893_v21 = vrot.slane %v6208_v51, 7 }
 0x75a   :  { %v4758_v59 = vpop.eup %4757  ;;  %v2850_v30 = vmul.f32 %v4756_v62, %v2835_v34  ;;  %v2856_v43 = vadd.f32 %v2848_v35, %v6756_v33  ;;  %4779 = vtanh.f32 %v2854_v29  ;;  %v2894_v45 = vrot.slane %v6211_v60, 7 }
 0x75b   :  { %v4760_v8 = vpop.eup %4759  ;;  %v2857_v53 = vadd.f32 %v2849_v47, %v6757_v11  ;;  %4781 = vtanh.f32 %v2855_v36  ;;  %v2852_v31 = vmul.f32 %v4758_v59, %v2836_v54  ;;  %v2895_v16 = vrot.slane %v6213_v49, 7 }
 0x75c   :  { %v4762_v14 = vpop.eup %4761  ;;  %4783 = vtanh.f32 %v2856_v43  ;;  %v2793_v15 = vadd.f32 1.0, %v4760_v8  ;;  %v2858_v25 = vadd.f32 %v2850_v30, %v6718_v42  ;;  %v2896_v29 = vrot.slane %v6217_v20, 7 }
 0x75d   :  { %4785 = vtanh.f32 %v2857_v53  ;;  %v2795_v13 = vadd.f32 1.0, %v4762_v14  ;;  %v2860_v27 = vadd.f32 %v2852_v31, %v6759_v18  ;;  %v4764_v63 = vpop.eup %4763  ;;  %v2897_v62 = vrot.slane %v6223_v28, 7 }
 0x75e   :  { %4787 = vrcp.f32 %v2793_v15  ;;  %v4766_v17 = vpop.eup %4765  ;;  %v2869_v34 = vsub.f32 1.0, %v4764_v63  ;;  %v2899_v54 = vrot.slane %v6231_v61, 7  ;;  %v2900_v59 = vrot.slane %v6233_v44, 7 }
 0x75f   :  { %4789 = vrcp.f32 %v2795_v13  ;;  %v4768_v58 = vpop.eup %4767  ;;  %v2870_v47 = vsub.f32 1.0, %v4766_v17  ;;  %v2909_v43 = vmul.f32 %v4764_v63, %v2893_v21  ;;  %v2910_v53 = vmul.f32 %v4766_v17, %v2894_v45 }
 0x760   :  { %4791 = vtanh.f32 %v2858_v25  ;;  %v4770_v10 = vpop.eup %4769  ;;  %v2871_v24 = vsub.f32 1.0, %v4768_v58  ;;  %v2911_v49 = vmul.f32 %v4768_v58, %v2895_v16 }
 0x761   :  { %4793 = vtanh.f32 %v2860_v27  ;;  %v4772_v56 = vpop.eup %4771  ;;  %v2872_v8 = vsub.f32 1.0, %v4770_v10  ;;  %v2912_v20 = vmul.f32 %v4770_v10, %v2896_v29 }
 0x762   :  { %v4774_v23 = vpop.eup %4773  ;;  %v2873_v14 = vsub.f32 1.0, %v4772_v56  ;;  %v2913_v27 = vmul.f32 %v4772_v56, %v2897_v62 }
 0x763   :  { %v2874_v61 = vsub.f32 1.0, %v4774_v23  ;;  %v2914_v63 = vmul.f32 %v4774_v23, %v2898_v1 }
 0x765   :  { %v4776_v7 = vpop.eup %4775 }
 0x766   :  { %v4778_v35 = vpop.eup %4777 }
 0x767   :  { %v4780_v36 = vpop.eup %4779  ;;  %v2877_v30 = vmul.f32 %v4778_v35, %v2869_v34 }
 0x768   :  { %v4782_v51 = vpop.eup %4781  ;;  %v2878_v60 = vmul.f32 %v4780_v36, %v2870_v47 }
 0x769   :  { %v4784_v31 = vpop.eup %4783  ;;  %v2879_v15 = vmul.f32 %v4782_v51, %v2871_v24  ;;  %v6372_v25 = vadd.f32 %v2909_v43, %v2877_v30 }
 0x76a   :  { %v4786_v28 = vpop.eup %4785  ;;  %v2880_v13 = vmul.f32 %v4784_v31, %v2872_v8  ;;  %v6374_v50 = vadd.f32 %v2910_v53, %v2878_v60 }
 0x76b   :  { %v4788_v44 = vpop.eup %4787  ;;  %v2881_v34 = vmul.f32 %v4786_v28, %v2873_v14  ;;  %v6376_v21 = vadd.f32 %v2911_v49, %v2879_v15  ;;  %v2925_v17 = vpack.c.bf16 %v6372_v25, %v6372_v25 }
 0x76c   :  { %v4790_v58 = vpop.eup %4789  ;;  %v2875_v45 = vsub.f32 1.0, %v4788_v44  ;;  %v2915_v16 = vmul.f32 %v4788_v44, %v2899_v54  ;;  %v6380_v10 = vadd.f32 %v2912_v20, %v2880_v13  ;;  %v2926_v35 = vpack.c.bf16 %v6374_v50, %v6374_v50 }
 0x76d   :  { %v4792_v29 = vpop.eup %4791  ;;  %v2876_v56 = vsub.f32 1.0, %v4790_v58  ;;  %v2916_v62 = vmul.f32 %v4790_v58, %v2900_v59  ;;  %v6384_v47 = vadd.f32 %v2913_v27, %v2881_v34  ;;  %v2927_v23 = vpack.c.bf16 %v6376_v21, %v6376_v21 }
 0x76e   :  { %v4794_v1 = vpop.eup %4793  ;;  %v2882_v36 = vmul.f32 %v4792_v29, %v2874_v61  ;;  %v2883_v24 = vmul.f32 %v4776_v7, %v2875_v45  ;;  %v2928_v30 = vpack.c.bf16 %v6380_v10, %v6380_v10  ;;  %v2941_v54 = vunpack.c.l.b16 %v2925_v17 }
 0x76f   :  { %v2884_v43 = vmul.f32 %v4794_v1, %v2876_v56  ;;  %v2929_v51 = vpack.c.bf16 %v6384_v47, %v6384_v47  ;;  %v2942_v8 = vunpack.c.l.b16 %v2926_v35  ;;  %v2943_v60 = vunpack.c.l.b16 %v2927_v23 }
 0x770   :  { %v6392_v53 = vadd.f32 %v2914_v63, %v2882_v36  ;;  %v6394_v59 = vadd.f32 %v2915_v16, %v2883_v24  ;;  %v2944_v49 = vunpack.c.l.b16 %v2928_v30  ;;  %v2949_v31 = vrot.slane %v2941_v54, 6  ;;  %v4200_v24 = vld [vmem:[%s6569_s1 + $0x198] ss:$12 sps:$4 sm:$0xff]   ;;  %v4202_v30 = vld [vmem:[%s6569_s1 + $0x19c] ss:$12 sps:$4 sm:$0xff]  }
 0x771   :  { %v6396_v14 = vadd.f32 %v2916_v62, %v2884_v43  ;;  %v2945_v15 = vunpack.c.l.b16 %v2929_v51  ;;  %v2950_v7 = vrot.slane %v2942_v8, 5  ;;  %v2952_v20 = vrot.slane %v2943_v60, 4  ;;  %v4203_v54 = vld [vmem:[%s6569_s1 + $0x1a0] ss:$12 sps:$4 sm:$0xff]   ;;  %v4206_v43 = vld [vmem:[%s6569_s1 + $0x184] ss:$12 sps:$4 sm:$0xff]   ;;  %3467 = vmatprep.subr.bf16.mxu0 %v4202_v30 }
 0x772   :  { %v2930_v28 = vpack.c.bf16 %v6392_v53, %v6392_v53  ;;  %v2931_v61 = vpack.c.bf16 %v6394_v59, %v6394_v59  ;;  %v2954_v44 = vrot.slane %v2944_v49, 3  ;;  %v4204_v51 = vld [vmem:[%s6569_s1 + $0x180] ss:$12 sps:$4 sm:$0xff]   ;;  %v4211_v60 = vld [vmem:[%s6569_s1 + $0x170] ss:$12 sps:$4 sm:$0xff]  }
 0x773   :  { %v2932_v13 = vpack.c.bf16 %v6396_v14, %v6396_v14  ;;  %v2951_v27 = vsel %vm771_vm2, %v2950_v7, %v2949_v31  ;;  %v2956_v17 = vrot.slane %v2945_v15, 2  ;;  %v4210_v8 = vld [vmem:[%s6569_s1 + $0x16c] ss:$12 sps:$4 sm:$0xff]   ;;  %v4208_v49 = vld [vmem:[%s6569_s1 + $0x168] ss:$12 sps:$4 sm:$0xff]  }
 0x774   :  { %v2946_v34 = vunpack.c.l.b16 %v2930_v28  ;;  %v2953_v63 = vsel %vm774_vm3, %v2952_v20, %v2951_v27  ;;  %v2947_v29 = vunpack.c.l.b16 %v2931_v61  ;;  %v4214_v31 = vld [vmem:[%s6569_s1 + $0x154] ss:$12 sps:$4 sm:$0xff]   ;;  %v4215_v15 = vld [vmem:[%s6569_s1 + $0x158] ss:$12 sps:$4 sm:$0xff]   ;;  %v4212_v7 = vld [vmem:[%s6569_s1 + $0x150] ss:$12 sps:$4 sm:$0xff]  }
 0x775   :  { %v2948_v58 = vunpack.c.l.b16 %v2932_v13  ;;  %v2955_v45 = vsel %vm777_vm4, %v2954_v44, %v2953_v63  ;;  %v4218_v20 = vld [vmem:[%s6569_s1 + $0x13c] ss:$12 sps:$4 sm:$0xff]   ;;  %v4219_v28 = vld [vmem:[%s6569_s1 + $0x140] ss:$12 sps:$4 sm:$0xff]   ;;  %v4216_v61 = vld [vmem:[%s6569_s1 + $0x138] ss:$12 sps:$4 sm:$0xff]  }
 0x776   :  { %v2957_v16 = vsel %vm780_vm5, %v2956_v17, %v2955_v45  ;;  %v2958_v35 = vrot.slane %v2946_v34, 1  ;;  %v4222_v13 = vld [vmem:[%s6569_s1 + $0x124] ss:$12 sps:$4 sm:$0xff]   ;;  %v4223_v27 = vld [vmem:[%s6569_s1 + $0x128] ss:$12 sps:$4 sm:$0xff]  }
 0x777   :  { %v2961_v62 = vrot.slane %v2948_v58, 7  ;;  %v4220_v44 = vld [vmem:[%s6569_s1 + $0x120] ss:$12 sps:$4 sm:$0xff]   ;;  %v4227_v63 = vld [vmem:[%s6569_s1 + $0x110] ss:$12 sps:$4 sm:$0xff]  }
 0x778   :  { %v2959_v56 = vsel %vm783_vm6, %v2958_v35, %v2957_v16  ;;  %v4226_v34 = vld [vmem:[%s6569_s1 + $0x10c] ss:$12 sps:$4 sm:$0xff]   ;;  %v4224_v17 = vld [vmem:[%s6569_s1 + $0x108] ss:$12 sps:$4 sm:$0xff]   ;;  %v4228_v16 = vld [vmem:[%s6569_s1 + $0xf0] ss:$12 sps:$4 sm:$0xff]  }
 0x779   :  { %v2960_v23 = vsel %vm786_vm7, %v2947_v29, %v2959_v56  ;;  %v4230_v58 = vld [vmem:[%s6569_s1 + $0xf4] ss:$12 sps:$4 sm:$0xff]   ;;  %v4231_v45 = vld [vmem:[%s6569_s1 + $0xf8] ss:$12 sps:$4 sm:$0xff]  }
 0x77a   :  { %v2962_v1 = vsel %vm789_vm8, %v2961_v62, %v2960_v23 }
 0x77b   :  { %v2963_v36 = vpack.c.b16 %v2962_v1, %v2962_v1 }
 0x77d   :  { %2998 = vmatmul.mubr.bf16.vlgmr.msra.gmra.mxu0 %v2963_v36  ;;  %4122 = vmatmul.mubr.bf16.vlgmr.msra.gmra.mxu1 %v2963_v36 }
 0x77e   :  { %3499 = vmatprep.mubr.bf16.mxu0 %v6667_v6  ;;  %4141 = vmatprep.mubr.msk.bf16.mxu1 %vm4974_vm1, %v6666_v48  ;;  %v4207_v6 = vld [vmem:[%s6569_s1 + $0x188] ss:$12 sps:$4 sm:$0xff]  }
 0x77f   :  { %4126 = vmatpush3.bf16.msra.mxu1 %v4203_v54  ;;  %3468 = vmatpush1.bf16.msra.mxu0 %v4200_v24 }
 0x780   :  { %4127 = vmatprep.subr.bf16.mxu1 %v6666_v48  ;;  %3469 = vmatprep.subr.bf16.mxu0 %v4206_v43 }
 0x783   :  { %4128 = vmatpush3.bf16.msra.mxu1 %v4207_v6  ;;  %3470 = vmatpush1.bf16.msra.mxu0 %v4204_v51 }
 0x784   :  { %4129 = vmatprep.subr.bf16.mxu1 %v6666_v48  ;;  %3471 = vmatprep.subr.bf16.mxu0 %v4210_v8 }
 0x787   :  { %4130 = vmatpush3.bf16.msra.mxu1 %v4211_v60  ;;  %3472 = vmatpush1.bf16.msra.mxu0 %v4208_v49 }
 0x788   :  { %4131 = vmatprep.subr.bf16.mxu1 %v6666_v48  ;;  %3473 = vmatprep.subr.bf16.mxu0 %v4214_v31 }
 0x78b   :  { %4132 = vmatpush3.bf16.msra.mxu1 %v4215_v15  ;;  %3474 = vmatpush1.bf16.msra.mxu0 %v4212_v7 }
 0x78c   :  { %4133 = vmatprep.subr.bf16.mxu1 %v6666_v48  ;;  %3475 = vmatprep.subr.bf16.mxu0 %v4218_v20 }
 0x78f   :  { %4134 = vmatpush3.bf16.msra.mxu1 %v4219_v28  ;;  %3476 = vmatpush1.bf16.msra.mxu0 %v4216_v61 }
 0x790   :  { %4135 = vmatprep.subr.bf16.mxu1 %v6666_v48  ;;  %3477 = vmatprep.subr.bf16.mxu0 %v4222_v13 }
 0x793   :  { %4136 = vmatpush3.bf16.msra.mxu1 %v4223_v27  ;;  %3478 = vmatpush1.bf16.msra.mxu0 %v4220_v44 }
 0x794   :  { %4137 = vmatprep.subr.bf16.mxu1 %v6666_v48  ;;  %3479 = vmatprep.subr.bf16.mxu0 %v4226_v34 }
 0x797   :  { %4138 = vmatpush3.bf16.msra.mxu1 %v4227_v63  ;;  %3480 = vmatpush1.bf16.msra.mxu0 %v4224_v17 }
 0x798   :  { %4139 = vmatprep.subr.bf16.mxu1 %v6666_v48  ;;  %3481 = vmatprep.subr.bf16.mxu0 %v4230_v58 }
 0x79b   :  { %4140 = vmatpush3.bf16.msra.mxu1 %v4231_v45  ;;  %3482 = vmatpush1.bf16.msra.mxu0 %v4228_v16 }
 0x79c   :  { %4145 = vmatprep.subr.bf16.mxu1 %v6666_v48 }
 0x83d   :  { %v2999_v35 = vpop.f32.mrf.mxu0  ;;  %v6494_v29 = vpop.f32.mrf.mxu1 }
 0x83e   :  { %v3048_v56 = vrot.slane %v2999_v35, 1  ;;  %v3050_v62 = vrot.slane %v2999_v35, 2  ;;  %v3052_v23 = vrot.slane %v2999_v35, 3  ;;  %v3054_v1 = vrot.slane %v2999_v35, 4 }
 0x83f   :  { %v3056_v36 = vrot.slane %v2999_v35, 5  ;;  %v3058_v24 = vrot.slane %v2999_v35, 6  ;;  %v3060_v30 = vrot.slane %v2999_v35, 7  ;;  %v3092_v54 = vadd.f32 %v2999_v35, %v5297_v40  ;;  %v6497_v43 = vpop.f32.mrf.mxu0  ;;  %v4123_v6 = vpop.f32.mrf.mxu1 }
 0x840   :  { %v3078_v51 = vadd.f32 %v3048_v56, %v6715_v9  ;;  %v3080_v8 = vadd.f32 %v3050_v62, %v5265_v0  ;;  %v3082_v60 = vadd.f32 %v3052_v23, %v6716_v57  ;;  %v3084_v49 = vadd.f32 %v3054_v1, %v6675_v55 }
 0x841   :  { %v3086_v31 = vadd.f32 %v3056_v36, %v6755_v4  ;;  %v3088_v15 = vadd.f32 %v3058_v24, %v6676_v2  ;;  %v3835_v7 = vmul.f32 -1.442695, %v3092_v54  ;;  %v3003_v20 = vpop.f32.mrf.mxu0  ;;  %v3043_v28 = vpop.f32.mrf.mxu1  ;;  %v3090_v40 = vadd.f32 %v3060_v30, %v5292_v38 }
 0x842   :  { %v3821_v61 = vmul.f32 -1.442695, %v3078_v51  ;;  %v3823_v13 = vmul.f32 -1.442695, %v3080_v8  ;;  %v3825_v27 = vmul.f32 -1.442695, %v3082_v60 }
 0x843   :  { %v3827_v44 = vmul.f32 -1.442695, %v3084_v49  ;;  %4795 = vpow2.f32 %v3835_v7  ;;  %v3004_v9 = vpop.f32.mrf.mxu0  ;;  %v4124_v0 = vpop.f32.mrf.mxu1  ;;  %v3829_v57 = vmul.f32 -1.442695, %v3086_v31  ;;  %v3831_v55 = vmul.f32 -1.442695, %v3088_v15 }
 0x844   :  { %4797 = vpow2.f32 %v3821_v61  ;;  %v3833_v4 = vmul.f32 -1.442695, %v3090_v40  ;;  %v3049_v2 = vrot.slane %v6497_v43, 1  ;;  %v3051_v34 = vrot.slane %v6497_v43, 2 }
 0x845   :  { %4799 = vpow2.f32 %v3823_v13  ;;  %v3053_v38 = vrot.slane %v6497_v43, 3  ;;  %v3055_v63 = vrot.slane %v6497_v43, 4  ;;  %v3057_v17 = vrot.slane %v6497_v43, 5 }
 0x846   :  { %4801 = vpow2.f32 %v3825_v27  ;;  %v3059_v58 = vrot.slane %v6497_v43, 6  ;;  %v3079_v45 = vadd.f32 %v3049_v2, %v6677_v22  ;;  %v3081_v16 = vadd.f32 %v3051_v34, %v5270_v3 }
 0x847   :  { %4803 = vpow2.f32 %v3827_v44  ;;  %v3083_v35 = vadd.f32 %v3053_v38, %v5275_v5  ;;  %v3085_v56 = vadd.f32 %v3055_v63, %v5280_v12  ;;  %v3087_v62 = vadd.f32 %v3057_v17, %v5285_v19 }
 0x848   :  { %4805 = vpow2.f32 %v3829_v57  ;;  %v3089_v23 = vadd.f32 %v3059_v58, %v5290_v37  ;;  %v3822_v1 = vmul.f32 -1.442695, %v3079_v45  ;;  %v3824_v36 = vmul.f32 -1.442695, %v3081_v16 }
 0x849   :  { %4807 = vpow2.f32 %v3831_v55  ;;  %v3826_v24 = vmul.f32 -1.442695, %v3083_v35  ;;  %v3828_v30 = vmul.f32 -1.442695, %v3085_v56  ;;  %v3830_v54 = vmul.f32 -1.442695, %v3087_v62 }
 0x84a   :  { %4809 = vpow2.f32 %v3833_v4  ;;  %v3832_v6 = vmul.f32 -1.442695, %v3089_v23  ;;  %v3061_v22 = vrot.slane %v6497_v43, 7  ;;  %v3093_v15 = vadd.f32 %v6497_v43, %v5319_v32 }
 0x84b   :  { %4811 = vpow2.f32 %v3822_v1  ;;  %v3190_v43 = vadd.f32 %v6494_v29, %v5326_v41 }
 0x84c   :  { %4813 = vpow2.f32 %v3824_v36  ;;  %v3091_v60 = vadd.f32 %v3061_v22, %v5295_v39  ;;  %v3836_v9 = vmul.f32 -1.442695, %v3093_v15 }
 0x84d   :  { %4815 = vpow2.f32 %v3826_v24  ;;  %v3192_v45 = vrot.slane %v3190_v43, 1  ;;  %v3193_v56 = vrot.slane %v3190_v43, 2  ;;  %v3194_v1 = vrot.slane %v3190_v43, 3 }
 0x84e   :  { %4817 = vpow2.f32 %v3828_v30  ;;  %v3834_v27 = vmul.f32 -1.442695, %v3091_v60  ;;  %v3195_v36 = vrot.slane %v3190_v43, 4 }
 0x84f   :  { %4819 = vpow2.f32 %v3830_v54 }
 0x850   :  { %v4796_v3 = vpop.eup %4795  ;;  %4821 = vpow2.f32 %v3832_v6  ;;  %v3196_v6 = vrot.slane %v3190_v43, 5 }
 0x851   :  { %v4798_v5 = vpop.eup %4797  ;;  %v3156_v51 = vadd.f32 1.0, %v4796_v3 }
 0x852   :  { %v4800_v12 = vpop.eup %4799  ;;  %v3142_v19 = vadd.f32 1.0, %v4798_v5 }
 0x853   :  { %v4802_v37 = vpop.eup %4801  ;;  %v3144_v8 = vadd.f32 1.0, %v4800_v12  ;;  %4823 = vrcp.f32 %v3156_v51  ;;  %v3197_v51 = vrot.slane %v3190_v43, 6 }
 0x854   :  { %v4804_v49 = vpop.eup %4803  ;;  %v3146_v31 = vadd.f32 1.0, %v4802_v37  ;;  %4825 = vrcp.f32 %v3142_v19 }
 0x855   :  { %v4806_v7 = vpop.eup %4805  ;;  %v3148_v20 = vadd.f32 1.0, %v4804_v49  ;;  %4827 = vrcp.f32 %v3144_v8  ;;  %v3198_v8 = vrot.slane %v3190_v43, 7 }
 0x856   :  { %v4808_v28 = vpop.eup %4807  ;;  %v3150_v40 = vadd.f32 1.0, %v4806_v7  ;;  %4829 = vrcp.f32 %v3146_v31 }
 0x857   :  { %v4810_v61 = vpop.eup %4809  ;;  %v3152_v13 = vadd.f32 1.0, %v4808_v28  ;;  %4831 = vrcp.f32 %v3148_v20 }
 0x858   :  { %v3154_v44 = vadd.f32 1.0, %v4810_v61  ;;  %4833 = vrcp.f32 %v3150_v40  ;;  %v4812_v39 = vpop.eup %4811 }
 0x859   :  { %4835 = vrcp.f32 %v3152_v13  ;;  %v4814_v0 = vpop.eup %4813  ;;  %v3143_v57 = vadd.f32 1.0, %v4812_v39  ;;  %v6760_v13 = vld [vmem:[#allocation21_spill] sm:$0xff] }
 0x85a   :  { %4837 = vrcp.f32 %v3154_v44  ;;  %v4816_v32 = vpop.eup %4815  ;;  %v3145_v55 = vadd.f32 1.0, %v4814_v0  ;;  %v3255_v0 = vrot.slane %v6372_v25, 7  ;;  %v3262_v25 = vrot.slane %v6396_v14, 7 }
 0x85b   :  { %4839 = vpow2.f32 %v3834_v27  ;;  %v4818_v4 = vpop.eup %4817  ;;  %v3147_v2 = vadd.f32 1.0, %v4816_v32  ;;  %v3256_v32 = vrot.slane %v6374_v50, 7 }
 0x85c   :  { %4841 = vpow2.f32 %v3836_v9  ;;  %v4820_v34 = vpop.eup %4819  ;;  %v3149_v38 = vadd.f32 1.0, %v4818_v4 }
 0x85d   :  { %v4822_v63 = vpop.eup %4821  ;;  %v3151_v17 = vadd.f32 1.0, %v4820_v34  ;;  %4843 = vrcp.f32 %v3143_v57  ;;  %v3260_v34 = vrot.slane %v6392_v53, 7 }
 0x85e   :  { %v3153_v16 = vadd.f32 1.0, %v4822_v63  ;;  %4845 = vrcp.f32 %v3145_v55 }
 0x85f   :  { %4847 = vrcp.f32 %v3147_v2  ;;  %v3259_v2 = vrot.slane %v6384_v47, 7 }
 0x860   :  { %v4824_v58 = vpop.eup %4823  ;;  %4849 = vrcp.f32 %v3149_v38  ;;  %v3261_v38 = vrot.slane %v6394_v59, 7 }
 0x861   :  { %v4826_v35 = vpop.eup %4825  ;;  %v3214_v62 = vmul.f32 %v4824_v58, %v3190_v43  ;;  %4851 = vrcp.f32 %v3151_v17  ;;  %v3258_v43 = vrot.slane %v6380_v10, 7 }
 0x862   :  { %v4828_v23 = vpop.eup %4827  ;;  %v3207_v41 = vmul.f32 %v4826_v35, %v3192_v45  ;;  %4853 = vrcp.f32 %v3153_v16 }
 0x863   :  { %v4830_v29 = vpop.eup %4829  ;;  %v3208_v24 = vmul.f32 %v4828_v23, %v3193_v56  ;;  %v3222_v30 = vadd.f32 %v3214_v62, %v6759_v18 }
 0x864   :  { %v4832_v54 = vpop.eup %4831  ;;  %v3209_v22 = vmul.f32 %v4830_v29, %v3194_v1  ;;  %v3215_v3 = vadd.f32 %v3207_v41, %v5337_v52 }
 0x865   :  { %v4834_v5 = vpop.eup %4833  ;;  %v3210_v12 = vmul.f32 %v4832_v54, %v3195_v36  ;;  %v3216_v19 = vadd.f32 %v3208_v24, %v5343_v46  ;;  %4855 = vtanh.f32 %v3222_v30 }
 0x866   :  { %v4836_v37 = vpop.eup %4835  ;;  %v3211_v60 = vmul.f32 %v4834_v5, %v3196_v6  ;;  %v3217_v49 = vadd.f32 %v3209_v22, %v5334_v26  ;;  %4857 = vtanh.f32 %v3215_v3 }
 0x867   :  { %v4838_v31 = vpop.eup %4837  ;;  %v3212_v18 = vmul.f32 %v4836_v37, %v3197_v51  ;;  %v3218_v15 = vadd.f32 %v3210_v12, %v6756_v33  ;;  %4859 = vtanh.f32 %v3216_v19 }
 0x868   :  { %v4840_v7 = vpop.eup %4839  ;;  %v3219_v52 = vadd.f32 %v3211_v60, %v6757_v11  ;;  %4861 = vtanh.f32 %v3217_v49  ;;  %v3213_v20 = vmul.f32 %v4838_v31, %v3198_v8 }
 0x869   :  { %v4842_v28 = vpop.eup %4841  ;;  %4863 = vtanh.f32 %v3218_v15  ;;  %v3155_v46 = vadd.f32 1.0, %v4840_v7  ;;  %v3220_v40 = vadd.f32 %v3212_v18, %v6718_v42  ;;  %v3257_v42 = vrot.slane %v6376_v21, 7 }
 0x86a   :  { %v3157_v61 = vadd.f32 1.0, %v4842_v28  ;;  %v3221_v27 = vadd.f32 %v3213_v20, %v6760_v13  ;;  %4865 = vtanh.f32 %v3219_v52  ;;  %v4844_v26 = vpop.eup %4843 }
 0x86b   :  { %4867 = vrcp.f32 %v3155_v46  ;;  %v4846_v44 = vpop.eup %4845  ;;  %v3231_v55 = vsub.f32 1.0, %v4844_v26  ;;  %v3271_v16 = vmul.f32 %v4844_v26, %v3255_v0 }
 0x86c   :  { %4869 = vrcp.f32 %v3157_v61  ;;  %v4848_v33 = vpop.eup %4847  ;;  %v3232_v63 = vsub.f32 1.0, %v4846_v44  ;;  %v3272_v56 = vmul.f32 %v4846_v44, %v3256_v32 }
 0x86d   :  { %4871 = vtanh.f32 %v3220_v40  ;;  %v4850_v9 = vpop.eup %4849  ;;  %v3233_v58 = vsub.f32 1.0, %v4848_v33  ;;  %v3273_v10 = vmul.f32 %v4848_v33, %v3257_v42 }
 0x86e   :  { %4873 = vtanh.f32 %v3221_v27  ;;  %v4852_v11 = vpop.eup %4851  ;;  %v3234_v35 = vsub.f32 1.0, %v4850_v9  ;;  %v3274_v47 = vmul.f32 %v4850_v9, %v3258_v43 }
 0x86f   :  { %v4854_v39 = vpop.eup %4853  ;;  %v3235_v23 = vsub.f32 1.0, %v4852_v11  ;;  %v3275_v36 = vmul.f32 %v4852_v11, %v3259_v2 }
 0x870   :  { %v3236_v29 = vsub.f32 1.0, %v4854_v39  ;;  %v3276_v6 = vmul.f32 %v4854_v39, %v3260_v34 }
 0x872   :  { %v4856_v57 = vpop.eup %4855 }
 0x873   :  { %v4858_v4 = vpop.eup %4857 }
 0x874   :  { %v4860_v17 = vpop.eup %4859  ;;  %v3239_v45 = vmul.f32 %v4858_v4, %v3231_v55 }
 0x875   :  { %v4862_v50 = vpop.eup %4861  ;;  %v3240_v21 = vmul.f32 %v4860_v17, %v3232_v63 }
 0x876   :  { %v4864_v62 = vpop.eup %4863  ;;  %v3241_v1 = vmul.f32 %v4862_v50, %v3233_v58  ;;  %v3279_v41 = vadd.f32 %v3271_v16, %v3239_v45 }
 0x877   :  { %v4866_v53 = vpop.eup %4865  ;;  %v3242_v59 = vmul.f32 %v4864_v62, %v3234_v35  ;;  %v3280_v24 = vadd.f32 %v3272_v56, %v3240_v21  ;;  %v88_v21 = vld [vmem:[%s6569_s1 + $0x1b0] sm:$0x11] }
 0x878   :  { %v4868_v30 = vpop.eup %4867  ;;  %v3243_v54 = vmul.f32 %v4866_v53, %v3235_v23  ;;  %v3281_v14 = vadd.f32 %v3273_v10, %v3241_v1  ;;  %v3287_v22 = vpack.c.bf16 %v3279_v41, %v3279_v41  ;;  %v3862_v56 = vcombine.high %v88_v21, %v88_v21  ;;  %v6761_v10 = vld [vmem:[#allocation11_spill] sm:$0xff]  ;;  %v4947_v23 = vld [vmem:[%s6570_s2] sm:$0xff] }
 0x879   :  { %v4870_v3 = vpop.eup %4869  ;;  %v3237_v5 = vsub.f32 1.0, %v4868_v30  ;;  %v3277_v51 = vmul.f32 %v4868_v30, %v3261_v38  ;;  %v3282_v12 = vadd.f32 %v3274_v47, %v3242_v59  ;;  %v3288_v19 = vpack.c.bf16 %v3280_v24, %v3280_v24  ;;  %v4948_v47 = vld [vmem:[%s6570_s2 + $0x10] sm:$0xff] }
 0x87a   :  { %v4872_v37 = vpop.eup %4871  ;;  %v3238_v8 = vsub.f32 1.0, %v4870_v3  ;;  %v3278_v60 = vmul.f32 %v4870_v3, %v3262_v25  ;;  %v3283_v49 = vadd.f32 %v3275_v36, %v3243_v54  ;;  %v3289_v31 = vpack.c.bf16 %v3281_v14, %v3281_v14 }
 0x87b   :  { %v4874_v18 = vpop.eup %4873  ;;  %v3244_v15 = vmul.f32 %v4872_v37, %v3236_v29  ;;  %v3290_v7 = vpack.c.bf16 %v3282_v12, %v3282_v12  ;;  %v3315_v52 = vunpack.c.l.b16 %v3287_v22  ;;  %v3316_v20 = vunpack.c.l.b16 %v3288_v19 }
 0x87c   :  { %v3245_v28 = vmul.f32 %v4874_v18, %v3237_v5  ;;  %v3246_v46 = vmul.f32 %v4856_v57, %v3238_v8  ;;  %v3291_v40 = vpack.c.bf16 %v3283_v49, %v3283_v49  ;;  %v3317_v61 = vunpack.c.l.b16 %v3289_v31  ;;  %v4232_v49 = vld [vmem:[%s6569_s1 + $0x1b8] ss:$0 sps:$4 sm:$0x11]   ;;  %v3557_v18 = vpop.permute.xlu0 %3556  ;;  %s4950_s1 = scalar_lea.vmem %s3660_s10, 16 }
 0x87d   :  { %v3284_v13 = vadd.f32 %v3276_v6, %v3244_v15  ;;  %v3318_v27 = vunpack.c.l.b16 %v3290_v7  ;;  %v3323_v26 = vrot.slane %v3315_v52, 7  ;;  %v3324_v44 = vrot.slane %v3316_v20, 6  ;;  %p4951_p0 = scmp.ne.s32.totalorder %s3660_s10, %s4950_s1  ;;  %p4956_p2 = scmp.lt.s32.totalorder %s4954_s11, %s4950_s1 }
 0x87e   :  { %v3285_v33 = vadd.f32 %v3277_v51, %v3245_v28  ;;  %v3286_v9 = vadd.f32 %v3278_v60, %v3246_v46  ;;  %v3319_v11 = vunpack.c.l.b16 %v3291_v40  ;;  %v3326_v39 = vrot.slane %v3317_v61, 5 }
 0x87f   :  { %v3292_v0 = vpack.c.bf16 %v3284_v13, %v3284_v13  ;;  %v3325_v32 = vsel %vm771_vm2, %v3324_v44, %v3323_v26  ;;  %v3328_v42 = vrot.slane %v3318_v27, 4  ;;  %v3297_v62 = vsub.s32 2, %v6761_v10  ;;  %p4957_p3 = por %p4956_p2, %p4955_p1 }
 0x880   :  { %v3293_v43 = vpack.c.bf16 %v3285_v33, %v3285_v33  ;;  %v3327_v55 = vsel %vm774_vm3, %v3326_v39, %v3325_v32  ;;  %v3330_v4 = vrot.slane %v3319_v11, 3  ;;  %v3294_v2 = vpack.c.bf16 %v3286_v9, %v3286_v9 }
 0x881   :  { %v3320_v57 = vunpack.c.l.b16 %v3292_v0  ;;  %v3329_v34 = vsel %vm777_vm4, %v3328_v42, %v3327_v55  ;;  %v3298_v1 = vrot.slane %v4947_v23, %v3297_v62  ;;  %v3306_v41 = vrot.slane %v4948_v47, %v3297_v62  ;;  %p4958_p4 = pnand %p4957_p3, %p4951_p0 }
 0x882   :  { %v3321_v38 = vunpack.c.l.b16 %v3293_v43  ;;  %v3331_v63 = vsel %vm780_vm5, %v3330_v4, %v3329_v34  ;;  %v3322_v45 = vunpack.c.l.b16 %v3294_v2  ;;  %v3861_v31 = vcombine.low %v88_v21, %v88_v21 }
 0x883   :  { %v3332_v17 = vrot.slane %v3320_v57, 2  ;;  %v3569_v7 = vrot.slane %v3557_v18, 3 }
 0x884   :  { %v3334_v58 = vrot.slane %v3321_v38, 1 }
 0x885   :  { %v3333_v25 = vsel %vm783_vm6, %v3332_v17, %v3331_v63 }
 0x886   :  { %v3335_v16 = vsel %vm786_vm7, %v3334_v58, %v3333_v25 }
 0x887   :  { %v3336_v50 = vsel %vm789_vm8, %v3322_v45, %v3335_v16 }
 0x888   :  { %v3337_v35 = vpack.c.b16 %v3336_v50, %v3336_v50 }
 0x88a   :  { %3500 = vmatmul.mubr.bf16.vlgmr.msra.gmra.mxu0 %v3337_v35  ;;  %4142 = vmatmul.mubr.bf16.vlgmr.msra.gmra.mxu1 %v3337_v35 }
 0x88b   :  { %4147 = vmatprep.mubr.msk.bf16.mxu1 %vm4974_vm1, %v6666_v48  ;;  %3603 = vmatprep.mubr.bf16.mxu0 %v3862_v56  ;;  %v4949_v48 = vld [vmem:[%s6570_s2 + $0x8] sm:$0xff] }
 0x88c   :  { %v3302_v53 = vrot.slane %v4949_v48, %v3297_v62 }
 0x94a   :  { %v3501_v29 = vpop.f32.mrf.mxu0  ;;  %v3542_v59 = vpop.f32.mrf.mxu1 }
 0x94b   :  { %v3502_v36 = vadd.f32 %v3501_v29, %v3298_v1  ;;  %v3543_v24 = vadd.f32 %v3542_v59, %v3306_v41 }
 0x94c   :  { %v3503_v30 = vpop.f32.mrf.mxu0  ;;  %v4143_v54 = vpop.f32.mrf.mxu1 }
 0x94d   :  { %v3550_v6 = vmax.f32 %v3543_v24, 0.0  ;;  %v3504_v14 = vadd.f32 %v3503_v30, %v3302_v53  ;;  %v3548_v22 = vmax.f32 %v3502_v36, 0.0 }
 0x94e   :  { %v3505_v3 = vpop.f32.mrf.mxu0  ;;  %v3545_v5 = vpop.f32.mrf.mxu1 }
 0x94f   :  { %v3553_v51 = vpack.c.bf16 %v3550_v6, %v3550_v6  ;;  %v3549_v12 = vmax.f32 %v3504_v14, 0.0  ;;  %v3551_v60 = vpack.c.bf16 %v3548_v22, %v3548_v22 }
 0x950   :  { %v3506_v19 = vpop.f32.mrf.mxu0  ;;  %v4144_v37 = vpop.f32.mrf.mxu1 }
 0x951   :  { %v3552_v8 = vpack.c.bf16 %v3549_v12, %v3549_v12  ;;  %4146 = vmatpush3.bf16.xpose.msra.mxu1 %v3553_v51 }
 0x953   :  { %3585 = vmatprep.subr.bf16.mxu0 %v3552_v8 }
 0x954   :  { %3586 = vmatpush1.bf16.xpose.msra.mxu0 %v3551_v60 }
 0x958   :  { %4148 = vmatmul.mubr.bf16.vlgmr.msra.gmra.mxu1 %v4232_v49 }
 0x95b   :  { %3604 = vmatmul.mubr.bf16.vlgmr.msra.gmra.mxu0 %v3861_v31 }
 0xa18   :  { %v3645_v15 = vpop.f32.mrf.mxu1 }
 0xa1a   :  { %v4149_v52 = vpop.f32.mrf.mxu1 }
 0xa1b   :  { %v3605_v20 = vpop.f32.mrf.mxu0 }
 0xa1c   :  { %v3606_v28 = vadd.f32 %v3605_v20, %v3569_v7  ;;  %v3648_v46 = vpop.f32.mrf.mxu1 }
 0xa1d   :  { %v3607_v40 = vpop.f32.mrf.mxu0 }
 0xa1e   :  { %v3646_v61 = vadd.f32 %v3645_v15, %v3606_v28  ;;  %v4150_v13 = vpop.f32.mrf.mxu1 }
 0xa1f   :  { %v3608_v27 = vpop.f32.mrf.mxu0 }
 0xa20   :  { %3652 = vst.msk [vmem:[#allocation2] sm:$0x1] %vm3651_vm9, %v3646_v61 }
 0xa21   :  { %v3609_v26 = vpop.f32.mrf.mxu0 }
 0xa22   :  { %4961 = shalt.err (!%p4958_p4)
}
 0xa23   :  { %3662 = dma.vmem_to_hbm [thread:$0]  %s3660_s10, 16, %s6571_s3, [#allocation3]  }
 0xa24   :  { %4970 = dma.done.wait [#allocation3], 16  }
 0xa25   :  { %4971 = vsyncadd [#allocation3], 4294967280 }
 0xa26   :  { %3666 = vsyncpa [#allocation3], 1 }

</bundles_post_ra>
